<compile_context>
chip_gen: v7x
topology: tpu7x:2x2x1
jax: 0.10.0
libtpu: 0.0.40
codegen_flags: <defaults>
</compile_context>

<pallas_src>
import numpy as np
import jax
import jax.numpy as jnp
from jax.experimental import pallas as pl
from jax.experimental.pallas import tpu as pltpu

N_TOTAL = 256     # max_num_act_out (padded active-point count)
C = 32            # in_channels == out_channels in ReconBlock
KVOL = 3          # kernel volume of each branch (3x1x1, 1x3x1, 1x1x3)
NCONV = 3         # conv1, conv1_2, conv1_3
N_TAPS = 2 * NCONV  # non-centre taps across the three branches


def recon_kernel(pre_ref, bd_ref, idx_ref, feats_ref, out_ref):
    """One row-tile of:
         out = (sigmoid(subm_conv1(x)) + sigmoid(subm_conv1_2(x))
                + sigmoid(subm_conv1_3(x))) * x
    pre_ref:   [M, 3C] f32  centre-tap pre-activations (+bias), this tile
    bd_ref:    [6N, 3C] f32 block-diagonal gather source (full array)
    idx_ref:   [M, 8]  i32  non-centre neighbour rows (col 2c+kk, -1 = none)
    feats_ref: [M, C]  f32  this tile of the input features
    """
    ch = out_ref.shape[1]
    n_total = bd_ref.shape[0] // N_TAPS

    # Shared [1, N] lane iota; one compare + one cast per tap (review item 3).
    # -1 ("no neighbour") never matches, so no where/OR needed.
    lane_n = jax.lax.broadcasted_iota(jnp.int32, (1, n_total), 1)
    ohs = [(lane_n == idx_ref[:, j:j + 1]).astype(jnp.float32)   # [M, N]
           for j in range(N_TAPS)]
    oh = jnp.concatenate(ohs, axis=1)                            # [M, 6N] (128-aligned)

    # Single block-diagonal gather matmul -> [M, 3C] (96-lane MXU output).
    gathered = jnp.dot(oh, bd_ref[...], preferred_element_type=jnp.float32)

    pre = pre_ref[...] + gathered                                # [M, 3C]
    gate3 = jax.nn.sigmoid(pre)                                  # one EUP dispatch
    gate = gate3[:, :ch] + gate3[:, ch:2 * ch] + gate3[:, 2 * ch:]
    out_ref[...] = (gate * feats_ref[...]).astype(out_ref.dtype)


def recon_block(feats, idx_nc, w_full, bias, *, num_tiles=1):
    """feats: [N, C] f32 (rows >= num_act MUST be zero); idx_nc: [N, 8] i32;
       w_full: [C, 9C] f32 = [centre 3C | non-centre 6C]; bias: [1, 3C] f32."""
    n_total, ch = feats.shape
    assert n_total % num_tiles == 0
    tile_m = n_total // num_tiles

    # ---- hoisted projection: ONE matmul for all taps/branches (review item 1)
    p_all = jnp.dot(feats, w_full, precision=jax.lax.Precision.HIGHEST)  # [N, 9C]
    pre_center = p_all[:, :NCONV * ch] + bias                            # [N, 3C]
    p_nc = p_all[:, NCONV * ch:]                                         # [N, 6C]

    # Block-diagonal gather source: rows j*N..(j+1)*N hold tap j's projection
    # in the lane block of its branch (j // 2) -> one in-kernel gather matmul.
    bd = jnp.zeros((N_TAPS * n_total, NCONV * ch), feats.dtype)
    for j in range(N_TAPS):
        cc = j // 2
        bd = bd.at[j * n_total:(j + 1) * n_total,
                   cc * ch:(cc + 1) * ch].set(p_nc[:, j * ch:(j + 1) * ch])

    # Single grid step on single-TC chips (v5e/v6e); CORE_PARALLEL row tiles
    # only when explicitly asked for (v7x, 2 TensorCores).
    sem = (pltpu.CORE_PARALLEL,) if num_tiles > 1 else ("arbitrary",)

    return pl.pallas_call(
        recon_kernel,
        out_shape=jax.ShapeDtypeStruct((n_total, ch), feats.dtype),
        grid_spec=pltpu.PrefetchScalarGridSpec(
            num_scalar_prefetch=0,
            grid=(num_tiles,),
            in_specs=[
                pl.BlockSpec((tile_m, NCONV * ch), lambda i: (i, 0)),    # pre_center
                pl.BlockSpec(bd.shape, lambda i: (0, 0)),                # gather source
                pl.BlockSpec((tile_m, idx_nc.shape[1]), lambda i: (i, 0)),
                pl.BlockSpec((tile_m, ch), lambda i: (i, 0)),            # feats tile
            ],
            out_specs=pl.BlockSpec((tile_m, ch), lambda i: (i, 0)),
        ),
        compiler_params=pltpu.CompilerParams(dimension_semantics=sem),
    )(pre_center, bd, idx_nc, feats)


recon_block_jit = jax.jit(recon_block, static_argnames=("num_tiles",))


# ----------------------------- host-side glue ------------------------------
def fused_weight_bias(w, gamma, beta, mean, var):
    """Mirror of InferSpConvModule.fused_weight_bias (numpy)."""
    std = np.sqrt(var)
    wf = w / std[:, None, None, None, None] * gamma[:, None, None, None, None]
    bf = beta - mean / std * gamma
    o, i = wf.shape[0], wf.shape[4]
    kvol = wf.shape[1] * wf.shape[2] * wf.shape[3]
    wf = wf.reshape(o, kvol, i).transpose(1, 2, 0)             # [kvol, I, O]
    return wf.astype(np.float32), bf.astype(np.float32)


def build_subm_indices(coors, num_act, n_max, axis):
    """Submanifold rulebook for a 3-tap kernel along `axis` (0=z,1=y,2=x)."""
    lut = {tuple(c): i for i, c in enumerate(coors[:num_act].tolist())}
    idx = -np.ones((KVOL, n_max, 1), np.int32)
    for nrow in range(num_act):
        base = list(coors[nrow])
        for k, d in enumerate((-1, 0, 1)):
            cc = list(base)
            cc[1 + axis] += d
            idx[k, nrow, 0] = lut.get(tuple(cc), -1)
    return idx


def pack_weights(w_all, b_all):
    """Pack per-branch [KVOL, C, C] weights into [C, 9C] = [centre 3C | nc 6C]."""
    w_center = np.concatenate([w_all[c, 1] for c in range(NCONV)], axis=1)   # [C, 3C]
    w_nc = np.concatenate([w_all[c, k] for c in range(NCONV) for k in (0, 2)],
                          axis=1)                                            # [C, 6C]
    w_full = np.concatenate([w_center, w_nc], axis=1)                        # [C, 9C]
    bias = np.concatenate([b_all[c] for c in range(NCONV)]).reshape(1, -1)   # [1, 3C]
    return jnp.asarray(w_full, jnp.float32), jnp.asarray(bias, jnp.float32)


def pack_indices(idx_all, n_total):
    """[N, 8] i32: column 2c+kk = neighbour row for branch c, tap k in {0,2}."""
    idx_nc = -np.ones((n_total, 8), np.int32)
    for c in range(NCONV):
        for kk, k in enumerate((0, 2)):
            idx_nc[:, 2 * c + kk] = idx_all[c, k, :, 0]
    return jnp.asarray(idx_nc)


if __name__ == "__main__":
    key = jax.random.PRNGKey(0)
    keys = jax.random.split(key, 5)

    # active voxel coordinates (batch 0) on an 8x8x8 spatial grid
    D = H = W_sp = 8
    num_act = 200
    flat = np.asarray(jax.random.permutation(keys[0], D * H * W_sp))[:num_act]
    zz, rem = np.divmod(flat, H * W_sp)
    yy, xx = np.divmod(rem, W_sp)
    coors = np.stack([np.zeros_like(zz), zz, yy, xx], axis=1).astype(np.int32)

    feats_np = np.zeros((N_TOTAL, C), np.float32)
    feats_np[:num_act] = np.asarray(
        jax.random.normal(keys[1], (num_act, C), jnp.float32))

    # three branches: conv1 (3x1x1), conv1_2 (1x3x1), conv1_3 (1x1x3), each + BN
    kernel_sizes = [(3, 1, 1), (1, 3, 1), (1, 1, 3)]
    W_all = np.zeros((NCONV, KVOL, C, C), np.float32)
    B_all = np.zeros((NCONV, C), np.float32)
    idx_all = np.zeros((NCONV, KVOL, N_TOTAL, 1), np.int32)
    for c, ks in enumerate(kernel_sizes):
        kw, kg, kb, km, kv = jax.random.split(keys[2 + c], 5)
        w = np.asarray(jax.random.normal(kw, (C,) + ks + (C,), jnp.float32)) * 0.1
        gamma = np.asarray(jax.random.uniform(kg, (C,), minval=0.5, maxval=1.5))
        beta = np.asarray(jax.random.normal(kb, (C,), jnp.float32)) * 0.1
        mean = np.asarray(jax.random.normal(km, (C,), jnp.float32)) * 0.1
        var = np.asarray(jax.random.uniform(kv, (C,), minval=0.5, maxval=1.5))
        W_all[c], B_all[c] = fused_weight_bias(w, gamma, beta, mean, var)
        idx_all[c] = build_subm_indices(coors, num_act, N_TOTAL, axis=c)

    w_full, bias = pack_weights(W_all, B_all)
    idx_nc = pack_indices(idx_all, N_TOTAL)

    # num_tiles=1: single grid step (v5e/v6e best case). Use num_tiles=2 with
    # CORE_PARALLEL on v7x to put one row tile on each TensorCore.
    out = recon_block_jit(jnp.asarray(feats_np), idx_nc, w_full, bias, num_tiles=1)
    out = jax.block_until_ready(out)
    # The full ReconBlock tuple output would be
    # (out, coors, num_act, (D, H, W_sp), index_dict): metadata passes through unchanged.

    # pure-numpy (float32, exact) reference of the same fused forward
    gate = np.zeros((N_TOTAL, C), np.float32)
    for c in range(NCONV):
        acc = np.tile(B_all[c], (N_TOTAL, 1))
        for k in range(KVOL):
            g = np.zeros((N_TOTAL, C), np.float32)
            valid = idx_all[c, k, :, 0] >= 0
            g[valid] = feats_np[idx_all[c, k, valid, 0]]
            acc = acc + g @ W_all[c, k]
        gate += 1.0 / (1.0 + np.exp(-acc))
    ref = gate * feats_np

    np.testing.assert_allclose(np.asarray(out), ref, rtol=1e-2, atol=5e-2)
    print("KERNEL_OK")
</pallas_src>

<mosaic_0001>
module attributes {stable_mosaic.version = 11 : i64} {
  func.func @recon_kernel(%arg0: i32, %arg1: memref<256x96xf32, #tpu.memory_space<vmem>>, %arg2: memref<1536x96xf32, #tpu.memory_space<vmem>>, %arg3: memref<256x8xi32, #tpu.memory_space<vmem>>, %arg4: memref<256x32xf32, #tpu.memory_space<vmem>>, %arg5: memref<256x32xf32, #tpu.memory_space<vmem>>) attributes {dimension_semantics = [#tpu.dimension_semantics<arbitrary>], iteration_bounds = array<i64: 1>, scalar_prefetch = 0 : i64, scratch_operands = 0 : i64, tpu.core_type = #tpu.core_type<tc>, window_params = [{transform_indices = @transform_0, window_bounds = array<i64: 256, 96>}, {pipeline_mode = #tpu.pipeline_mode<synchronous>, transform_indices = @transform_1, window_bounds = array<i64: 1536, 96>}, {transform_indices = @transform_2, window_bounds = array<i64: 256, 8>}, {transform_indices = @transform_3, window_bounds = array<i64: 256, 32>}, {transform_indices = @transform_4, window_bounds = array<i64: 256, 32>}]} {
    %0 = tpu.iota {dimensions = array<i32: 1>} : vector<1x256xi32>
    %c0 = arith.constant 0 : index
    %c0_0 = arith.constant 0 : index
    %1 = vector.load %arg3[%c0, %c0_0] : memref<256x8xi32, #tpu.memory_space<vmem>>, vector<256x1xi32>
    %2 = vector.broadcast %0 : vector<1x256xi32> to vector<256x256xi32>
    %3 = vector.broadcast %1 : vector<256x1xi32> to vector<256x256xi32>
    %4 = arith.cmpi eq, %2, %3 : vector<256x256xi32>
    %5 = arith.extui %4 : vector<256x256xi1> to vector<256x256xi32>
    %6 = arith.sitofp %5 : vector<256x256xi32> to vector<256x256xf32>
    %c0_1 = arith.constant 0 : index
    %c1 = arith.constant 1 : index
    %7 = vector.load %arg3[%c0_1, %c1] : memref<256x8xi32, #tpu.memory_space<vmem>>, vector<256x1xi32>
    %8 = vector.broadcast %0 : vector<1x256xi32> to vector<256x256xi32>
    %9 = vector.broadcast %7 : vector<256x1xi32> to vector<256x256xi32>
    %10 = arith.cmpi eq, %8, %9 : vector<256x256xi32>
    %11 = arith.extui %10 : vector<256x256xi1> to vector<256x256xi32>
    %12 = arith.sitofp %11 : vector<256x256xi32> to vector<256x256xf32>
    %c0_2 = arith.constant 0 : index
    %c2 = arith.constant 2 : index
    %13 = vector.load %arg3[%c0_2, %c2] : memref<256x8xi32, #tpu.memory_space<vmem>>, vector<256x1xi32>
    %14 = vector.broadcast %0 : vector<1x256xi32> to vector<256x256xi32>
    %15 = vector.broadcast %13 : vector<256x1xi32> to vector<256x256xi32>
    %16 = arith.cmpi eq, %14, %15 : vector<256x256xi32>
    %17 = arith.extui %16 : vector<256x256xi1> to vector<256x256xi32>
    %18 = arith.sitofp %17 : vector<256x256xi32> to vector<256x256xf32>
    %c0_3 = arith.constant 0 : index
    %c3 = arith.constant 3 : index
    %19 = vector.load %arg3[%c0_3, %c3] : memref<256x8xi32, #tpu.memory_space<vmem>>, vector<256x1xi32>
    %20 = vector.broadcast %0 : vector<1x256xi32> to vector<256x256xi32>
    %21 = vector.broadcast %19 : vector<256x1xi32> to vector<256x256xi32>
    %22 = arith.cmpi eq, %20, %21 : vector<256x256xi32>
    %23 = arith.extui %22 : vector<256x256xi1> to vector<256x256xi32>
    %24 = arith.sitofp %23 : vector<256x256xi32> to vector<256x256xf32>
    %c0_4 = arith.constant 0 : index
    %c4 = arith.constant 4 : index
    %25 = vector.load %arg3[%c0_4, %c4] : memref<256x8xi32, #tpu.memory_space<vmem>>, vector<256x1xi32>
    %26 = vector.broadcast %0 : vector<1x256xi32> to vector<256x256xi32>
    %27 = vector.broadcast %25 : vector<256x1xi32> to vector<256x256xi32>
    %28 = arith.cmpi eq, %26, %27 : vector<256x256xi32>
    %29 = arith.extui %28 : vector<256x256xi1> to vector<256x256xi32>
    %30 = arith.sitofp %29 : vector<256x256xi32> to vector<256x256xf32>
    %c0_5 = arith.constant 0 : index
    %c5 = arith.constant 5 : index
    %31 = vector.load %arg3[%c0_5, %c5] : memref<256x8xi32, #tpu.memory_space<vmem>>, vector<256x1xi32>
    %32 = vector.broadcast %0 : vector<1x256xi32> to vector<256x256xi32>
    %33 = vector.broadcast %31 : vector<256x1xi32> to vector<256x256xi32>
    %34 = arith.cmpi eq, %32, %33 : vector<256x256xi32>
    %35 = arith.extui %34 : vector<256x256xi1> to vector<256x256xi32>
    %36 = arith.sitofp %35 : vector<256x256xi32> to vector<256x256xf32>
    %37 = tpu.concatenate %6, %12, %18, %24, %30, %36 in 1 : vector<256x256xf32>, vector<256x256xf32>, vector<256x256xf32>, vector<256x256xf32>, vector<256x256xf32>, vector<256x256xf32> -> vector<256x1536xf32>
    %c0_6 = arith.constant 0 : index
    %c0_7 = arith.constant 0 : index
    %38 = vector.load %arg2[%c0_6, %c0_7] : memref<1536x96xf32, #tpu.memory_space<vmem>>, vector<1536x96xf32>
    %cst = arith.constant dense<0.000000e+00> : vector<256x96xf32>
    %39 = tpu.matmul %37, %38, %cst {dimension_numbers = #tpu.dot_dimension_numbers<[1], [0], [0], [1], [0, 0, 1, 1], [], []>} : vector<256x1536xf32>, vector<1536x96xf32>, vector<256x96xf32> -> vector<256x96xf32>
    %c0_8 = arith.constant 0 : index
    %c0_9 = arith.constant 0 : index
    %40 = vector.load %arg1[%c0_8, %c0_9] : memref<256x96xf32, #tpu.memory_space<vmem>>, vector<256x96xf32>
    %41 = arith.addf %40, %39 : vector<256x96xf32>
    %42 = arith.negf %41 : vector<256x96xf32>
    %43 = math.exp %42 : vector<256x96xf32>
    %cst_10 = arith.constant 1.000000e+00 : f32
    %44 = vector.broadcast %cst_10 : f32 to vector<256x96xf32>
    %45 = arith.addf %44, %43 : vector<256x96xf32>
    %46 = arith.divf %44, %45 : vector<256x96xf32>
    %47 = vector.extract_strided_slice %46 {offsets = [0, 0], sizes = [256, 32], strides = [1, 1]} : vector<256x96xf32> to vector<256x32xf32>
    %48 = vector.extract_strided_slice %46 {offsets = [0, 32], sizes = [256, 32], strides = [1, 1]} : vector<256x96xf32> to vector<256x32xf32>
    %49 = arith.addf %47, %48 : vector<256x32xf32>
    %50 = vector.extract_strided_slice %46 {offsets = [0, 64], sizes = [256, 32], strides = [1, 1]} : vector<256x96xf32> to vector<256x32xf32>
    %51 = arith.addf %49, %50 : vector<256x32xf32>
    %c0_11 = arith.constant 0 : index
    %c0_12 = arith.constant 0 : index
    %52 = vector.load %arg4[%c0_11, %c0_12] : memref<256x32xf32, #tpu.memory_space<vmem>>, vector<256x32xf32>
    %53 = arith.mulf %51, %52 : vector<256x32xf32>
    %c0_13 = arith.constant 0 : index
    %c0_14 = arith.constant 0 : index
    %54 = vector.load %arg5[%c0_13, %c0_14] : memref<256x32xf32, #tpu.memory_space<vmem>>, vector<256x32xf32>
    tpu.vector_store %arg5[%c0_13, %c0_14], %53 {strides = array<i32>} : memref<256x32xf32, #tpu.memory_space<vmem>>, vector<256x32xf32>,
    return
  }
  func.func @transform_0(%arg0: i32) -> (i32, i32) {
    %c0_i32 = arith.constant 0 : i32
    %c0_i32_0 = arith.constant 0 : i32
    return %arg0, %c0_i32 : i32, i32
  }
  func.func @transform_1(%arg0: i32) -> (i32, i32) {
    %c0_i32 = arith.constant 0 : i32
    %c0_i32_0 = arith.constant 0 : i32
    %c0_i32_1 = arith.constant 0 : i32
    return %c0_i32, %c0_i32_0 : i32, i32
  }
  func.func @transform_2(%arg0: i32) -> (i32, i32) {
    %c0_i32 = arith.constant 0 : i32
    %c0_i32_0 = arith.constant 0 : i32
    return %arg0, %c0_i32 : i32, i32
  }
  func.func @transform_3(%arg0: i32) -> (i32, i32) {
    %c0_i32 = arith.constant 0 : i32
    %c0_i32_0 = arith.constant 0 : i32
    return %arg0, %c0_i32 : i32, i32
  }
  func.func @transform_4(%arg0: i32) -> (i32, i32) {
    %c0_i32 = arith.constant 0 : i32
    %c0_i32_0 = arith.constant 0 : i32
    return %arg0, %c0_i32 : i32, i32
  }
}

</mosaic_0001>

<bundles_post_ra>
// kernel: recon_block.1
= control target key start
LH: loop header
LB: loop body
LE: loop exit
PB: predicated region body
PF: predicated region fallthrough
CT: control target
= control target key end

     0   :  { %v5276_v0 = vmov 0   ;;  %v5277_v5 = vmov 0.0|0.0   ;;  %s5284_s9 = smov 96   ;;  %s5285_s12 = smov 64   ;;  %s8680_s2 = inlined_call_operand.vmem [shape: s32[256,8], index: 2, kind: input, shape index: {}]   ;;  %s8681_s1 = inlined_call_operand.vmem [shape: f32[1536,96], index: 1, kind: input, shape index: {}]   ;;  %s8682_s0 = inlined_call_operand.vmem [shape: f32[256,96], index: 0, kind: input, shape index: {}]   ;;  %s8683_s3 = inlined_call_operand.vmem [shape: f32[256,32], index: 3, kind: input, shape index: {}]   ;;  %s8684_s4 = inlined_call_operand.vmem [shape: f32[256,32], index: 4, kind: output, shape index: {}]  }
   0x1   :  { %5066 = vset.pattern.permute.xlu1 %v5276_v0  ;;  %5065 = vset.pattern.permute.xlu0 %v5276_v0  ;;  %v5314_v1 = vld [vmem:[%s8680_s2 + $0x10] sm:$0xff]  ;;  %v5319_v2 = vld [vmem:[%s8680_s2] sm:$0xff]  ;;  %v5326_v3 = vld [vmem:[%s8680_s2 + $0x18] sm:$0xff] }
   0x2   :  { %59 = vperm.xlu1 %5066, %v5314_v1   ;;  %53 = vperm.xlu0 %5065, %v5319_v2   ;;  %v5331_v4 = vld [vmem:[%s8680_s2 + $0x8] sm:$0xff]  ;;  %v5345_v7 = vld [vmem:[%s8680_s2 + $0x20] sm:$0xff]  ;;  %v5352_v8 = vld [vmem:[%s8680_s2 + $0x38] sm:$0xff] }
   0x3   :  { %4767 = vmatprep.subr.bf16.mxu0 %v5277_v5  ;;  %4815 = vmatprep.subr.bf16.mxu1 %v5277_v5  ;;  %v5340_v6 = vld [vmem:[%s8680_s2 + $0x28] sm:$0xff]  ;;  %v5357_v9 = vld [vmem:[%s8680_s2 + $0x30] sm:$0xff]  ;;  %v1780_v10 = vld [vmem:[%s8681_s1] sm:$0xff] }
   0x4   :  { %v1781_v11 = vld [vmem:[%s8681_s1 + $0x8] sm:$0xff]  ;;  %v1782_v12 = vld [vmem:[%s8681_s1 + $0x10] sm:$0xff]  ;;  %v1783_v13 = vld [vmem:[%s8681_s1 + $0x18] sm:$0xff] }
   0x5   :  { %v4768_v14 = vpack.c.bf16 %v1781_v11, %v1780_v10  ;;  %v5376_v15 = vld [vmem:[%s8680_s2 + $0x48] sm:$0xff]  ;;  %v5381_v16 = vld [vmem:[%s8680_s2 + $0x40] sm:$0xff]  ;;  %v4771_v17 = vpack.c.bf16 %v1783_v13, %v1782_v12  ;;  %v5395_v20 = vld [vmem:[%s8680_s2 + $0x58] sm:$0xff] }
   0x6   :  { %62 = vperm.xlu1 %5066, %v5326_v3   ;;  %56 = vperm.xlu0 %5065, %v5331_v4   ;;  %v1784_v18 = vld [vmem:[%s8681_s1 + $0x20] sm:$0xff]  ;;  %v1785_v19 = vld [vmem:[%s8681_s1 + $0x28] sm:$0xff]  ;;  %v5400_v21 = vld [vmem:[%s8680_s2 + $0x50] sm:$0xff] }
   0x7   :  { %4769 = vmatpush1.bf16.msra.mxu0 %v4768_v14  ;;  %v4774_v22 = vpack.c.bf16 %v1785_v19, %v1784_v18  ;;  %v1786_v23 = vld [vmem:[%s8681_s1 + $0x30] sm:$0xff]  ;;  %v1787_v24 = vld [vmem:[%s8681_s1 + $0x38] sm:$0xff]  ;;  %v5414_v25 = vld [vmem:[%s8680_s2 + $0x68] sm:$0xff] }
   0x8   :  { %4770 = vmatprep.subr.bf16.mxu0 %v5277_v5  ;;  %v1812_v26 = vld [vmem:[%s8681_s1 + $0x100] sm:$0xff]  ;;  %v1813_v27 = vld [vmem:[%s8681_s1 + $0x108] sm:$0xff]  ;;  %v4777_v29 = vpack.c.bf16 %v1787_v24, %v1786_v23  ;;  %v1814_v31 = vld [vmem:[%s8681_s1 + $0x110] sm:$0xff] }
   0x9   :  { %v5425_v28 = vld [vmem:[%s8680_s2 + $0x60] sm:$0xff]  ;;  %v4816_v30 = vpack.c.bf16 %v1813_v27, %v1812_v26  ;;  %v1815_v32 = vld [vmem:[%s8681_s1 + $0x118] sm:$0xff]  ;;  %v1789_v34 = vld [vmem:[%s8681_s1 + $0x48] sm:$0xff] }
   0xa   :  { %68 = vperm.xlu1 %5066, %v5340_v6   ;;  %65 = vperm.xlu0 %5065, %v5345_v7   ;;  %v1788_v33 = vld [vmem:[%s8681_s1 + $0x40] sm:$0xff]  ;;  %v4819_v35 = vpack.c.bf16 %v1815_v32, %v1814_v31  ;;  %v1817_v37 = vld [vmem:[%s8681_s1 + $0x128] sm:$0xff]  ;;  %v5451_v38 = vld [vmem:[%s8680_s2 + $0x78] sm:$0xff] }
   0xb   :  { %4772 = vmatpush1.bf16.msra.mxu0 %v4771_v17  ;;  %4817 = vmatpush1.bf16.msra.mxu1 %v4816_v30  ;;  %v1816_v36 = vld [vmem:[%s8681_s1 + $0x120] sm:$0xff]  ;;  %v5456_v39 = vld [vmem:[%s8680_s2 + $0x70] sm:$0xff]  ;;  %v4780_v40 = vpack.c.bf16 %v1789_v34, %v1788_v33  ;;  %v1791_v42 = vld [vmem:[%s8681_s1 + $0x58] sm:$0xff] }
   0xc   :  { %4773 = vmatprep.subr.bf16.mxu0 %v5277_v5  ;;  %4818 = vmatprep.subr.bf16.mxu1 %v5277_v5  ;;  %v1790_v41 = vld [vmem:[%s8681_s1 + $0x50] sm:$0xff]  ;;  %v4822_v43 = vpack.c.bf16 %v1817_v37, %v1816_v36  ;;  %v1819_v45 = vld [vmem:[%s8681_s1 + $0x138] sm:$0xff]  ;;  %v5477_v46 = vld [vmem:[%s8680_s2 + $0x88] sm:$0xff] }
   0xd   :  { %v1818_v44 = vld [vmem:[%s8681_s1 + $0x130] sm:$0xff]  ;;  %v5482_v47 = vld [vmem:[%s8680_s2 + $0x80] sm:$0xff]  ;;  %v4783_v48 = vpack.c.bf16 %v1791_v42, %v1790_v41  ;;  %v1793_v50 = vld [vmem:[%s8681_s1 + $0x68] sm:$0xff] }
   0xe   :  { %74 = vperm.xlu1 %5066, %v5352_v8   ;;  %71 = vperm.xlu0 %5065, %v5357_v9   ;;  %v1792_v49 = vld [vmem:[%s8681_s1 + $0x60] sm:$0xff]  ;;  %v4825_v51 = vpack.c.bf16 %v1819_v45, %v1818_v44  ;;  %v1821_v53 = vld [vmem:[%s8681_s1 + $0x148] sm:$0xff]  ;;  %v5503_v54 = vld [vmem:[%s8680_s2 + $0x98] sm:$0xff] }
   0xf   :  { %4775 = vmatpush1.bf16.msra.mxu0 %v4774_v22  ;;  %4820 = vmatpush1.bf16.msra.mxu1 %v4819_v35  ;;  %v1820_v52 = vld [vmem:[%s8681_s1 + $0x140] sm:$0xff]  ;;  %v5508_v55 = vld [vmem:[%s8680_s2 + $0x90] sm:$0xff]  ;;  %v4786_v56 = vpack.c.bf16 %v1793_v50, %v1792_v49  ;;  %v1795_v58 = vld [vmem:[%s8681_s1 + $0x78] sm:$0xff] }
  0x10   :  { %4776 = vmatprep.subr.bf16.mxu0 %v5277_v5  ;;  %4821 = vmatprep.subr.bf16.mxu1 %v5277_v5  ;;  %v1794_v57 = vld [vmem:[%s8681_s1 + $0x70] sm:$0xff]  ;;  %v4828_v59 = vpack.c.bf16 %v1821_v53, %v1820_v52  ;;  %v1823_v61 = vld [vmem:[%s8681_s1 + $0x158] sm:$0xff]  ;;  %v5529_v62 = vld [vmem:[%s8680_s2 + $0xa8] sm:$0xff] }
  0x11   :  { %v1822_v60 = vld [vmem:[%s8681_s1 + $0x150] sm:$0xff]  ;;  %v5534_v63 = vld [vmem:[%s8680_s2 + $0xa0] sm:$0xff]  ;;  %v4789_v0 = vpack.c.bf16 %v1795_v58, %v1794_v57  ;;  %v1797_v11 = vld [vmem:[%s8681_s1 + $0x88] sm:$0xff] }
  0x12   :  { %80 = vperm.xlu1 %5066, %v5376_v15   ;;  %77 = vperm.xlu0 %5065, %v5381_v16   ;;  %v1796_v10 = vld [vmem:[%s8681_s1 + $0x80] sm:$0xff]  ;;  %v4831_v12 = vpack.c.bf16 %v1823_v61, %v1822_v60  ;;  %v1825_v14 = vld [vmem:[%s8681_s1 + $0x168] sm:$0xff]  ;;  %v5555_v17 = vld [vmem:[%s8680_s2 + $0xb8] sm:$0xff] }
  0x13   :  { %4778 = vmatpush1.bf16.msra.mxu0 %v4777_v29  ;;  %4823 = vmatpush1.bf16.msra.mxu1 %v4822_v43  ;;  %v1824_v13 = vld [vmem:[%s8681_s1 + $0x160] sm:$0xff]  ;;  %v5560_v18 = vld [vmem:[%s8680_s2 + $0xb0] sm:$0xff]  ;;  %v4792_v19 = vpack.c.bf16 %v1797_v11, %v1796_v10  ;;  %v1799_v23 = vld [vmem:[%s8681_s1 + $0x98] sm:$0xff] }
  0x14   :  { %4779 = vmatprep.subr.bf16.mxu0 %v5277_v5  ;;  %4824 = vmatprep.subr.bf16.mxu1 %v5277_v5  ;;  %v1798_v22 = vld [vmem:[%s8681_s1 + $0x90] sm:$0xff]  ;;  %v4834_v24 = vpack.c.bf16 %v1825_v14, %v1824_v13  ;;  %v1827_v27 = vld [vmem:[%s8681_s1 + $0x178] sm:$0xff]  ;;  %v5581_v29 = vld [vmem:[%s8680_s2 + $0xc8] sm:$0xff] }
  0x15   :  { %v1826_v26 = vld [vmem:[%s8681_s1 + $0x170] sm:$0xff]  ;;  %v5586_v30 = vld [vmem:[%s8680_s2 + $0xc0] sm:$0xff]  ;;  %v4795_v31 = vpack.c.bf16 %v1799_v23, %v1798_v22  ;;  %v1801_v33 = vld [vmem:[%s8681_s1 + $0xa8] sm:$0xff] }
  0x16   :  { %86 = vperm.xlu1 %5066, %v5395_v20   ;;  %83 = vperm.xlu0 %5065, %v5400_v21   ;;  %v1800_v32 = vld [vmem:[%s8681_s1 + $0xa0] sm:$0xff]  ;;  %v4837_v34 = vpack.c.bf16 %v1827_v27, %v1826_v26  ;;  %v1829_v36 = vld [vmem:[%s8681_s1 + $0x188] sm:$0xff]  ;;  %v5607_v37 = vld [vmem:[%s8680_s2 + $0xd8] sm:$0xff] }
  0x17   :  { %4781 = vmatpush1.bf16.msra.mxu0 %v4780_v40  ;;  %4826 = vmatpush1.bf16.msra.mxu1 %v4825_v51  ;;  %v1828_v35 = vld [vmem:[%s8681_s1 + $0x180] sm:$0xff]  ;;  %v5612_v40 = vld [vmem:[%s8680_s2 + $0xd0] sm:$0xff]  ;;  %v4798_v41 = vpack.c.bf16 %v1801_v33, %v1800_v32  ;;  %v1803_v43 = vld [vmem:[%s8681_s1 + $0xb8] sm:$0xff] }
  0x18   :  { %4782 = vmatprep.subr.bf16.mxu0 %v5277_v5  ;;  %4827 = vmatprep.subr.bf16.mxu1 %v5277_v5  ;;  %v1802_v42 = vld [vmem:[%s8681_s1 + $0xb0] sm:$0xff]  ;;  %v4840_v44 = vpack.c.bf16 %v1829_v36, %v1828_v35  ;;  %v5633_v49 = vld [vmem:[%s8680_s2 + $0xe8] sm:$0xff]  ;;  %v5638_v50 = vld [vmem:[%s8680_s2 + $0xe0] sm:$0xff] }
  0x19   :  { %v1830_v45 = vld [vmem:[%s8681_s1 + $0x190] sm:$0xff]  ;;  %v4801_v51 = vpack.c.bf16 %v1803_v43, %v1802_v42  ;;  %v1804_v52 = vld [vmem:[%s8681_s1 + $0xc0] sm:$0xff]  ;;  %v1805_v53 = vld [vmem:[%s8681_s1 + $0xc8] sm:$0xff] }
  0x1a   :  { %92 = vperm.xlu1 %5066, %v5414_v25   ;;  %89 = vperm.xlu0 %5065, %v5425_v28   ;;  %v1832_v57 = vld [vmem:[%s8681_s1 + $0x1a0] sm:$0xff]  ;;  %v1833_v58 = vld [vmem:[%s8681_s1 + $0x1a8] sm:$0xff]  ;;  %v5664_v60 = vld [vmem:[%s8680_s2 + $0xf0] sm:$0xff]  ;;  %v4804_v61 = vpack.c.bf16 %v1805_v53, %v1804_v52  ;;  %v17_v53 = vlaneseq }
  0x1b   :  { %4784 = vmatpush1.bf16.msra.mxu0 %v4783_v48  ;;  %4829 = vmatpush1.bf16.msra.mxu1 %v4828_v59  ;;  %v1831_v48 = vld [vmem:[%s8681_s1 + $0x198] sm:$0xff]  ;;  %v4846_v11 = vpack.c.bf16 %v1833_v58, %v1832_v57  ;;  %v1809_v22 = vld [vmem:[%s8681_s1 + $0xe8] sm:$0xff]  ;;  %v1836_v26 = vld [vmem:[%s8681_s1 + $0x1c0] sm:$0xff] }
  0x1c   :  { %4785 = vmatprep.subr.bf16.mxu0 %v5277_v5  ;;  %4830 = vmatprep.subr.bf16.mxu1 %v5277_v5  ;;  %v5659_v59 = vld [vmem:[%s8680_s2 + $0xf8] sm:$0xff]  ;;  %v1837_v27 = vld [vmem:[%s8681_s1 + $0x1c8] sm:$0xff]  ;;  %v1810_v32 = vld [vmem:[%s8681_s1 + $0xf0] sm:$0xff] }
  0x1d   :  { %v1807_v10 = vld [vmem:[%s8681_s1 + $0xd8] sm:$0xff]  ;;  %v1838_v35 = vld [vmem:[%s8681_s1 + $0x1d0] sm:$0xff]  ;;  %v1840_v43 = vld [vmem:[%s8681_s1 + $0x1e0] sm:$0xff] }
  0x1e   :  { %98 = vperm.xlu1 %5066, %v5451_v38   ;;  %95 = vperm.xlu0 %5065, %v5456_v39   ;;  %v1835_v13 = vld [vmem:[%s8681_s1 + $0x1b8] sm:$0xff]  ;;  %v1844_v58 = vld [vmem:[%s8681_s1 + $0x200] sm:$0xff] }
  0x1f   :  { %4787 = vmatpush1.bf16.msra.mxu0 %v4786_v56  ;;  %4832 = vmatpush1.bf16.msra.mxu1 %v4831_v12  ;;  %v4843_v56 = vpack.c.bf16 %v1831_v48, %v1830_v45  ;;  %v1834_v12 = vld [vmem:[%s8681_s1 + $0x1b0] sm:$0xff]  ;;  %v1811_v33 = vld [vmem:[%s8681_s1 + $0xf8] sm:$0xff] }
  0x20   :  { %4788 = vmatprep.subr.bf16.mxu0 %v5277_v5  ;;  %4833 = vmatprep.subr.bf16.mxu1 %v5277_v5  ;;  %v4849_v23 = vpack.c.bf16 %v1835_v13, %v1834_v12  ;;  %v1839_v36 = vld [vmem:[%s8681_s1 + $0x1d8] sm:$0xff]  ;;  %v1842_v48 = vld [vmem:[%s8681_s1 + $0x1f0] sm:$0xff]  ;;  %v5279_v12 = vmov 2  }
  0x21   :  { %v4855_v42 = vpack.c.bf16 %v1839_v36, %v1838_v35  ;;  %v1846_v13 = vld [vmem:[%s8681_s1 + $0x210] sm:$0xff]  ;;  %v1851_v35 = vld [vmem:[%s8681_s1 + $0x238] sm:$0xff] }
  0x22   :  { %104 = vperm.xlu1 %5066, %v5477_v46   ;;  %101 = vperm.xlu0 %5065, %v5482_v47  }
  0x23   :  { %4790 = vmatpush1.bf16.msra.mxu0 %v4789_v0  ;;  %4835 = vmatpush1.bf16.msra.mxu1 %v4834_v24  ;;  %v1806_v0 = vld [vmem:[%s8681_s1 + $0xd0] sm:$0xff]  ;;  %v5278_v24 = vmov 1  }
  0x24   :  { %4791 = vmatprep.subr.bf16.mxu0 %v5277_v5  ;;  %4836 = vmatprep.subr.bf16.mxu1 %v5277_v5  ;;  %v4807_v14 = vpack.c.bf16 %v1807_v10, %v1806_v0 }
  0x26   :  { %110 = vperm.xlu1 %5066, %v5503_v54   ;;  %107 = vperm.xlu0 %5065, %v5508_v55  }
  0x27   :  { %4793 = vmatpush1.bf16.msra.mxu0 %v4792_v19  ;;  %4838 = vmatpush1.bf16.msra.mxu1 %v4837_v34  ;;  %v1808_v19 = vld [vmem:[%s8681_s1 + $0xe0] sm:$0xff]  ;;  %v4852_v34 = vpack.c.bf16 %v1837_v27, %v1836_v26  ;;  %v1849_v26 = vld [vmem:[%s8681_s1 + $0x228] sm:$0xff]  ;;  %v5281_v27 = vmov 3  }
  0x28   :  { %4794 = vmatprep.subr.bf16.mxu0 %v5277_v5  ;;  %4839 = vmatprep.subr.bf16.mxu1 %v5277_v5 }
  0x2a   :  { %116 = vperm.xlu1 %5066, %v5529_v62   ;;  %113 = vperm.xlu0 %5065, %v5534_v63  }
  0x2b   :  { %4796 = vmatpush1.bf16.msra.mxu0 %v4795_v31  ;;  %4841 = vmatpush1.bf16.msra.mxu1 %v4840_v44  ;;  %v4810_v31 = vpack.c.bf16 %v1809_v22, %v1808_v19  ;;  %v1841_v44 = vld [vmem:[%s8681_s1 + $0x1e8] sm:$0xff] }
  0x2c   :  { %4797 = vmatprep.subr.bf16.mxu0 %v5277_v5  ;;  %4842 = vmatprep.subr.bf16.mxu1 %v5277_v5  ;;  %v4858_v45 = vpack.c.bf16 %v1841_v44, %v1840_v43  ;;  %v1853_v43 = vld [vmem:[%s8681_s1 + $0x248] sm:$0xff] }
  0x2e   :  { %122 = vperm.xlu1 %5066, %v5555_v17   ;;  %119 = vperm.xlu0 %5065, %v5560_v18  }
  0x2f   :  { %4799 = vmatpush1.bf16.msra.mxu0 %v4798_v41  ;;  %4844 = vmatpush1.bf16.msra.mxu1 %v4843_v56  ;;  %v4813_v41 = vpack.c.bf16 %v1811_v33, %v1810_v32  ;;  %v5757_v56 = vand.u32 127, %v17_v53 }
  0x30   :  { %4800 = vmatprep.subr.bf16.mxu0 %v5277_v5  ;;  %4845 = vmatprep.subr.bf16.mxu1 %v5277_v5 }
  0x31   :  { %v5762_v57 = vadd.s32 128, %v5757_v56 }
  0x32   :  { %128 = vperm.xlu1 %5066, %v5581_v29   ;;  %125 = vperm.xlu0 %5065, %v5586_v30  }
  0x33   :  { %4802 = vmatpush1.bf16.msra.mxu0 %v4801_v51  ;;  %4847 = vmatpush1.bf16.msra.mxu1 %v4846_v11  ;;  %v1843_v51 = vld [vmem:[%s8681_s1 + $0x1f8] sm:$0xff] }
  0x34   :  { %4803 = vmatprep.subr.bf16.mxu0 %v5277_v5  ;;  %4848 = vmatprep.subr.bf16.mxu1 %v5277_v5  ;;  %v4861_v52 = vpack.c.bf16 %v1843_v51, %v1842_v48  ;;  %v1854_v48 = vld [vmem:[%s8681_s1 + $0x250] sm:$0xff] }
  0x36   :  { %134 = vperm.xlu1 %5066, %v5607_v37   ;;  %131 = vperm.xlu0 %5065, %v5612_v40  }
  0x37   :  { %4805 = vmatpush1.bf16.msra.mxu0 %v4804_v61  ;;  %4850 = vmatpush1.bf16.msra.mxu1 %v4849_v23  ;;  %v1845_v61 = vld [vmem:[%s8681_s1 + $0x208] sm:$0xff] }
  0x38   :  { %4806 = vmatprep.subr.bf16.mxu0 %v5277_v5  ;;  %4851 = vmatprep.subr.bf16.mxu1 %v5277_v5  ;;  %v4864_v11 = vpack.c.bf16 %v1845_v61, %v1844_v58  ;;  %v1856_v58 = vld [vmem:[%s8681_s1 + $0x260] sm:$0xff] }
  0x3a   :  { %140 = vperm.xlu1 %5066, %v5633_v49   ;;  %137 = vperm.xlu0 %5065, %v5638_v50  }
  0x3b   :  { %4808 = vmatpush1.bf16.msra.mxu0 %v4807_v14  ;;  %4853 = vmatpush1.bf16.msra.mxu1 %v4852_v34  ;;  %v1847_v14 = vld [vmem:[%s8681_s1 + $0x218] sm:$0xff]  ;;  %v1850_v34 = vld [vmem:[%s8681_s1 + $0x230] sm:$0xff] }
  0x3c   :  { %4809 = vmatprep.subr.bf16.mxu0 %v5277_v5  ;;  %4854 = vmatprep.subr.bf16.mxu1 %v5277_v5  ;;  %v4867_v23 = vpack.c.bf16 %v1847_v14, %v1846_v13 }
  0x3e   :  { %146 = vperm.xlu1 %5066, %v5659_v59   ;;  %143 = vperm.xlu0 %5065, %v5664_v60  }
  0x3f   :  { %4811 = vmatpush1.bf16.msra.mxu0 %v4810_v31  ;;  %4856 = vmatpush1.bf16.msra.mxu1 %v4855_v42  ;;  %v1852_v42 = vld [vmem:[%s8681_s1 + $0x240] sm:$0xff] }
  0x40   :  { %4812 = vmatprep.subr.bf16.mxu0 %v5277_v5  ;;  %4857 = vmatprep.subr.bf16.mxu1 %v5277_v5 }
  0x42   :  { %5068 = vset.pattern.permute.xlu1 %v5278_v24  ;;  %5067 = vset.pattern.permute.xlu0 %v5278_v24  ;;  %v1848_v24 = vld [vmem:[%s8681_s1 + $0x220] sm:$0xff] }
  0x43   :  { %344 = vperm.xlu1 %5068, %v5331_v4   ;;  %341 = vperm.xlu0 %5067, %v5319_v2   ;;  %v4870_v33 = vpack.c.bf16 %v1849_v26, %v1848_v24  ;;  %v1862_v26 = vld [vmem:[%s8681_s1 + $0x290] sm:$0xff] }
  0x44   :  { %4814 = vmatpush1.bf16.msra.mxu0 %v4813_v41  ;;  %4859 = vmatpush1.bf16.msra.mxu1 %v4858_v45  ;;  %v4873_v41 = vpack.c.bf16 %v1851_v35, %v1850_v34  ;;  %v4876_v45 = vpack.c.bf16 %v1853_v43, %v1852_v42  ;;  %v1865_v34 = vld [vmem:[%s8681_s1 + $0x2a8] sm:$0xff] }
  0x45   :  { %4863 = vmatprep.subr.bf16.mxu0 %v5277_v5  ;;  %4860 = vmatprep.subr.bf16.mxu1 %v5277_v5 }
  0x47   :  { %347 = vperm.xlu1 %5068, %v5314_v1   ;;  %350 = vperm.xlu0 %5067, %v5326_v3  }
  0x48   :  { %4862 = vmatpush1.bf16.msra.mxu1 %v4861_v52 }
  0x49   :  { %4911 = vmatprep.subr.bf16.mxu1 %v5277_v5 }
  0x4b   :  { %353 = vperm.xlu1 %5068, %v5345_v7   ;;  %356 = vperm.xlu0 %5067, %v5340_v6  }
  0x4f   :  { %359 = vperm.xlu1 %5068, %v5357_v9   ;;  %362 = vperm.xlu0 %5067, %v5352_v8  }
  0x53   :  { %365 = vperm.xlu1 %5068, %v5381_v16   ;;  %368 = vperm.xlu0 %5067, %v5376_v15  }
  0x57   :  { %371 = vperm.xlu1 %5068, %v5400_v21   ;;  %374 = vperm.xlu0 %5067, %v5395_v20  }
  0x5b   :  { %377 = vperm.xlu1 %5068, %v5425_v28   ;;  %380 = vperm.xlu0 %5067, %v5414_v25  }
  0x5f   :  { %383 = vperm.xlu1 %5068, %v5456_v39   ;;  %386 = vperm.xlu0 %5067, %v5451_v38  }
  0x63   :  { %389 = vperm.xlu1 %5068, %v5482_v47   ;;  %392 = vperm.xlu0 %5067, %v5477_v46  }
  0x67   :  { %395 = vperm.xlu1 %5068, %v5508_v55   ;;  %398 = vperm.xlu0 %5067, %v5503_v54  }
  0x6b   :  { %401 = vperm.xlu1 %5068, %v5534_v63   ;;  %404 = vperm.xlu0 %5067, %v5529_v62  }
  0x6f   :  { %407 = vperm.xlu1 %5068, %v5560_v18   ;;  %410 = vperm.xlu0 %5067, %v5555_v17  }
  0x73   :  { %413 = vperm.xlu1 %5068, %v5586_v30   ;;  %416 = vperm.xlu0 %5067, %v5581_v29  }
  0x77   :  { %419 = vperm.xlu1 %5068, %v5612_v40   ;;  %422 = vperm.xlu0 %5067, %v5607_v37  }
  0x7b   :  { %425 = vperm.xlu1 %5068, %v5638_v50   ;;  %428 = vperm.xlu0 %5067, %v5633_v49  }
  0x7f   :  { %431 = vperm.xlu1 %5068, %v5664_v60   ;;  %434 = vperm.xlu0 %5067, %v5659_v59   ;;  %v5280_v59 = vmov 1.0  }
  0x81   :  { %v60_v0 = vpop.permute.xlu1 %59  ;;  %v54_v10 = vpop.permute.xlu0 %53 }
  0x82   :  { %vm149_vm0 = vcmp.eq.s32.totalorder %v5762_v57, %v54_v10  ;;  %vm148_vm1 = vcmp.eq.s32.totalorder %v5757_v56, %v54_v10  ;;  %vm153_vm4 = vcmp.eq.s32.totalorder %v5762_v57, %v60_v0  ;;  %vm152_vm5 = vcmp.eq.s32.totalorder %v5757_v56, %v60_v0 }
  0x83   :  { %5069 = vset.pattern.permute.xlu1 %v5279_v12  ;;  %5070 = vset.pattern.permute.xlu0 %v5279_v12 }
  0x84   :  { %4351 = vmatprep.mubr.msk.f32.mxu0 %vm149_vm0, %v5280_v59  ;;  %629 = vperm.xlu1 %5069, %v5319_v2  }
  0x85   :  { %632 = vperm.xlu0 %5070, %v5331_v4   ;;  %4352 = vmatmul.mubr.msk.f32.vlgmr.msra.gmra.mrb[0].mxu0 %vm148_vm1, %v5280_v59  ;;  %v63_v19 = vpop.permute.xlu1 %62  ;;  %v57_v22 = vpop.permute.xlu0 %56 }
  0x86   :  { %vm151_vm2 = vcmp.eq.s32.totalorder %v5762_v57, %v57_v22  ;;  %vm150_vm3 = vcmp.eq.s32.totalorder %v5757_v56, %v57_v22  ;;  %4865 = vmatpush1.bf16.msra.mxu0 %v4864_v11  ;;  %vm155_vm6 = vcmp.eq.s32.totalorder %v5762_v57, %v63_v19  ;;  %vm154_vm7 = vcmp.eq.s32.totalorder %v5757_v56, %v63_v19  ;;  %v1858_v11 = vld [vmem:[%s8681_s1 + $0x270] sm:$0xff]  ;;  %v1860_v19 = vld [vmem:[%s8681_s1 + $0x280] sm:$0xff]  ;;  %v1861_v22 = vld [vmem:[%s8681_s1 + $0x288] sm:$0xff] }
  0x87   :  { %4353 = vmatprep.mubr.msk.f32.mxu0 %vm151_vm2, %v5280_v59  ;;  %4866 = vmatprep.subr.bf16.mxu0 %v5277_v5  ;;  %v4888_v24 = vpack.c.bf16 %v1861_v22, %v1860_v19 }
  0x88   :  { %635 = vperm.xlu1 %5069, %v5314_v1  }
  0x89   :  { %5071 = vset.pattern.permute.xlu0 %v5281_v27  ;;  %4354 = vmatmul.mubr.msk.f32.gmra.mrb[2].mxu0 %vm150_vm3, %v5280_v59  ;;  %v69_v31 = vpop.permute.xlu1 %68  ;;  %v66_v32 = vpop.permute.xlu0 %65 }
  0x8a   :  { %917 = vperm.xlu0 %5071, %v5319_v2   ;;  %4355 = vmatprep.mubr.msk.f32.mxu0 %vm153_vm4, %v5280_v59  ;;  %vm157_vm8 = vcmp.eq.s32.totalorder %v5762_v57, %v66_v32  ;;  %vm156_vm9 = vcmp.eq.s32.totalorder %v5757_v56, %v66_v32  ;;  %vm159_vm10 = vcmp.eq.s32.totalorder %v5762_v57, %v69_v31 }
  0x8b   :  { %4868 = vmatpush1.bf16.msra.mxu0 %v4867_v23  ;;  %vm158_vm11 = vcmp.eq.s32.totalorder %v5757_v56, %v69_v31 }
  0x8c   :  { %638 = vperm.xlu1 %5069, %v5326_v3   ;;  %4869 = vmatprep.subr.bf16.mxu0 %v5277_v5 }
  0x8d   :  { %4356 = vmatmul.mubr.msk.f32.gmra.mrb[4].mxu0 %vm152_vm5, %v5280_v59  ;;  %v5811_v2 = vpop.permute.xlu1 %74  ;;  %v72_v36 = vpop.permute.xlu0 %71 }
  0x8e   :  { %926 = vperm.xlu0 %5071, %v5326_v3   ;;  %4357 = vmatprep.mubr.msk.f32.mxu0 %vm155_vm6, %v5280_v59  ;;  %vm161_vm12 = vcmp.eq.s32.totalorder %v5762_v57, %v72_v36  ;;  %vm160_vm13 = vcmp.eq.s32.totalorder %v5757_v56, %v72_v36  ;;  %vm163_vm14 = vcmp.eq.s32.totalorder %v5762_v57, %v5811_v2  ;;  %v1866_v36 = vld [vmem:[%s8681_s1 + $0x2b0] sm:$0xff] }
  0x8f   :  { %4871 = vmatpush1.bf16.msra.mxu0 %v4870_v33  ;;  %vm162_vm15 = vcmp.eq.s32.totalorder %v5757_v56, %v5811_v2  ;;  %v1864_v33 = vld [vmem:[%s8681_s1 + $0x2a0] sm:$0xff] }
  0x90   :  { %5072 = vset.pattern.permute.xlu1 %v5281_v27  ;;  %4872 = vmatprep.subr.bf16.mxu0 %v5277_v5  ;;  %v1863_v27 = vld [vmem:[%s8681_s1 + $0x298] sm:$0xff]  ;;  %v4894_v2 = vpack.c.bf16 %v1865_v34, %v1864_v33 }
  0x91   :  { %4358 = vmatmul.mubr.msk.f32.gmra.mrb[6].mxu0 %vm154_vm7, %v5280_v59  ;;  %v5825_v3 = vpop.permute.xlu1 %80  ;;  %920 = vperm.xlu1 %5072, %v5331_v4   ;;  %v5828_v44 = vpop.permute.xlu0 %77  ;;  %v1855_v4 = vld [vmem:[%s8681_s1 + $0x258] sm:$0xff]  ;;  %v4891_v32 = vpack.c.bf16 %v1863_v27, %v1862_v26 }
  0x92   :  { %929 = vperm.xlu0 %5071, %v5345_v7   ;;  %4359 = vmatprep.mubr.msk.f32.mxu0 %vm157_vm8, %v5280_v59  ;;  %v4879_v53 = vpack.c.bf16 %v1855_v4, %v1854_v48  ;;  %vm165_vm0 = vcmp.eq.s32.totalorder %v5762_v57, %v5828_v44  ;;  %vm164_vm1 = vcmp.eq.s32.totalorder %v5757_v56, %v5828_v44  ;;  %v1869_v44 = vld [vmem:[%s8681_s1 + $0x2c8] sm:$0xff]  ;;  %v1870_v4 = vld [vmem:[%s8681_s1 + $0x2d0] sm:$0xff] }
  0x93   :  { %4874 = vmatpush1.bf16.msra.mxu0 %v4873_v41  ;;  %vm167_vm2 = vcmp.eq.s32.totalorder %v5762_v57, %v5825_v3  ;;  %vm166_vm3 = vcmp.eq.s32.totalorder %v5757_v56, %v5825_v3  ;;  %v1867_v41 = vld [vmem:[%s8681_s1 + $0x2b8] sm:$0xff]  ;;  %v1868_v3 = vld [vmem:[%s8681_s1 + $0x2c0] sm:$0xff] }
  0x94   :  { %4875 = vmatprep.subr.bf16.mxu0 %v5277_v5  ;;  %v4897_v43 = vpack.c.bf16 %v1867_v41, %v1866_v36  ;;  %v4900_v48 = vpack.c.bf16 %v1869_v44, %v1868_v3 }
  0x95   :  { %4360 = vmatmul.mubr.msk.f32.gmra.mrb[8].mxu0 %vm156_vm9, %v5280_v59  ;;  %v5842_v51 = vpop.permute.xlu1 %86  ;;  %923 = vperm.xlu1 %5072, %v5314_v1   ;;  %v5845_v52 = vpop.permute.xlu0 %83  ;;  %v1857_v1 = vld [vmem:[%s8681_s1 + $0x268] sm:$0xff] }
  0x96   :  { %932 = vperm.xlu0 %5071, %v5340_v6   ;;  %4361 = vmatprep.mubr.msk.f32.mxu0 %vm159_vm10, %v5280_v59  ;;  %v4882_v10 = vpack.c.bf16 %v1857_v1, %v1856_v58  ;;  %vm169_vm4 = vcmp.eq.s32.totalorder %v5762_v57, %v5845_v52  ;;  %vm168_vm5 = vcmp.eq.s32.totalorder %v5757_v56, %v5845_v52  ;;  %v1872_v58 = vld [vmem:[%s8681_s1 + $0x2e0] sm:$0xff]  ;;  %v1873_v1 = vld [vmem:[%s8681_s1 + $0x2e8] sm:$0xff] }
  0x97   :  { %4877 = vmatpush1.bf16.msra.mxu0 %v4876_v45  ;;  %vm171_vm6 = vcmp.eq.s32.totalorder %v5762_v57, %v5842_v51  ;;  %vm170_vm7 = vcmp.eq.s32.totalorder %v5757_v56, %v5842_v51  ;;  %v1871_v51 = vld [vmem:[%s8681_s1 + $0x2d8] sm:$0xff] }
  0x98   :  { %4878 = vmatprep.subr.bf16.mxu0 %v5277_v5 }
  0x99   :  { %4362 = vmatmul.mubr.msk.f32.gmra.mrb[10].mxu0 %vm158_vm11, %v5280_v59  ;;  %v5859_v61 = vpop.permute.xlu1 %92  ;;  %5073 = vset.pattern.permute.xlu1 %v5279_v12  ;;  %v5862_v0 = vpop.permute.xlu0 %89  ;;  %v1859_v12 = vld [vmem:[%s8681_s1 + $0x278] sm:$0xff] }
  0x9a   :  { %935 = vperm.xlu0 %5071, %v5357_v9   ;;  %4363 = vmatprep.mubr.msk.f32.mxu0 %vm161_vm12, %v5280_v59  ;;  %vm173_vm8 = vcmp.eq.s32.totalorder %v5762_v57, %v5862_v0  ;;  %vm172_vm9 = vcmp.eq.s32.totalorder %v5757_v56, %v5862_v0  ;;  %vm175_vm10 = vcmp.eq.s32.totalorder %v5762_v57, %v5859_v61 }
  0x9b   :  { %641 = vperm.xlu1 %5073, %v5345_v7   ;;  %4880 = vmatpush1.bf16.msra.mxu0 %v4879_v53  ;;  %v4885_v7 = vpack.c.bf16 %v1859_v12, %v1858_v11  ;;  %v4903_v53 = vpack.c.bf16 %v1871_v51, %v1870_v4  ;;  %vm174_vm11 = vcmp.eq.s32.totalorder %v5757_v56, %v5859_v61  ;;  %v1875_v12 = vld [vmem:[%s8681_s1 + $0x2f8] sm:$0xff]  ;;  %v5237_v51 = vld [vmem:[%s8680_s2 + $0xc8] sm:$0xff] }
  0x9c   :  { %4881 = vmatprep.subr.bf16.mxu0 %v5277_v5  ;;  %v4906_v61 = vpack.c.bf16 %v1873_v1, %v1872_v58  ;;  %v5238_v58 = vld [vmem:[%s8680_s2 + $0xd0] sm:$0xff] }
  0x9d   :  { %4364 = vmatmul.mubr.msk.f32.gmra.mrb[12].mxu0 %vm160_vm13, %v5280_v59  ;;  %v5877_v13 = vpop.permute.xlu1 %98  ;;  %v5879_v14 = vpop.permute.xlu0 %95 }
  0x9e   :  { %938 = vperm.xlu0 %5071, %v5352_v8   ;;  %4365 = vmatprep.mubr.msk.f32.mxu0 %vm163_vm14, %v5280_v59  ;;  %vm177_vm12 = vcmp.eq.s32.totalorder %v5762_v57, %v5879_v14  ;;  %vm176_vm13 = vcmp.eq.s32.totalorder %v5757_v56, %v5879_v14  ;;  %vm179_vm14 = vcmp.eq.s32.totalorder %v5762_v57, %v5877_v13 }
  0x9f   :  { %644 = vperm.xlu1 %5073, %v5340_v6   ;;  %4883 = vmatpush1.bf16.msra.mxu0 %v4882_v10 }
  0xa0   :  { %4884 = vmatprep.subr.bf16.mxu0 %v5277_v5 }
  0xa1   :  { %4366 = vmatmul.mubr.msk.f32.gmra.mrb[14].mxu0 %vm162_vm15, %v5280_v59  ;;  %v5896_v23 = vpop.permute.xlu1 %104  ;;  %v5898_v6 = vpop.permute.xlu0 %101  ;;  %vm178_vm15 = vcmp.eq.s32.totalorder %v5757_v56, %v5877_v13 }
  0xa2   :  { %941 = vperm.xlu0 %5071, %v5381_v16   ;;  %4367 = vmatprep.mubr.msk.f32.mxu0 %vm165_vm0, %v5280_v59  ;;  %vm181_vm0 = vcmp.eq.s32.totalorder %v5762_v57, %v5898_v6 }
  0xa3   :  { %647 = vperm.xlu1 %5073, %v5357_v9   ;;  %4886 = vmatpush1.bf16.msra.mxu0 %v4885_v7  ;;  %v1876_v7 = vld [vmem:[%s8681_s1 + $0x300] sm:$0xff] }
  0xa4   :  { %4887 = vmatprep.subr.bf16.mxu0 %v5277_v5 }
  0xa5   :  { %4368 = vmatmul.mubr.msk.f32.gmra.mrb[16].mxu0 %vm164_vm1, %v5280_v59  ;;  %v5915_v31 = vpop.permute.xlu1 %110  ;;  %v5917_v9 = vpop.permute.xlu0 %107 }
  0xa6   :  { %944 = vperm.xlu0 %5071, %v5376_v15   ;;  %4369 = vmatprep.mubr.msk.f32.mxu0 %vm167_vm2, %v5280_v59 }
  0xa7   :  { %650 = vperm.xlu1 %5073, %v5352_v8   ;;  %4889 = vmatpush1.bf16.msra.mxu0 %v4888_v24 }
  0xa8   :  { %4890 = vmatprep.subr.bf16.mxu0 %v5277_v5 }
  0xa9   :  { %4370 = vmatmul.mubr.msk.f32.gmra.mrb[18].mxu0 %vm166_vm3, %v5280_v59  ;;  %v5934_v35 = vpop.permute.xlu1 %116  ;;  %v5936_v8 = vpop.permute.xlu0 %113  ;;  %vm180_vm3 = vcmp.eq.s32.totalorder %v5757_v56, %v5898_v6 }
  0xaa   :  { %947 = vperm.xlu0 %5071, %v5400_v21   ;;  %4371 = vmatprep.mubr.msk.f32.mxu0 %vm169_vm4, %v5280_v59  ;;  %vm183_vm4 = vcmp.eq.s32.totalorder %v5762_v57, %v5896_v23 }
  0xab   :  { %653 = vperm.xlu1 %5073, %v5381_v16   ;;  %4892 = vmatpush1.bf16.msra.mxu0 %v4891_v32  ;;  %v1880_v32 = vld [vmem:[%s8681_s1 + $0x320] sm:$0xff] }
  0xac   :  { %4893 = vmatprep.subr.bf16.mxu0 %v5277_v5 }
  0xad   :  { %4372 = vmatmul.mubr.msk.f32.gmra.mrb[20].mxu0 %vm168_vm5, %v5280_v59  ;;  %v5953_v42 = vpop.permute.xlu1 %122  ;;  %v5955_v16 = vpop.permute.xlu0 %119 }
  0xae   :  { %950 = vperm.xlu0 %5071, %v5395_v20   ;;  %4373 = vmatprep.mubr.msk.f32.mxu0 %vm171_vm6, %v5280_v59  ;;  %vm182_vm6 = vcmp.eq.s32.totalorder %v5757_v56, %v5896_v23  ;;  %v1879_v23 = vld [vmem:[%s8681_s1 + $0x318] sm:$0xff] }
  0xaf   :  { %656 = vperm.xlu1 %5073, %v5376_v15   ;;  %4895 = vmatpush1.bf16.msra.mxu0 %v4894_v2 }
  0xb0   :  { %4896 = vmatprep.subr.bf16.mxu0 %v5277_v5 }
  0xb1   :  { %4374 = vmatmul.mubr.msk.f32.gmra.mrb[22].mxu0 %vm170_vm7, %v5280_v59  ;;  %v5972_v45 = vpop.permute.xlu1 %128  ;;  %v5974_v15 = vpop.permute.xlu0 %125 }
  0xb2   :  { %953 = vperm.xlu0 %5071, %v5425_v28   ;;  %4375 = vmatprep.mubr.msk.f32.mxu0 %vm173_vm8, %v5280_v59  ;;  %vm185_vm8 = vcmp.eq.s32.totalorder %v5762_v57, %v5917_v9 }
  0xb3   :  { %659 = vperm.xlu1 %5073, %v5400_v21   ;;  %4898 = vmatpush1.bf16.msra.mxu0 %v4897_v43 }
  0xb4   :  { %4899 = vmatprep.subr.bf16.mxu0 %v5277_v5 }
  0xb5   :  { %4376 = vmatmul.mubr.msk.f32.gmra.mrb[24].mxu0 %vm172_vm9, %v5280_v59  ;;  %v5991_v52 = vpop.permute.xlu1 %134  ;;  %v5993_v21 = vpop.permute.xlu0 %131 }
  0xb6   :  { %956 = vperm.xlu0 %5071, %v5414_v25   ;;  %4377 = vmatprep.mubr.msk.f32.mxu0 %vm175_vm10, %v5280_v59  ;;  %vm184_vm10 = vcmp.eq.s32.totalorder %v5757_v56, %v5917_v9 }
  0xb7   :  { %662 = vperm.xlu1 %5073, %v5395_v20   ;;  %4901 = vmatpush1.bf16.msra.mxu0 %v4900_v48 }
  0xb8   :  { %4902 = vmatprep.subr.bf16.mxu0 %v5277_v5 }
  0xb9   :  { %4378 = vmatmul.mubr.msk.f32.gmra.mrb[26].mxu0 %vm174_vm11, %v5280_v59  ;;  %v6010_v0 = vpop.permute.xlu1 %140  ;;  %v6012_v20 = vpop.permute.xlu0 %137 }
  0xba   :  { %959 = vperm.xlu0 %5071, %v5456_v39   ;;  %4379 = vmatprep.mubr.msk.f32.mxu0 %vm177_vm12, %v5280_v59 }
  0xbb   :  { %665 = vperm.xlu1 %5073, %v5425_v28   ;;  %4904 = vmatpush1.bf16.msra.mxu0 %v4903_v53  ;;  %v1874_v28 = vld [vmem:[%s8681_s1 + $0x2f0] sm:$0xff] }
  0xbc   :  { %4905 = vmatprep.subr.bf16.mxu0 %v5277_v5  ;;  %v4909_v14 = vpack.c.bf16 %v1875_v12, %v1874_v28  ;;  %v1891_v28 = vld [vmem:[%s8681_s1 + $0x378] sm:$0xff] }
  0xbd   :  { %4380 = vmatmul.mubr.msk.f32.gmra.mrb[28].mxu0 %vm176_vm13, %v5280_v59  ;;  %v6023_v10 = vpop.permute.xlu1 %146  ;;  %v6025_v11 = vpop.permute.xlu0 %143  ;;  %vm187_vm13 = vcmp.eq.s32.totalorder %v5762_v57, %v5915_v31 }
  0xbe   :  { %962 = vperm.xlu0 %5071, %v5451_v38   ;;  %4381 = vmatprep.mubr.msk.f32.mxu0 %vm179_vm14, %v5280_v59  ;;  %vm186_vm14 = vcmp.eq.s32.totalorder %v5757_v56, %v5915_v31 }
  0xbf   :  { %668 = vperm.xlu1 %5073, %v5414_v25   ;;  %4907 = vmatpush1.bf16.msra.mxu0 %v4906_v61  ;;  %v1877_v25 = vld [vmem:[%s8681_s1 + $0x308] sm:$0xff]  ;;  %v5239_v61 = vld [vmem:[%s8680_s2 + $0xd8] sm:$0xff] }
  0xc0   :  { %4908 = vmatprep.subr.bf16.mxu0 %v5277_v5  ;;  %v4912_v22 = vpack.c.bf16 %v1877_v25, %v1876_v7  ;;  %v1892_v7 = vld [vmem:[%s8681_s1 + $0x380] sm:$0xff]  ;;  %v5241_v25 = vld [vmem:[%s8680_s2 + $0xf8] sm:$0xff] }
  0xc1   :  { %4382 = vmatmul.mubr.msk.f32.gmra.mrb[30].mxu0 %vm178_vm15, %v5280_v59 }
  0xc2   :  { %965 = vperm.xlu0 %5071, %v5482_v47   ;;  %4383 = vmatprep.mubr.msk.f32.mxu0 %vm181_vm0, %v5280_v59  ;;  %v345_v13 = vpop.permute.xlu1 %344  ;;  %v342_v19 = vpop.permute.xlu0 %341  ;;  %vm189_vm0 = vcmp.eq.s32.totalorder %v5762_v57, %v5936_v8 }
  0xc3   :  { %671 = vperm.xlu1 %5073, %v5456_v39   ;;  %vm437_vm1 = vcmp.eq.s32.totalorder %v5762_v57, %v342_v19  ;;  %vm436_vm2 = vcmp.eq.s32.totalorder %v5757_v56, %v342_v19  ;;  %4910 = vmatpush1.bf16.msra.mxu0 %v4909_v14  ;;  %vm439_vm5 = vcmp.eq.s32.totalorder %v5762_v57, %v345_v13  ;;  %v5240_v14 = vld [vmem:[%s8680_s2 + $0xe0] sm:$0xff]  ;;  %v5242_v19 = vld [vmem:[%s8680_s2 + $0xe8] sm:$0xff] }
  0xc4   :  { %4415 = vmatprep.mubr.msk.f32.mxu1 %vm437_vm1, %v5280_v59  ;;  %vm438_vm7 = vcmp.eq.s32.totalorder %v5757_v56, %v345_v13  ;;  %4959 = vmatprep.subr.bf16.mxu0 %v5277_v5 }
  0xc5   :  { %4384 = vmatmul.mubr.msk.f32.gmra.mrb[32].mxu0 %vm180_vm3, %v5280_v59  ;;  %4416 = vmatmul.mubr.msk.f32.vlgmr.msra.gmra.mrb[0].mxu1 %vm436_vm2, %v5280_v59  ;;  %vm188_vm2 = vcmp.eq.s32.totalorder %v5757_v56, %v5936_v8  ;;  %v1882_v8 = vld [vmem:[%s8681_s1 + $0x330] sm:$0xff] }
  0xc6   :  { %968 = vperm.xlu0 %5071, %v5477_v46   ;;  %4385 = vmatprep.mubr.msk.f32.mxu0 %vm183_vm4, %v5280_v59  ;;  %v348_v39 = vpop.permute.xlu1 %347  ;;  %v351_v24 = vpop.permute.xlu0 %350  ;;  %vm191_vm4 = vcmp.eq.s32.totalorder %v5762_v57, %v5934_v35 }
  0xc7   :  { %674 = vperm.xlu1 %5073, %v5451_v38   ;;  %4417 = vmatprep.mubr.msk.f32.mxu1 %vm439_vm5, %v5280_v59  ;;  %v1878_v38 = vld [vmem:[%s8681_s1 + $0x310] sm:$0xff]  ;;  %vm441_vm9 = vcmp.eq.s32.totalorder %v5762_v57, %v348_v39  ;;  %vm440_vm11 = vcmp.eq.s32.totalorder %v5757_v56, %v348_v39  ;;  %vm443_vm12 = vcmp.eq.s32.totalorder %v5762_v57, %v351_v24 }
  0xc8   :  { %4913 = vmatpush1.bf16.msra.mxu1 %v4912_v22  ;;  %v4915_v27 = vpack.c.bf16 %v1879_v23, %v1878_v38  ;;  %vm442_vm15 = vcmp.eq.s32.totalorder %v5757_v56, %v351_v24  ;;  %v5282_v24 = vmov 5  }
  0xc9   :  { %4386 = vmatmul.mubr.msk.f32.gmra.mrb[34].mxu0 %vm182_vm6, %v5280_v59  ;;  %4418 = vmatmul.mubr.msk.f32.gmra.mrb[2].mxu1 %vm438_vm7, %v5280_v59  ;;  %vm190_vm6 = vcmp.eq.s32.totalorder %v5757_v56, %v5934_v35 }
  0xca   :  { %971 = vperm.xlu0 %5071, %v5508_v55   ;;  %4387 = vmatprep.mubr.msk.f32.mxu0 %vm185_vm8, %v5280_v59  ;;  %v354_v6 = vpop.permute.xlu1 %353  ;;  %v357_v26 = vpop.permute.xlu0 %356  ;;  %vm193_vm8 = vcmp.eq.s32.totalorder %v5762_v57, %v5955_v16 }
  0xcb   :  { %677 = vperm.xlu1 %5073, %v5482_v47   ;;  %4419 = vmatprep.mubr.msk.f32.mxu1 %vm441_vm9, %v5280_v59  ;;  %vm445_vm1 = vcmp.eq.s32.totalorder %v5762_v57, %v354_v6  ;;  %vm444_vm3 = vcmp.eq.s32.totalorder %v5757_v56, %v354_v6  ;;  %vm447_vm5 = vcmp.eq.s32.totalorder %v5762_v57, %v357_v26  ;;  %v5244_v6 = vld [vmem:[%s8680_s2] sm:$0xff] }
  0xcc   :  { %4914 = vmatprep.subr.bf16.mxu1 %v5277_v5  ;;  %vm446_vm7 = vcmp.eq.s32.totalorder %v5757_v56, %v357_v26  ;;  %v1894_v26 = vld [vmem:[%s8681_s1 + $0x390] sm:$0xff] }
  0xcd   :  { %4388 = vmatmul.mubr.msk.f32.gmra.mrb[36].mxu0 %vm184_vm10, %v5280_v59  ;;  %4420 = vmatmul.mubr.msk.f32.gmra.mrb[4].mxu1 %vm440_vm11, %v5280_v59  ;;  %vm192_vm10 = vcmp.eq.s32.totalorder %v5757_v56, %v5955_v16  ;;  %v1885_v16 = vld [vmem:[%s8681_s1 + $0x348] sm:$0xff] }
  0xce   :  { %974 = vperm.xlu0 %5071, %v5503_v54   ;;  %4389 = vmatprep.mubr.msk.f32.mxu0 %vm187_vm13, %v5280_v59  ;;  %v360_v47 = vpop.permute.xlu1 %359  ;;  %v6097_v9 = vpop.permute.xlu0 %362 }
  0xcf   :  { %680 = vperm.xlu1 %5073, %v5477_v46   ;;  %4421 = vmatprep.mubr.msk.f32.mxu1 %vm443_vm12, %v5280_v59  ;;  %v1881_v46 = vld [vmem:[%s8681_s1 + $0x328] sm:$0xff]  ;;  %vm449_vm9 = vcmp.eq.s32.totalorder %v5762_v57, %v360_v47  ;;  %vm448_vm11 = vcmp.eq.s32.totalorder %v5757_v56, %v360_v47  ;;  %vm195_vm12 = vcmp.eq.s32.totalorder %v5762_v57, %v5953_v42 }
  0xd0   :  { %4916 = vmatpush1.bf16.msra.mxu1 %v4915_v27  ;;  %v4918_v34 = vpack.c.bf16 %v1881_v46, %v1880_v32  ;;  %vm451_vm13 = vcmp.eq.s32.totalorder %v5762_v57, %v6097_v9  ;;  %v1895_v27 = vld [vmem:[%s8681_s1 + $0x398] sm:$0xff] }
  0xd1   :  { %4390 = vmatmul.mubr.msk.f32.gmra.mrb[38].mxu0 %vm186_vm14, %v5280_v59  ;;  %4422 = vmatmul.mubr.msk.f32.gmra.mrb[6].mxu1 %vm442_vm15, %v5280_v59  ;;  %vm194_vm14 = vcmp.eq.s32.totalorder %v5757_v56, %v5953_v42  ;;  %vm450_vm15 = vcmp.eq.s32.totalorder %v5757_v56, %v6097_v9  ;;  %v5283_v9 = vmov 4   ;;  %v4939_v32 = vpack.c.bf16 %v1895_v27, %v1894_v26  ;;  %v1913_v27 = vld [vmem:[%s8681_s1 + $0x428] sm:$0xff] }
  0xd2   :  { %977 = vperm.xlu0 %5071, %v5534_v63   ;;  %4391 = vmatprep.mubr.msk.f32.mxu0 %vm189_vm0, %v5280_v59  ;;  %v6116_v31 = vpop.permute.xlu1 %365  ;;  %v6118_v33 = vpop.permute.xlu0 %368  ;;  %vm197_vm0 = vcmp.eq.s32.totalorder %v5762_v57, %v5974_v15 }
  0xd3   :  { %683 = vperm.xlu1 %5073, %v5508_v55   ;;  %4423 = vmatprep.mubr.msk.f32.mxu1 %vm445_vm1, %v5280_v59  ;;  %vm453_vm1 = vcmp.eq.s32.totalorder %v5762_v57, %v6116_v31 }
  0xd4   :  { %4917 = vmatprep.subr.bf16.mxu1 %v5277_v5 }
  0xd5   :  { %4392 = vmatmul.mubr.msk.f32.gmra.mrb[40].mxu0 %vm188_vm2, %v5280_v59  ;;  %4424 = vmatmul.mubr.msk.f32.gmra.mrb[8].mxu1 %vm444_vm3, %v5280_v59  ;;  %vm196_vm2 = vcmp.eq.s32.totalorder %v5757_v56, %v5974_v15  ;;  %vm452_vm3 = vcmp.eq.s32.totalorder %v5757_v56, %v6116_v31  ;;  %v6418_v31 = vld [vmem:[%s8680_s2 + $0x10] sm:$0xff] }
  0xd6   :  { %980 = vperm.xlu0 %5071, %v5529_v62   ;;  %4393 = vmatprep.mubr.msk.f32.mxu0 %vm191_vm4, %v5280_v59  ;;  %v6133_v55 = vpop.permute.xlu1 %371  ;;  %v6135_v2 = vpop.permute.xlu0 %374  ;;  %vm199_vm4 = vcmp.eq.s32.totalorder %v5762_v57, %v5972_v45 }
  0xd7   :  { %686 = vperm.xlu1 %5073, %v5503_v54   ;;  %4425 = vmatprep.mubr.msk.f32.mxu1 %vm447_vm5, %v5280_v59  ;;  %v1883_v54 = vld [vmem:[%s8681_s1 + $0x338] sm:$0xff]  ;;  %vm455_vm5 = vcmp.eq.s32.totalorder %v5762_v57, %v6118_v33 }
  0xd8   :  { %4919 = vmatpush1.bf16.msra.mxu1 %v4918_v34  ;;  %v4921_v41 = vpack.c.bf16 %v1883_v54, %v1882_v8  ;;  %v1897_v34 = vld [vmem:[%s8681_s1 + $0x3a8] sm:$0xff]  ;;  %v1908_v8 = vld [vmem:[%s8681_s1 + $0x400] sm:$0xff] }
  0xd9   :  { %4394 = vmatmul.mubr.msk.f32.gmra.mrb[42].mxu0 %vm190_vm6, %v5280_v59  ;;  %4426 = vmatmul.mubr.msk.f32.gmra.mrb[10].mxu1 %vm446_vm7, %v5280_v59  ;;  %vm198_vm6 = vcmp.eq.s32.totalorder %v5757_v56, %v5972_v45  ;;  %vm454_vm7 = vcmp.eq.s32.totalorder %v5757_v56, %v6118_v33  ;;  %v1896_v33 = vld [vmem:[%s8681_s1 + $0x3a0] sm:$0xff]  ;;  %v1909_v54 = vld [vmem:[%s8681_s1 + $0x408] sm:$0xff] }
  0xda   :  { %983 = vperm.xlu0 %5071, %v5560_v18   ;;  %4395 = vmatprep.mubr.msk.f32.mxu0 %vm193_vm8, %v5280_v59  ;;  %v6155_v35 = vpop.permute.xlu1 %377  ;;  %v6157_v36 = vpop.permute.xlu0 %380  ;;  %vm201_vm8 = vcmp.eq.s32.totalorder %v5762_v57, %v5993_v21 }
  0xdb   :  { %689 = vperm.xlu1 %5073, %v5534_v63   ;;  %4427 = vmatprep.mubr.msk.f32.mxu1 %vm449_vm9, %v5280_v59  ;;  %vm457_vm9 = vcmp.eq.s32.totalorder %v5762_v57, %v6133_v55 }
  0xdc   :  { %4920 = vmatprep.subr.bf16.mxu1 %v5277_v5 }
  0xdd   :  { %4396 = vmatmul.mubr.msk.f32.gmra.mrb[44].mxu0 %vm192_vm10, %v5280_v59  ;;  %4428 = vmatmul.mubr.msk.f32.gmra.mrb[12].mxu1 %vm448_vm11, %v5280_v59  ;;  %vm200_vm10 = vcmp.eq.s32.totalorder %v5757_v56, %v5993_v21  ;;  %vm456_vm11 = vcmp.eq.s32.totalorder %v5757_v56, %v6133_v55  ;;  %v1889_v21 = vld [vmem:[%s8681_s1 + $0x368] sm:$0xff] }
  0xde   :  { %986 = vperm.xlu0 %5071, %v5555_v17   ;;  %4397 = vmatprep.mubr.msk.f32.mxu0 %vm195_vm12, %v5280_v59  ;;  %v6172_v63 = vpop.permute.xlu1 %383  ;;  %v6174_v43 = vpop.permute.xlu0 %386  ;;  %vm203_vm12 = vcmp.eq.s32.totalorder %v5762_v57, %v5991_v52 }
  0xdf   :  { %692 = vperm.xlu1 %5073, %v5529_v62   ;;  %4429 = vmatprep.mubr.msk.f32.mxu1 %vm451_vm13, %v5280_v59  ;;  %v1884_v62 = vld [vmem:[%s8681_s1 + $0x340] sm:$0xff]  ;;  %vm459_vm13 = vcmp.eq.s32.totalorder %v5762_v57, %v6135_v2 }
  0xe0   :  { %4922 = vmatpush1.bf16.msra.mxu1 %v4921_v41  ;;  %v4924_v44 = vpack.c.bf16 %v1885_v16, %v1884_v62  ;;  %v1899_v41 = vld [vmem:[%s8681_s1 + $0x3b8] sm:$0xff]  ;;  %v5247_v62 = vld [vmem:[%s8680_s2 + $0x8] sm:$0xff] }
  0xe1   :  { %4398 = vmatmul.mubr.msk.f32.gmra.mrb[46].mxu0 %vm194_vm14, %v5280_v59  ;;  %4430 = vmatmul.mubr.msk.f32.gmra.mrb[14].mxu1 %vm450_vm15, %v5280_v59  ;;  %vm202_vm14 = vcmp.eq.s32.totalorder %v5757_v56, %v5991_v52  ;;  %vm458_vm15 = vcmp.eq.s32.totalorder %v5757_v56, %v6135_v2  ;;  %v4942_v2 = vpack.c.bf16 %v1897_v34, %v1896_v33  ;;  %v1914_v33 = vld [vmem:[%s8681_s1 + $0x430] sm:$0xff]  ;;  %v1915_v34 = vld [vmem:[%s8681_s1 + $0x438] sm:$0xff] }
  0xe2   :  { %989 = vperm.xlu0 %5071, %v5586_v30   ;;  %4399 = vmatprep.mubr.msk.f32.mxu0 %vm197_vm0, %v5280_v59  ;;  %v6196_v42 = vpop.permute.xlu1 %389  ;;  %v6198_v3 = vpop.permute.xlu0 %392  ;;  %vm205_vm0 = vcmp.eq.s32.totalorder %v5762_v57, %v6012_v20 }
  0xe3   :  { %695 = vperm.xlu1 %5073, %v5560_v18   ;;  %4431 = vmatprep.mubr.msk.f32.mxu1 %vm453_vm1, %v5280_v59  ;;  %vm461_vm1 = vcmp.eq.s32.totalorder %v5762_v57, %v6155_v35 }
  0xe4   :  { %4923 = vmatprep.subr.bf16.mxu1 %v5277_v5 }
  0xe5   :  { %4400 = vmatmul.mubr.msk.f32.gmra.mrb[48].mxu0 %vm196_vm2, %v5280_v59  ;;  %4432 = vmatmul.mubr.msk.f32.gmra.mrb[16].mxu1 %vm452_vm3, %v5280_v59  ;;  %vm204_vm2 = vcmp.eq.s32.totalorder %v5757_v56, %v6012_v20  ;;  %vm460_vm3 = vcmp.eq.s32.totalorder %v5757_v56, %v6155_v35 }
  0xe6   :  { %992 = vperm.xlu0 %5071, %v5581_v29   ;;  %4401 = vmatprep.mubr.msk.f32.mxu0 %vm199_vm4, %v5280_v59  ;;  %v6215_v18 = vpop.permute.xlu1 %395  ;;  %v6217_v15 = vpop.permute.xlu0 %398  ;;  %v1887_v29 = vld [vmem:[%s8681_s1 + $0x358] sm:$0xff]  ;;  %vm207_vm4 = vcmp.eq.s32.totalorder %v5762_v57, %v6010_v0 }
  0xe7   :  { %698 = vperm.xlu1 %5073, %v5555_v17   ;;  %4433 = vmatprep.mubr.msk.f32.mxu1 %vm455_vm5, %v5280_v59  ;;  %v1886_v17 = vld [vmem:[%s8681_s1 + $0x350] sm:$0xff]  ;;  %vm463_vm5 = vcmp.eq.s32.totalorder %v5762_v57, %v6157_v36 }
  0xe8   :  { %4925 = vmatpush1.bf16.msra.mxu1 %v4924_v44 }
  0xe9   :  { %4402 = vmatmul.mubr.msk.f32.gmra.mrb[50].mxu0 %vm198_vm6, %v5280_v59  ;;  %4434 = vmatmul.mubr.msk.f32.gmra.mrb[18].mxu1 %vm454_vm7, %v5280_v59  ;;  %vm206_vm6 = vcmp.eq.s32.totalorder %v5757_v56, %v6010_v0  ;;  %vm462_vm7 = vcmp.eq.s32.totalorder %v5757_v56, %v6157_v36  ;;  %v1898_v36 = vld [vmem:[%s8681_s1 + $0x3b0] sm:$0xff] }
  0xea   :  { %995 = vperm.xlu0 %5071, %v5612_v40   ;;  %4403 = vmatprep.mubr.msk.f32.mxu0 %vm201_vm8, %v5280_v59  ;;  %v6239_v45 = vpop.permute.xlu1 %401  ;;  %v6241_v48 = vpop.permute.xlu0 %404  ;;  %v4927_v40 = vpack.c.bf16 %v1887_v29, %v1886_v17  ;;  %vm209_vm8 = vcmp.eq.s32.totalorder %v5762_v57, %v6025_v11  ;;  %v1911_v17 = vld [vmem:[%s8681_s1 + $0x418] sm:$0xff] }
  0xeb   :  { %701 = vperm.xlu1 %5073, %v5586_v30   ;;  %4435 = vmatprep.mubr.msk.f32.mxu1 %vm457_vm9, %v5280_v59  ;;  %vm465_vm9 = vcmp.eq.s32.totalorder %v5762_v57, %v6172_v63 }
  0xec   :  { %4926 = vmatprep.subr.bf16.mxu1 %v5277_v5 }
  0xed   :  { %4404 = vmatmul.mubr.msk.f32.gmra.mrb[52].mxu0 %vm200_vm10, %v5280_v59  ;;  %4436 = vmatmul.mubr.msk.f32.gmra.mrb[20].mxu1 %vm456_vm11, %v5280_v59  ;;  %vm208_vm10 = vcmp.eq.s32.totalorder %v5757_v56, %v6025_v11  ;;  %vm464_vm11 = vcmp.eq.s32.totalorder %v5757_v56, %v6172_v63  ;;  %v1893_v11 = vld [vmem:[%s8681_s1 + $0x388] sm:$0xff] }
  0xee   :  { %998 = vperm.xlu0 %5071, %v5607_v37   ;;  %4405 = vmatprep.mubr.msk.f32.mxu0 %vm203_vm12, %v5280_v59  ;;  %v6258_v30 = vpop.permute.xlu1 %407  ;;  %v6260_v4 = vpop.permute.xlu0 %410  ;;  %v1888_v37 = vld [vmem:[%s8681_s1 + $0x360] sm:$0xff]  ;;  %vm211_vm12 = vcmp.eq.s32.totalorder %v5762_v57, %v6023_v10  ;;  %v4936_v39 = vpack.c.bf16 %v1893_v11, %v1892_v7  ;;  %v6460_v63 = vld [vmem:[%s8680_s2 + $0x28] sm:$0xff] }
  0xef   :  { %704 = vperm.xlu1 %5073, %v5237_v51   ;;  %4437 = vmatprep.mubr.msk.f32.mxu1 %vm459_vm13, %v5280_v59  ;;  %vm467_vm13 = vcmp.eq.s32.totalorder %v5762_v57, %v6174_v43 }
  0xf0   :  { %4928 = vmatpush1.bf16.msra.mxu1 %v4927_v40 }
  0xf1   :  { %4406 = vmatmul.mubr.msk.f32.gmra.mrb[54].mxu0 %vm202_vm14, %v5280_v59  ;;  %4438 = vmatmul.mubr.msk.f32.gmra.mrb[22].mxu1 %vm458_vm15, %v5280_v59  ;;  %vm210_vm14 = vcmp.eq.s32.totalorder %v5757_v56, %v6023_v10  ;;  %vm466_vm15 = vcmp.eq.s32.totalorder %v5757_v56, %v6174_v43  ;;  %v5243_v10 = vld [vmem:[%s8680_s2 + $0xf0] sm:$0xff]  ;;  %v4960_v43 = vpack.c.bf16 %v1909_v54, %v1908_v8  ;;  %v6657_v54 = vld [vmem:[%s8680_s2 + $0x60] sm:$0xff] }
  0xf2   :  { %1001 = vperm.xlu0 %5071, %v5638_v50   ;;  %4407 = vmatprep.mubr.msk.f32.mxu0 %vm205_vm0, %v5280_v59  ;;  %v6284_v52 = vpop.permute.xlu1 %413  ;;  %v6286_v53 = vpop.permute.xlu0 %416  ;;  %v4930_v50 = vpack.c.bf16 %v1889_v21, %v1888_v37  ;;  %vm469_vm0 = vcmp.eq.s32.totalorder %v5762_v57, %v6196_v42  ;;  %v1902_v21 = vld [vmem:[%s8681_s1 + $0x3d0] sm:$0xff]  ;;  %v4969_v8 = vpack.c.bf16 %v1915_v34, %v1914_v33 }
  0xf3   :  { %707 = vperm.xlu1 %5073, %v5238_v58   ;;  %4439 = vmatprep.mubr.msk.f32.mxu1 %vm461_vm1, %v5280_v59  ;;  %v1903_v58 = vld [vmem:[%s8681_s1 + $0x3d8] sm:$0xff]  ;;  %v1946_v34 = vld [vmem:[%s8681_s1 + $0x530] sm:$0xff] }
  0xf4   :  { %4929 = vmatprep.subr.bf16.mxu1 %v5277_v5 }
  0xf5   :  { %4408 = vmatmul.mubr.msk.f32.gmra.mrb[56].mxu0 %vm204_vm2, %v5280_v59  ;;  %4440 = vmatmul.mubr.msk.f32.gmra.mrb[24].mxu1 %vm460_vm3, %v5280_v59  ;;  %vm468_vm2 = vcmp.eq.s32.totalorder %v5757_v56, %v6196_v42  ;;  %v4945_v42 = vpack.c.bf16 %v1899_v41, %v1898_v36  ;;  %v1917_v41 = vld [vmem:[%s8681_s1 + $0x448] sm:$0xff] }
  0xf6   :  { %1004 = vperm.xlu0 %5071, %v5633_v49   ;;  %4409 = vmatprep.mubr.msk.f32.mxu0 %vm207_vm4, %v5280_v59  ;;  %v6305_v1 = vpop.permute.xlu1 %419  ;;  %v6307_v20 = vpop.permute.xlu0 %422  ;;  %v1890_v49 = vld [vmem:[%s8681_s1 + $0x370] sm:$0xff]  ;;  %vm471_vm4 = vcmp.eq.s32.totalorder %v5762_v57, %v6198_v3 }
  0xf7   :  { %710 = vperm.xlu1 %5073, %v5239_v61   ;;  %4441 = vmatprep.mubr.msk.f32.mxu1 %vm463_vm5, %v5280_v59 }
  0xf8   :  { %4931 = vmatpush1.bf16.msra.mxu1 %v4930_v50  ;;  %v4951_v50 = vpack.c.bf16 %v1903_v58, %v1902_v21  ;;  %v6726_v21 = vld [vmem:[%s8680_s2 + $0x88] sm:$0xff] }
  0xf9   :  { %4410 = vmatmul.mubr.msk.f32.gmra.mrb[58].mxu0 %vm206_vm6, %v5280_v59  ;;  %4442 = vmatmul.mubr.msk.f32.gmra.mrb[26].mxu1 %vm462_vm7, %v5280_v59  ;;  %vm470_vm7 = vcmp.eq.s32.totalorder %v5757_v56, %v6198_v3  ;;  %v1900_v3 = vld [vmem:[%s8681_s1 + $0x3c0] sm:$0xff] }
  0xfa   :  { %1007 = vperm.xlu0 %5071, %v5664_v60   ;;  %4411 = vmatprep.mubr.msk.f32.mxu0 %vm209_vm8, %v5280_v59  ;;  %v6331_v0 = vpop.permute.xlu1 %425  ;;  %v6333_v12 = vpop.permute.xlu0 %428  ;;  %v4933_v60 = vpack.c.bf16 %v1891_v28, %v1890_v49  ;;  %vm473_vm8 = vcmp.eq.s32.totalorder %v5762_v57, %v6215_v18  ;;  %v1904_v28 = vld [vmem:[%s8681_s1 + $0x3e0] sm:$0xff] }
  0xfb   :  { %713 = vperm.xlu1 %5073, %v5240_v14   ;;  %4443 = vmatprep.mubr.msk.f32.mxu1 %vm465_vm9, %v5280_v59  ;;  %v1905_v14 = vld [vmem:[%s8681_s1 + $0x3e8] sm:$0xff] }
  0xfc   :  { %4932 = vmatprep.subr.bf16.mxu1 %v5277_v5  ;;  %v4954_v11 = vpack.c.bf16 %v1905_v14, %v1904_v28 }
  0xfd   :  { %4412 = vmatmul.mubr.msk.f32.gmra.mrb[60].mxu0 %vm208_vm10, %v5280_v59  ;;  %4444 = vmatmul.mubr.msk.f32.gmra.mrb[28].mxu1 %vm464_vm11, %v5280_v59  ;;  %vm472_vm10 = vcmp.eq.s32.totalorder %v5757_v56, %v6215_v18  ;;  %vm475_vm11 = vcmp.eq.s32.totalorder %v5762_v57, %v6217_v15  ;;  %v1901_v18 = vld [vmem:[%s8681_s1 + $0x3c8] sm:$0xff] }
  0xfe   :  { %1010 = vperm.xlu0 %5071, %v5241_v25   ;;  %4413 = vmatprep.mubr.msk.f32.mxu0 %vm211_vm12, %v5280_v59  ;;  %v6360_v13 = vpop.permute.xlu1 %431  ;;  %v6368_v22 = vpop.permute.xlu0 %434  ;;  %v4948_v40 = vpack.c.bf16 %v1901_v18, %v1900_v3  ;;  %v1919_v18 = vld [vmem:[%s8681_s1 + $0x458] sm:$0xff] }
  0xff   :  { %716 = vperm.xlu1 %5073, %v5242_v19   ;;  %4445 = vmatprep.mubr.msk.f32.mxu1 %vm467_vm13, %v5280_v59  ;;  %v1906_v19 = vld [vmem:[%s8681_s1 + $0x3f0] sm:$0xff] }
 0x100   :  { %4934 = vmatpush1.bf16.msra.mxu1 %v4933_v60 }
 0x101   :  { %4414 = vmatmul.mubr.msk.f32.gmra.mrb[62].mxu0 %vm210_vm14, %v5280_v59  ;;  %4446 = vmatmul.mubr.msk.f32.gmra.mrb[30].mxu1 %vm466_vm15, %v5280_v59  ;;  %vm474_vm14 = vcmp.eq.s32.totalorder %v5757_v56, %v6217_v15  ;;  %vm477_vm15 = vcmp.eq.s32.totalorder %v5762_v57, %v6239_v45  ;;  %v1910_v15 = vld [vmem:[%s8681_s1 + $0x410] sm:$0xff] }
 0x102   :  { %4447 = vmatprep.mubr.msk.f32.mxu1 %vm469_vm0, %v5280_v59  ;;  %5075 = vset.pattern.permute.xlu0 %v5282_v24  ;;  %v4963_v51 = vpack.c.bf16 %v1911_v17, %v1910_v15 }
 0x103   :  { %719 = vperm.xlu1 %5073, %v5243_v10   ;;  %v630_v38 = vpop.permute.xlu1 %629  ;;  %4935 = vmatprep.subr.bf16.mxu1 %v5277_v5  ;;  %v5251_v10 = vld [vmem:[%s8680_s2 + $0x20] sm:$0xff] }
 0x104   :  { %vm724_vm1 = vcmp.eq.s32.totalorder %v5757_v56, %v630_v38  ;;  %v633_v23 = vpop.permute.xlu0 %632  ;;  %vm725_vm3 = vcmp.eq.s32.totalorder %v5762_v57, %v630_v38  ;;  %1493 = vperm.xlu0 %5075, %v5244_v6   ;;  %4937 = vmatpush1.bf16.msra.mxu1 %v4936_v39  ;;  %v1907_v39 = vld [vmem:[%s8681_s1 + $0x3f8] sm:$0xff] }
 0x105   :  { %4448 = vmatmul.mubr.msk.f32.gmra.mrb[32].mxu1 %vm468_vm2, %v5280_v59  ;;  %4479 = vmatprep.mubr.msk.f32.mxu0 %vm725_vm3, %v5280_v59  ;;  %vm727_vm5 = vcmp.eq.s32.totalorder %v5762_v57, %v633_v23  ;;  %vm726_vm6 = vcmp.eq.s32.totalorder %v5757_v56, %v633_v23  ;;  %vm479_vm2 = vcmp.eq.s32.totalorder %v5762_v57, %v6241_v48 }
 0x106   :  { %4449 = vmatprep.mubr.msk.f32.mxu1 %vm471_vm4, %v5280_v59  ;;  %4480 = vmatmul.mubr.msk.f32.vlgmr.msra.gmra.mrb[64].mxu0 %vm724_vm1, %v5280_v59  ;;  %vm476_vm1 = vcmp.eq.s32.totalorder %v5757_v56, %v6239_v45  ;;  %v5248_v45 = vld [vmem:[%s8680_s2 + $0x18] sm:$0xff]  ;;  %vm478_vm3 = vcmp.eq.s32.totalorder %v5757_v56, %v6241_v48  ;;  %vm481_vm4 = vcmp.eq.s32.totalorder %v5762_v57, %v6258_v30  ;;  %v6529_v48 = vld [vmem:[%s8680_s2 + $0x30] sm:$0xff] }
 0x107   :  { %722 = vperm.xlu1 %5073, %v5241_v25   ;;  %v636_v47 = vpop.permute.xlu1 %635  ;;  %4481 = vmatprep.mubr.msk.f32.mxu0 %vm727_vm5, %v5280_v59 }
 0x108   :  { %5077 = vset.pattern.permute.xlu0 %v5283_v9  ;;  %4938 = vmatprep.subr.bf16.mxu1 %v5277_v5  ;;  %vm729_vm9 = vcmp.eq.s32.totalorder %v5762_v57, %v636_v47  ;;  %vm728_vm12 = vcmp.eq.s32.totalorder %v5757_v56, %v636_v47 }
 0x109   :  { %v6410_v46 = vpop.permute.xlu0 %917  ;;  %4450 = vmatmul.mubr.msk.f32.gmra.mrb[34].mxu1 %vm470_vm7, %v5280_v59  ;;  %1211 = vperm.xlu0 %5077, %v6418_v31   ;;  %vm480_vm7 = vcmp.eq.s32.totalorder %v5757_v56, %v6258_v30  ;;  %v6557_v30 = vld [vmem:[%s8680_s2 + $0x40] sm:$0xff] }
 0x10a   :  { %4451 = vmatprep.mubr.msk.f32.mxu1 %vm473_vm8, %v5280_v59  ;;  %4482 = vmatmul.mubr.msk.f32.gmra.mrb[66].mxu0 %vm726_vm6, %v5280_v59  ;;  %vm483_vm8 = vcmp.eq.s32.totalorder %v5762_v57, %v6260_v4 }
 0x10b   :  { %5074 = vset.pattern.permute.xlu1 %v5283_v9  ;;  %v639_v55 = vpop.permute.xlu1 %638  ;;  %4483 = vmatprep.mubr.msk.f32.mxu0 %vm729_vm9, %v5280_v59 }
 0x10c   :  { %1205 = vperm.xlu1 %5074, %v5244_v6   ;;  %4940 = vmatpush1.bf16.msra.mxu1 %v4939_v32  ;;  %vm731_vm13 = vcmp.eq.s32.totalorder %v5762_v57, %v639_v55  ;;  %vm730_vm0 = vcmp.eq.s32.totalorder %v5757_v56, %v639_v55  ;;  %v6591_v6 = vld [vmem:[%s8680_s2 + $0x58] sm:$0xff] }
 0x10d   :  { %v6440_v35 = vpop.permute.xlu0 %926  ;;  %4452 = vmatmul.mubr.msk.f32.gmra.mrb[36].mxu1 %vm472_vm10, %v5280_v59  ;;  %4941 = vmatprep.subr.bf16.mxu1 %v5277_v5 }
 0x10e   :  { %4453 = vmatprep.mubr.msk.f32.mxu1 %vm475_vm11, %v5280_v59  ;;  %4484 = vmatmul.mubr.msk.f32.gmra.mrb[68].mxu0 %vm728_vm12, %v5280_v59  ;;  %vm482_vm11 = vcmp.eq.s32.totalorder %v5757_v56, %v6260_v4  ;;  %vm485_vm12 = vcmp.eq.s32.totalorder %v5762_v57, %v6284_v52  ;;  %v4957_v4 = vpack.c.bf16 %v1907_v39, %v1906_v19  ;;  %v5259_v19 = vld [vmem:[%s8680_s2 + $0x50] sm:$0xff] }
 0x10f   :  { %4485 = vmatprep.mubr.msk.f32.mxu0 %vm731_vm13, %v5280_v59  ;;  %1220 = vperm.xlu0 %5077, %v6460_v63  }
 0x110   :  { %1208 = vperm.xlu1 %5074, %v5247_v62   ;;  %v6466_v16 = vpop.permute.xlu1 %920  ;;  %4943 = vmatpush1.bf16.msra.mxu1 %v4942_v2 }
 0x111   :  { %v6473_v44 = vpop.permute.xlu0 %929  ;;  %4454 = vmatmul.mubr.msk.f32.gmra.mrb[38].mxu1 %vm474_vm14, %v5280_v59  ;;  %4944 = vmatprep.subr.bf16.mxu1 %v5277_v5 }
 0x112   :  { %4455 = vmatprep.mubr.msk.f32.mxu1 %vm477_vm15, %v5280_v59  ;;  %4486 = vmatmul.mubr.msk.f32.gmra.mrb[70].mxu0 %vm730_vm0, %v5280_v59  ;;  %vm484_vm15 = vcmp.eq.s32.totalorder %v5757_v56, %v6284_v52  ;;  %vm487_vm0 = vcmp.eq.s32.totalorder %v5762_v57, %v6286_v53  ;;  %v1912_v52 = vld [vmem:[%s8681_s1 + $0x420] sm:$0xff] }
 0x113   :  { %5080 = vset.pattern.permute.xlu0 %v5282_v24  ;;  %4961 = vmatpush1.bf16.msra.mxu0 %v4960_v43 }
 0x114   :  { %5076 = vset.pattern.permute.xlu1 %v5282_v24  ;;  %v6493_v29 = vpop.permute.xlu1 %923  ;;  %4946 = vmatpush1.bf16.msra.mxu1 %v4945_v42  ;;  %v6689_v42 = vld [vmem:[%s8680_s2 + $0x70] sm:$0xff] }
 0x115   :  { %1496 = vperm.xlu1 %5076, %v5247_v62   ;;  %v6497_v37 = vpop.permute.xlu0 %932  ;;  %4456 = vmatmul.mubr.msk.f32.gmra.mrb[40].mxu1 %vm476_vm1, %v5280_v59 }
 0x116   :  { %4457 = vmatprep.mubr.msk.f32.mxu1 %vm479_vm2, %v5280_v59  ;;  %4947 = vmatprep.subr.bf16.mxu1 %v5277_v5 }
 0x117   :  { %1502 = vperm.xlu0 %5080, %v5248_v45   ;;  %4962 = vmatprep.subr.bf16.mxu0 %v5277_v5 }
 0x118   :  { %4949 = vmatpush1.bf16.msra.mxu1 %v4948_v40  ;;  %4964 = vmatpush1.bf16.msra.mxu0 %v4963_v51  ;;  %v1921_v51 = vld [vmem:[%s8681_s1 + $0x468] sm:$0xff] }
 0x119   :  { %1499 = vperm.xlu1 %5076, %v6418_v31   ;;  %v6517_v61 = vpop.permute.xlu0 %935  ;;  %4458 = vmatmul.mubr.msk.f32.gmra.mrb[42].mxu1 %vm478_vm3, %v5280_v59  ;;  %vm486_vm3 = vcmp.eq.s32.totalorder %v5757_v56, %v6286_v53  ;;  %v4966_v31 = vpack.c.bf16 %v1913_v27, %v1912_v52  ;;  %v6626_v53 = vld [vmem:[%s8680_s2 + $0x48] sm:$0xff]  ;;  %v6816_v27 = vld [vmem:[%s8680_s2 + $0x90] sm:$0xff] }
 0x11a   :  { %v642_v49 = vpop.permute.xlu1 %641  ;;  %4459 = vmatprep.mubr.msk.f32.mxu1 %vm481_vm4, %v5280_v59  ;;  %4950 = vmatprep.subr.bf16.mxu1 %v5277_v5  ;;  %vm489_vm4 = vcmp.eq.s32.totalorder %v5762_v57, %v6305_v1  ;;  %v1945_v52 = vld [vmem:[%s8681_s1 + $0x528] sm:$0xff] }
 0x11b   :  { %vm733_vm5 = vcmp.eq.s32.totalorder %v5762_v57, %v642_v49  ;;  %vm732_vm6 = vcmp.eq.s32.totalorder %v5757_v56, %v642_v49  ;;  %1511 = vperm.xlu0 %5080, %v6529_v48   ;;  %4965 = vmatprep.subr.bf16.mxu0 %v5277_v5 }
 0x11c   :  { %4487 = vmatprep.mubr.msk.f32.mxu0 %vm733_vm5, %v5280_v59  ;;  %4952 = vmatpush1.bf16.msra.mxu1 %v4951_v50  ;;  %v1940_v50 = vld [vmem:[%s8681_s1 + $0x500] sm:$0xff] }
 0x11d   :  { %5078 = vset.pattern.permute.xlu1 %v5283_v9  ;;  %v6541_v60 = vpop.permute.xlu0 %938  ;;  %4488 = vmatmul.mubr.msk.f32.gmra.mrb[72].mxu0 %vm732_vm6, %v5280_v59 }
 0x11e   :  { %1214 = vperm.xlu1 %5078, %v5248_v45   ;;  %v645_v7 = vpop.permute.xlu1 %644  ;;  %4460 = vmatmul.mubr.msk.f32.gmra.mrb[44].mxu1 %vm480_vm7, %v5280_v59  ;;  %vm488_vm7 = vcmp.eq.s32.totalorder %v5757_v56, %v6305_v1 }
 0x11f   :  { %4461 = vmatprep.mubr.msk.f32.mxu1 %vm483_vm8, %v5280_v59  ;;  %vm735_vm9 = vcmp.eq.s32.totalorder %v5762_v57, %v645_v7  ;;  %vm734_vm10 = vcmp.eq.s32.totalorder %v5757_v56, %v645_v7  ;;  %5083 = vset.pattern.permute.xlu0 %v5283_v9  ;;  %vm491_vm8 = vcmp.eq.s32.totalorder %v5762_v57, %v6307_v20  ;;  %v1942_v7 = vld [vmem:[%s8681_s1 + $0x510] sm:$0xff] }
 0x120   :  { %4489 = vmatprep.mubr.msk.f32.mxu0 %vm735_vm9, %v5280_v59  ;;  %1229 = vperm.xlu0 %5083, %v6557_v30  }
 0x121   :  { %v6560_v25 = vpop.permute.xlu0 %941  ;;  %4490 = vmatmul.mubr.msk.f32.gmra.mrb[74].mxu0 %vm734_vm10, %v5280_v59  ;;  %4953 = vmatprep.subr.bf16.mxu1 %v5277_v5 }
 0x122   :  { %1217 = vperm.xlu1 %5078, %v5251_v10   ;;  %v648_v38 = vpop.permute.xlu1 %647  ;;  %4462 = vmatmul.mubr.msk.f32.gmra.mrb[46].mxu1 %vm482_vm11, %v5280_v59  ;;  %vm490_vm11 = vcmp.eq.s32.totalorder %v5757_v56, %v6307_v20  ;;  %v1916_v20 = vld [vmem:[%s8681_s1 + $0x440] sm:$0xff] }
 0x123   :  { %4463 = vmatprep.mubr.msk.f32.mxu1 %vm485_vm12, %v5280_v59  ;;  %vm737_vm13 = vcmp.eq.s32.totalorder %v5762_v57, %v648_v38  ;;  %vm736_vm14 = vcmp.eq.s32.totalorder %v5757_v56, %v648_v38  ;;  %4955 = vmatpush1.bf16.msra.mxu1 %v4954_v11  ;;  %vm493_vm12 = vcmp.eq.s32.totalorder %v5762_v57, %v6331_v0  ;;  %v1943_v11 = vld [vmem:[%s8681_s1 + $0x518] sm:$0xff] }
 0x124   :  { %4491 = vmatprep.mubr.msk.f32.mxu0 %vm737_vm13, %v5280_v59  ;;  %4956 = vmatprep.subr.bf16.mxu1 %v5277_v5  ;;  %v4972_v3 = vpack.c.bf16 %v1917_v41, %v1916_v20  ;;  %v1923_v38 = vld [vmem:[%s8681_s1 + $0x478] sm:$0xff]  ;;  %v1948_v41 = vld [vmem:[%s8681_s1 + $0x540] sm:$0xff] }
 0x125   :  { %v6583_v23 = vpop.permute.xlu0 %944  ;;  %4492 = vmatmul.mubr.msk.f32.gmra.mrb[76].mxu0 %vm736_vm14, %v5280_v59  ;;  %1238 = vperm.xlu0 %5083, %v6591_v6  }
 0x126   :  { %5079 = vset.pattern.permute.xlu1 %v5282_v24  ;;  %v651_v26 = vpop.permute.xlu1 %650  ;;  %4464 = vmatmul.mubr.msk.f32.gmra.mrb[48].mxu1 %vm484_vm15, %v5280_v59  ;;  %vm492_vm15 = vcmp.eq.s32.totalorder %v5757_v56, %v6331_v0  ;;  %v1918_v0 = vld [vmem:[%s8681_s1 + $0x450] sm:$0xff] }
 0x127   :  { %1505 = vperm.xlu1 %5079, %v5251_v10   ;;  %4465 = vmatprep.mubr.msk.f32.mxu1 %vm487_vm0, %v5280_v59  ;;  %vm739_vm1 = vcmp.eq.s32.totalorder %v5762_v57, %v651_v26  ;;  %vm738_vm2 = vcmp.eq.s32.totalorder %v5757_v56, %v651_v26  ;;  %vm495_vm0 = vcmp.eq.s32.totalorder %v5762_v57, %v6333_v12  ;;  %v1922_v10 = vld [vmem:[%s8681_s1 + $0x470] sm:$0xff]  ;;  %v1944_v26 = vld [vmem:[%s8681_s1 + $0x520] sm:$0xff] }
 0x128   :  { %4493 = vmatprep.mubr.msk.f32.mxu0 %vm739_vm1, %v5280_v59  ;;  %4958 = vmatpush1.bf16.msra.mxu1 %v4957_v4  ;;  %v4975_v40 = vpack.c.bf16 %v1919_v18, %v1918_v0 }
 0x129   :  { %v6608_v47 = vpop.permute.xlu0 %947  ;;  %4494 = vmatmul.mubr.msk.f32.gmra.mrb[78].mxu0 %vm738_vm2, %v5280_v59  ;;  %5007 = vmatprep.subr.bf16.mxu1 %v5277_v5 }
 0x12a   :  { %v654_v32 = vpop.permute.xlu1 %653  ;;  %4466 = vmatmul.mubr.msk.f32.gmra.mrb[50].mxu1 %vm486_vm3, %v5280_v59  ;;  %5086 = vset.pattern.permute.xlu0 %v5282_v24  ;;  %vm494_vm3 = vcmp.eq.s32.totalorder %v5757_v56, %v6333_v12  ;;  %v1920_v12 = vld [vmem:[%s8681_s1 + $0x460] sm:$0xff] }
 0x12b   :  { %1508 = vperm.xlu1 %5079, %v6460_v63   ;;  %4467 = vmatprep.mubr.msk.f32.mxu1 %vm489_vm4, %v5280_v59  ;;  %vm741_vm5 = vcmp.eq.s32.totalorder %v5762_v57, %v654_v32  ;;  %vm740_vm6 = vcmp.eq.s32.totalorder %v5757_v56, %v654_v32  ;;  %v5255_v63 = vld [vmem:[%s8680_s2 + $0x38] sm:$0xff]  ;;  %vm497_vm4 = vcmp.eq.s32.totalorder %v5762_v57, %v6360_v13 }
 0x12c   :  { %4495 = vmatprep.mubr.msk.f32.mxu0 %vm741_vm5, %v5280_v59  ;;  %1520 = vperm.xlu0 %5086, %v6626_v53   ;;  %v4978_v49 = vpack.c.bf16 %v1921_v51, %v1920_v12 }
 0x12d   :  { %v6635_v55 = vpop.permute.xlu0 %950  ;;  %4496 = vmatmul.mubr.msk.f32.gmra.mrb[80].mxu0 %vm740_vm6, %v5280_v59 }
 0x12e   :  { %v657_v2 = vpop.permute.xlu1 %656  ;;  %4468 = vmatmul.mubr.msk.f32.gmra.mrb[52].mxu1 %vm488_vm7, %v5280_v59  ;;  %4967 = vmatpush1.bf16.msra.mxu0 %v4966_v31  ;;  %vm496_vm7 = vcmp.eq.s32.totalorder %v5757_v56, %v6360_v13  ;;  %v1941_v13 = vld [vmem:[%s8681_s1 + $0x508] sm:$0xff]  ;;  %v5014_v31 = vpack.c.bf16 %v1945_v52, %v1944_v26 }
 0x12f   :  { %5081 = vset.pattern.permute.xlu1 %v5283_v9  ;;  %4469 = vmatprep.mubr.msk.f32.mxu1 %vm491_vm8, %v5280_v59  ;;  %vm743_vm9 = vcmp.eq.s32.totalorder %v5762_v57, %v657_v2  ;;  %vm742_vm10 = vcmp.eq.s32.totalorder %v5757_v56, %v657_v2  ;;  %vm499_vm8 = vcmp.eq.s32.totalorder %v5762_v57, %v6368_v22  ;;  %v1947_v2 = vld [vmem:[%s8681_s1 + $0x538] sm:$0xff] }
 0x130   :  { %1223 = vperm.xlu1 %5081, %v6529_v48   ;;  %4497 = vmatprep.mubr.msk.f32.mxu0 %vm743_vm9, %v5280_v59  ;;  %v5008_v14 = vpack.c.bf16 %v1941_v13, %v1940_v50  ;;  %v1929_v50 = vld [vmem:[%s8681_s1 + $0x4a8] sm:$0xff] }
 0x131   :  { %v6649_v1 = vpop.permute.xlu0 %953  ;;  %4498 = vmatmul.mubr.msk.f32.gmra.mrb[82].mxu0 %vm742_vm10, %v5280_v59  ;;  %1529 = vperm.xlu0 %5086, %v6657_v54  }
 0x132   :  { %v660_v36 = vpop.permute.xlu1 %659  ;;  %4470 = vmatmul.mubr.msk.f32.gmra.mrb[54].mxu1 %vm490_vm11, %v5280_v59  ;;  %4968 = vmatprep.subr.bf16.mxu0 %v5277_v5  ;;  %vm1013_vm11 = vcmp.eq.s32.totalorder %v5762_v57, %v6410_v46 }
 0x133   :  { %4471 = vmatprep.mubr.msk.f32.mxu1 %vm493_vm12, %v5280_v59  ;;  %vm745_vm13 = vcmp.eq.s32.totalorder %v5762_v57, %v660_v36  ;;  %vm744_vm14 = vcmp.eq.s32.totalorder %v5757_v56, %v660_v36  ;;  %4970 = vmatpush1.bf16.msra.mxu0 %v4969_v8  ;;  %vm498_vm12 = vcmp.eq.s32.totalorder %v5757_v56, %v6368_v22  ;;  %v1925_v8 = vld [vmem:[%s8681_s1 + $0x488] sm:$0xff] }
 0x134   :  { %1226 = vperm.xlu1 %5081, %v5255_v63   ;;  %4499 = vmatprep.mubr.msk.f32.mxu0 %vm745_vm13, %v5280_v59  ;;  %vm1012_vm13 = vcmp.eq.s32.totalorder %v5757_v56, %v6410_v46  ;;  %v5011_v46 = vpack.c.bf16 %v1943_v11, %v1942_v7 }
 0x135   :  { %v6677_v43 = vpop.permute.xlu0 %956  ;;  %4500 = vmatmul.mubr.msk.f32.gmra.mrb[84].mxu0 %vm744_vm14, %v5280_v59  ;;  %5089 = vset.pattern.permute.xlu0 %v5283_v9 }
 0x136   :  { %v663_v62 = vpop.permute.xlu1 %662  ;;  %4472 = vmatmul.mubr.msk.f32.gmra.mrb[56].mxu1 %vm492_vm15, %v5280_v59  ;;  %1247 = vperm.xlu0 %5089, %v6689_v42  }
 0x137   :  { %4473 = vmatprep.mubr.msk.f32.mxu1 %vm495_vm0, %v5280_v59  ;;  %vm747_vm1 = vcmp.eq.s32.totalorder %v5762_v57, %v663_v62  ;;  %vm746_vm2 = vcmp.eq.s32.totalorder %v5757_v56, %v663_v62  ;;  %4971 = vmatprep.subr.bf16.mxu0 %v5277_v5  ;;  %vm1015_vm0 = vcmp.eq.s32.totalorder %v5762_v57, %v6466_v16  ;;  %v1926_v62 = vld [vmem:[%s8681_s1 + $0x490] sm:$0xff] }
 0x138   :  { %5082 = vset.pattern.permute.xlu1 %v5282_v24  ;;  %4501 = vmatprep.mubr.msk.f32.mxu0 %vm747_vm1, %v5280_v59 }
 0x139   :  { %1514 = vperm.xlu1 %5082, %v5255_v63   ;;  %v6704_v15 = vpop.permute.xlu0 %959  ;;  %4502 = vmatmul.mubr.msk.f32.gmra.mrb[86].mxu0 %vm746_vm2, %v5280_v59  ;;  %v1949_v63 = vld [vmem:[%s8681_s1 + $0x548] sm:$0xff] }
 0x13a   :  { %v666_v17 = vpop.permute.xlu1 %665  ;;  %4474 = vmatmul.mubr.msk.f32.gmra.mrb[58].mxu1 %vm494_vm3, %v5280_v59  ;;  %4973 = vmatpush1.bf16.msra.mxu0 %v4972_v3  ;;  %vm1014_vm3 = vcmp.eq.s32.totalorder %v5757_v56, %v6466_v16  ;;  %v4981_v16 = vpack.c.bf16 %v1923_v38, %v1922_v10  ;;  %v1927_v3 = vld [vmem:[%s8681_s1 + $0x498] sm:$0xff]  ;;  %v5020_v18 = vpack.c.bf16 %v1949_v63, %v1948_v41  ;;  %v5262_v41 = vld [vmem:[%s8680_s2 + $0x80] sm:$0xff] }
 0x13b   :  { %4475 = vmatprep.mubr.msk.f32.mxu1 %vm497_vm4, %v5280_v59  ;;  %vm749_vm5 = vcmp.eq.s32.totalorder %v5762_v57, %v666_v17  ;;  %vm748_vm6 = vcmp.eq.s32.totalorder %v5757_v56, %v666_v17  ;;  %4974 = vmatprep.subr.bf16.mxu0 %v5277_v5  ;;  %vm1017_vm4 = vcmp.eq.s32.totalorder %v5762_v57, %v6493_v29 }
 0x13c   :  { %4503 = vmatprep.mubr.msk.f32.mxu0 %vm749_vm5, %v5280_v59  ;;  %1256 = vperm.xlu0 %5089, %v6726_v21   ;;  %v4987_v17 = vpack.c.bf16 %v1927_v3, %v1926_v62 }
 0x13d   :  { %1517 = vperm.xlu1 %5082, %v6557_v30   ;;  %v6730_v58 = vpop.permute.xlu0 %962  ;;  %4504 = vmatmul.mubr.msk.f32.gmra.mrb[88].mxu0 %vm748_vm6, %v5280_v59  ;;  %v6779_v30 = vld [vmem:[%s8680_s2 + $0x78] sm:$0xff] }
 0x13e   :  { %v669_v45 = vpop.permute.xlu1 %668  ;;  %4476 = vmatmul.mubr.msk.f32.gmra.mrb[60].mxu1 %vm496_vm7, %v5280_v59  ;;  %4976 = vmatpush1.bf16.msra.mxu0 %v4975_v40  ;;  %vm1019_vm7 = vcmp.eq.s32.totalorder %v5762_v57, %v6440_v35 }
 0x13f   :  { %4477 = vmatprep.mubr.msk.f32.mxu1 %vm499_vm8, %v5280_v59  ;;  %vm751_vm9 = vcmp.eq.s32.totalorder %v5762_v57, %v669_v45  ;;  %vm750_vm10 = vcmp.eq.s32.totalorder %v5757_v56, %v669_v45  ;;  %4977 = vmatprep.subr.bf16.mxu0 %v5277_v5  ;;  %vm1016_vm8 = vcmp.eq.s32.totalorder %v5757_v56, %v6493_v29  ;;  %v1924_v29 = vld [vmem:[%s8681_s1 + $0x480] sm:$0xff] }
 0x140   :  { %4505 = vmatprep.mubr.msk.f32.mxu0 %vm751_vm9, %v5280_v59  ;;  %5092 = vset.pattern.permute.xlu0 %v5282_v24  ;;  %v1928_v45 = vld [vmem:[%s8681_s1 + $0x4a0] sm:$0xff] }
 0x141   :  { %5084 = vset.pattern.permute.xlu1 %v5283_v9  ;;  %v6753_v48 = vpop.permute.xlu0 %965  ;;  %4506 = vmatmul.mubr.msk.f32.gmra.mrb[90].mxu0 %vm750_vm10, %v5280_v59 }
 0x142   :  { %1232 = vperm.xlu1 %5084, %v6626_v53   ;;  %v672_v28 = vpop.permute.xlu1 %671  ;;  %4478 = vmatmul.mubr.msk.f32.gmra.mrb[62].mxu1 %vm498_vm12, %v5280_v59  ;;  %vm1021_vm12 = vcmp.eq.s32.totalorder %v5762_v57, %v6473_v44 }
 0x143   :  { %vm753_vm14 = vcmp.eq.s32.totalorder %v5762_v57, %v672_v28  ;;  %vm752_vm15 = vcmp.eq.s32.totalorder %v5757_v56, %v672_v28  ;;  %4543 = vmatprep.mubr.msk.f32.mxu1 %vm1013_vm11, %v5280_v59  ;;  %4979 = vmatpush1.bf16.msra.mxu0 %v4978_v49  ;;  %vm1018_vm11 = vcmp.eq.s32.totalorder %v5757_v56, %v6440_v35  ;;  %v1950_v28 = vld [vmem:[%s8681_s1 + $0x550] sm:$0xff] }
 0x144   :  { %4507 = vmatprep.mubr.msk.f32.mxu0 %vm753_vm14, %v5280_v59  ;;  %4980 = vmatprep.subr.bf16.mxu0 %v5277_v5  ;;  %v4984_v35 = vpack.c.bf16 %v1925_v8, %v1924_v29  ;;  %v4990_v49 = vpack.c.bf16 %v1929_v50, %v1928_v45  ;;  %v1936_v45 = vld [vmem:[%s8681_s1 + $0x4e0] sm:$0xff]  ;;  %v1937_v50 = vld [vmem:[%s8681_s1 + $0x4e8] sm:$0xff] }
 0x145   :  { %v6767_v22 = vpop.permute.xlu0 %968  ;;  %4508 = vmatmul.mubr.msk.f32.gmra.mrb[92].mxu0 %vm752_vm15, %v5280_v59  ;;  %1538 = vperm.xlu0 %5092, %v6779_v30   ;;  %vm1020_vm15 = vcmp.eq.s32.totalorder %v5757_v56, %v6473_v44  ;;  %v5261_v44 = vld [vmem:[%s8680_s2 + $0x68] sm:$0xff] }
 0x146   :  { %1235 = vperm.xlu1 %5084, %v5259_v19   ;;  %v675_v39 = vpop.permute.xlu1 %674  ;;  %4544 = vmatmul.mubr.msk.f32.vlgmr.msra.gmra.mrb[64].mxu1 %vm1012_vm13, %v5280_v59 }
 0x147   :  { %4545 = vmatprep.mubr.msk.f32.mxu1 %vm1015_vm0, %v5280_v59  ;;  %vm755_vm1 = vcmp.eq.s32.totalorder %v5762_v57, %v675_v39  ;;  %vm754_vm2 = vcmp.eq.s32.totalorder %v5757_v56, %v675_v39  ;;  %5009 = vmatpush1.bf16.msra.mxu1 %v5008_v14  ;;  %vm1023_vm0 = vcmp.eq.s32.totalorder %v5762_v57, %v6497_v37  ;;  %v1951_v14 = vld [vmem:[%s8681_s1 + $0x558] sm:$0xff] }
 0x148   :  { %4509 = vmatprep.mubr.msk.f32.mxu0 %vm755_vm1, %v5280_v59  ;;  %5010 = vmatprep.subr.bf16.mxu1 %v5277_v5  ;;  %v1931_v39 = vld [vmem:[%s8681_s1 + $0x4b8] sm:$0xff] }
 0x149   :  { %v6802_v4 = vpop.permute.xlu0 %971  ;;  %4510 = vmatmul.mubr.msk.f32.gmra.mrb[94].mxu0 %vm754_vm2, %v5280_v59  ;;  %1547 = vperm.xlu0 %5092, %v6816_v27  }
 0x14a   :  { %5085 = vset.pattern.permute.xlu1 %v5282_v24  ;;  %v678_v32 = vpop.permute.xlu1 %677  ;;  %4546 = vmatmul.mubr.msk.f32.gmra.mrb[66].mxu1 %vm1014_vm3, %v5280_v59  ;;  %vm1022_vm3 = vcmp.eq.s32.totalorder %v5757_v56, %v6497_v37 }
 0x14b   :  { %1523 = vperm.xlu1 %5085, %v5259_v19   ;;  %4547 = vmatprep.mubr.msk.f32.mxu1 %vm1017_vm4, %v5280_v59  ;;  %vm757_vm5 = vcmp.eq.s32.totalorder %v5762_v57, %v678_v32  ;;  %vm756_vm6 = vcmp.eq.s32.totalorder %v5757_v56, %v678_v32  ;;  %vm1025_vm4 = vcmp.eq.s32.totalorder %v5762_v57, %v6517_v61  ;;  %v1930_v19 = vld [vmem:[%s8681_s1 + $0x4b0] sm:$0xff] }
 0x14c   :  { %4511 = vmatprep.mubr.msk.f32.mxu0 %vm757_vm5, %v5280_v59  ;;  %5012 = vmatpush1.bf16.msra.mxu1 %v5011_v46  ;;  %v4993_v46 = vpack.c.bf16 %v1931_v39, %v1930_v19  ;;  %v5002_v19 = vpack.c.bf16 %v1937_v50, %v1936_v45  ;;  %v1939_v39 = vld [vmem:[%s8681_s1 + $0x4f8] sm:$0xff]  ;;  %v1962_v50 = vld [vmem:[%s8681_s1 + $0x5b0] sm:$0xff] }
 0x14d   :  { %v6829_v53 = vpop.permute.xlu0 %974  ;;  %4512 = vmatmul.mubr.msk.f32.gmra.mrb[96].mxu0 %vm756_vm6, %v5280_v59  ;;  %5013 = vmatprep.subr.bf16.mxu1 %v5277_v5 }
 0x14e   :  { %v681_v33 = vpop.permute.xlu1 %680  ;;  %4548 = vmatmul.mubr.msk.f32.gmra.mrb[68].mxu1 %vm1016_vm8, %v5280_v59  ;;  %4982 = vmatpush1.bf16.msra.mxu0 %v4981_v16  ;;  %vm1027_vm8 = vcmp.eq.s32.totalorder %v5762_v57, %v6541_v60  ;;  %v1933_v16 = vld [vmem:[%s8681_s1 + $0x4c8] sm:$0xff] }
 0x14f   :  { %1526 = vperm.xlu1 %5085, %v6591_v6   ;;  %4549 = vmatprep.mubr.msk.f32.mxu1 %vm1019_vm7, %v5280_v59  ;;  %vm759_vm9 = vcmp.eq.s32.totalorder %v5762_v57, %v681_v33  ;;  %vm758_vm10 = vcmp.eq.s32.totalorder %v5757_v56, %v681_v33  ;;  %v5017_v6 = vpack.c.bf16 %v1947_v2, %v1946_v34  ;;  %v1952_v34 = vld [vmem:[%s8681_s1 + $0x560] sm:$0xff]  ;;  %v1953_v2 = vld [vmem:[%s8681_s1 + $0x568] sm:$0xff] }
 0x150   :  { %4513 = vmatprep.mubr.msk.f32.mxu0 %vm759_vm9, %v5280_v59  ;;  %5015 = vmatpush1.bf16.msra.mxu1 %v5014_v31  ;;  %vm1024_vm7 = vcmp.eq.s32.totalorder %v5757_v56, %v6517_v61  ;;  %v5023_v61 = vpack.c.bf16 %v1951_v14, %v1950_v28 }
 0x151   :  { %v6853_v36 = vpop.permute.xlu0 %977  ;;  %4514 = vmatmul.mubr.msk.f32.gmra.mrb[98].mxu0 %vm758_vm10, %v5280_v59  ;;  %5016 = vmatprep.subr.bf16.mxu1 %v5277_v5 }
 0x152   :  { %v684_v20 = vpop.permute.xlu1 %683  ;;  %4550 = vmatmul.mubr.msk.f32.gmra.mrb[70].mxu1 %vm1018_vm11, %v5280_v59  ;;  %4983 = vmatprep.subr.bf16.mxu0 %v5277_v5  ;;  %vm1026_vm11 = vcmp.eq.s32.totalorder %v5757_v56, %v6541_v60  ;;  %v1932_v60 = vld [vmem:[%s8681_s1 + $0x4c0] sm:$0xff] }
 0x153   :  { %5087 = vset.pattern.permute.xlu1 %v5283_v9  ;;  %4551 = vmatprep.mubr.msk.f32.mxu1 %vm1021_vm12, %v5280_v59  ;;  %vm761_vm13 = vcmp.eq.s32.totalorder %v5762_v57, %v684_v20  ;;  %vm760_vm14 = vcmp.eq.s32.totalorder %v5757_v56, %v684_v20  ;;  %vm1029_vm12 = vcmp.eq.s32.totalorder %v5762_v57, %v6560_v25 }
 0x154   :  { %1241 = vperm.xlu1 %5087, %v6657_v54   ;;  %4515 = vmatprep.mubr.msk.f32.mxu0 %vm761_vm13, %v5280_v59 }
 0x155   :  { %v6881_v0 = vpop.permute.xlu0 %980  ;;  %4516 = vmatmul.mubr.msk.f32.gmra.mrb[100].mxu0 %vm760_vm14, %v5280_v59  ;;  %5018 = vmatpush1.bf16.msra.mxu1 %v5017_v6 }
 0x156   :  { %v687_v54 = vpop.permute.xlu1 %686  ;;  %4552 = vmatmul.mubr.msk.f32.gmra.mrb[72].mxu1 %vm1020_vm15, %v5280_v59  ;;  %5019 = vmatprep.subr.bf16.mxu1 %v5277_v5  ;;  %vm1028_vm15 = vcmp.eq.s32.totalorder %v5757_v56, %v6560_v25  ;;  %v4996_v25 = vpack.c.bf16 %v1933_v16, %v1932_v60 }
 0x157   :  { %4553 = vmatprep.mubr.msk.f32.mxu1 %vm1023_vm0, %v5280_v59  ;;  %vm763_vm1 = vcmp.eq.s32.totalorder %v5762_v57, %v687_v54  ;;  %vm762_vm2 = vcmp.eq.s32.totalorder %v5757_v56, %v687_v54  ;;  %4985 = vmatpush1.bf16.msra.mxu0 %v4984_v35  ;;  %vm1031_vm0 = vcmp.eq.s32.totalorder %v5762_v57, %v6583_v23  ;;  %v1935_v35 = vld [vmem:[%s8681_s1 + $0x4d8] sm:$0xff]  ;;  %v7027_v54 = vld [vmem:[%s8680_s2 + $0xa0] sm:$0xff] }
 0x158   :  { %1244 = vperm.xlu1 %5087, %v5261_v44   ;;  %4517 = vmatprep.mubr.msk.f32.mxu0 %vm763_vm1, %v5280_v59  ;;  %v6897_v40 = vpop.f32.mrb[0].mxu0 }
 0x159   :  { %v6899_v12 = vpop.permute.xlu0 %983  ;;  %4518 = vmatmul.mubr.msk.f32.gmra.mrb[102].mxu0 %vm762_vm2, %v5280_v59  ;;  %v2040_v51 = vpop.f32.mrb[1].mxu0  ;;  %5021 = vmatpush1.bf16.msra.mxu1 %v5020_v18 }
 0x15a   :  { %v690_v13 = vpop.permute.xlu1 %689  ;;  %4554 = vmatmul.mubr.msk.f32.gmra.mrb[74].mxu1 %vm1022_vm3, %v5280_v59  ;;  %4986 = vmatprep.subr.bf16.mxu0 %v5277_v5  ;;  %vm1030_vm3 = vcmp.eq.s32.totalorder %v5757_v56, %v6583_v23  ;;  %v1934_v23 = vld [vmem:[%s8681_s1 + $0x4d0] sm:$0xff]  ;;  %v1955_v51 = vld [vmem:[%s8681_s1 + $0x578] sm:$0xff] }
 0x15b   :  { %4555 = vmatprep.mubr.msk.f32.mxu1 %vm1025_vm4, %v5280_v59  ;;  %vm765_vm5 = vcmp.eq.s32.totalorder %v5762_v57, %v690_v13  ;;  %vm764_vm6 = vcmp.eq.s32.totalorder %v5757_v56, %v690_v13  ;;  %4988 = vmatpush1.bf16.msra.mxu0 %v4987_v17  ;;  %vm1033_vm4 = vcmp.eq.s32.totalorder %v5762_v57, %v6608_v47 }
 0x15c   :  { %5088 = vset.pattern.permute.xlu1 %v5282_v24  ;;  %4519 = vmatprep.mubr.msk.f32.mxu0 %vm765_vm5, %v5280_v59  ;;  %v6919_v37 = vpop.f32.mrb[2].mxu0 }
 0x15d   :  { %1532 = vperm.xlu1 %5088, %v5261_v44   ;;  %v6927_v7 = vpop.permute.xlu0 %986  ;;  %4520 = vmatmul.mubr.msk.f32.gmra.mrb[104].mxu0 %vm764_vm6, %v5280_v59  ;;  %v2045_v11 = vpop.f32.mrb[3].mxu0  ;;  %v4999_v44 = vpack.c.bf16 %v1935_v35, %v1934_v23  ;;  %v1960_v23 = vld [vmem:[%s8681_s1 + $0x5a0] sm:$0xff]  ;;  %v1961_v35 = vld [vmem:[%s8681_s1 + $0x5a8] sm:$0xff] }
 0x15e   :  { %v693_v10 = vpop.permute.xlu1 %692  ;;  %4556 = vmatmul.mubr.msk.f32.gmra.mrb[76].mxu1 %vm1024_vm7, %v5280_v59  ;;  %4989 = vmatprep.subr.bf16.mxu0 %v5277_v5  ;;  %vm1032_vm7 = vcmp.eq.s32.totalorder %v5757_v56, %v6608_v47  ;;  %v1954_v47 = vld [vmem:[%s8681_s1 + $0x570] sm:$0xff] }
 0x15f   :  { %4557 = vmatprep.mubr.msk.f32.mxu1 %vm1027_vm8, %v5280_v59  ;;  %vm767_vm9 = vcmp.eq.s32.totalorder %v5762_v57, %v693_v10  ;;  %vm766_vm10 = vcmp.eq.s32.totalorder %v5757_v56, %v693_v10  ;;  %5022 = vmatprep.subr.bf16.mxu1 %v5277_v5  ;;  %vm1035_vm8 = vcmp.eq.s32.totalorder %v5762_v57, %v6635_v55 }
 0x160   :  { %v6946_v38 = vpop.f32.mrb[4].mxu0  ;;  %4521 = vmatprep.mubr.msk.f32.mxu0 %vm767_vm9, %v5280_v59  ;;  %4991 = vmatpush1.bf16.msra.mxu0 %v4990_v49  ;;  %v5029_v28 = vpack.c.bf16 %v1955_v51, %v1954_v47 }
 0x161   :  { %1535 = vperm.xlu1 %5088, %v6689_v42   ;;  %v6950_v26 = vpop.permute.xlu0 %989  ;;  %v2050_v52 = vpop.f32.mrb[5].mxu0  ;;  %4522 = vmatmul.mubr.msk.f32.gmra.mrb[106].mxu0 %vm766_vm10, %v5280_v59 }
 0x162   :  { %v696_v32 = vpop.permute.xlu1 %695  ;;  %4558 = vmatmul.mubr.msk.f32.gmra.mrb[78].mxu1 %vm1026_vm11, %v5280_v59  ;;  %4992 = vmatprep.subr.bf16.mxu0 %v5277_v5  ;;  %vm1034_vm11 = vcmp.eq.s32.totalorder %v5757_v56, %v6635_v55  ;;  %v1938_v55 = vld [vmem:[%s8681_s1 + $0x4f0] sm:$0xff]  ;;  %v1956_v52 = vld [vmem:[%s8681_s1 + $0x580] sm:$0xff] }
 0x163   :  { %4559 = vmatprep.mubr.msk.f32.mxu1 %vm1029_vm12, %v5280_v59  ;;  %vm769_vm13 = vcmp.eq.s32.totalorder %v5762_v57, %v696_v32  ;;  %vm768_vm14 = vcmp.eq.s32.totalorder %v5757_v56, %v696_v32  ;;  %5024 = vmatpush1.bf16.msra.mxu1 %v5023_v61  ;;  %vm1037_vm12 = vcmp.eq.s32.totalorder %v5762_v57, %v6649_v1  ;;  %v1957_v32 = vld [vmem:[%s8681_s1 + $0x588] sm:$0xff] }
 0x164   :  { %v6962_v42 = vpop.f32.mrb[6].mxu0  ;;  %4523 = vmatprep.mubr.msk.f32.mxu0 %vm769_vm13, %v5280_v59  ;;  %4994 = vmatpush1.bf16.msra.mxu0 %v4993_v46  ;;  %v5005_v46 = vpack.c.bf16 %v1939_v39, %v1938_v55 }
 0x165   :  { %5090 = vset.pattern.permute.xlu1 %v5283_v9  ;;  %v6972_v31 = vpop.permute.xlu0 %992  ;;  %v2055_v33 = vpop.f32.mrb[7].mxu0  ;;  %4524 = vmatmul.mubr.msk.f32.gmra.mrb[108].mxu0 %vm768_vm14, %v5280_v59 }
 0x166   :  { %1250 = vperm.xlu1 %5090, %v6779_v30   ;;  %v699_v29 = vpop.permute.xlu1 %698  ;;  %4560 = vmatmul.mubr.msk.f32.gmra.mrb[80].mxu1 %vm1028_vm15, %v5280_v59  ;;  %v5026_v30 = vpack.c.bf16 %v1953_v2, %v1952_v34  ;;  %vm1036_vm15 = vcmp.eq.s32.totalorder %v5757_v56, %v6649_v1  ;;  %v5032_v33 = vpack.c.bf16 %v1957_v32, %v1956_v52  ;;  %v1958_v2 = vld [vmem:[%s8681_s1 + $0x590] sm:$0xff]  ;;  %v1965_v32 = vld [vmem:[%s8681_s1 + $0x5c8] sm:$0xff] }
 0x167   :  { %4561 = vmatprep.mubr.msk.f32.mxu1 %vm1031_vm0, %v5280_v59  ;;  %vm771_vm1 = vcmp.eq.s32.totalorder %v5762_v57, %v699_v29  ;;  %vm770_vm2 = vcmp.eq.s32.totalorder %v5757_v56, %v699_v29  ;;  %4995 = vmatprep.subr.bf16.mxu0 %v5277_v5  ;;  %vm1039_vm0 = vcmp.eq.s32.totalorder %v5762_v57, %v6677_v43  ;;  %v1959_v29 = vld [vmem:[%s8681_s1 + $0x598] sm:$0xff] }
 0x168   :  { %v6991_v8 = vpop.f32.mrb[8].mxu0  ;;  %4525 = vmatprep.mubr.msk.f32.mxu0 %vm771_vm1, %v5280_v59  ;;  %5025 = vmatprep.subr.bf16.mxu1 %v5277_v5 }
 0x169   :  { %v6995_v6 = vpop.permute.xlu0 %995  ;;  %v2060_v20 = vpop.f32.mrb[9].mxu0  ;;  %4526 = vmatmul.mubr.msk.f32.gmra.mrb[110].mxu0 %vm770_vm2, %v5280_v59  ;;  %5095 = vset.pattern.permute.xlu0 %v5283_v9 }
 0x16a   :  { %1253 = vperm.xlu1 %5090, %v5262_v41   ;;  %v702_v63 = vpop.permute.xlu1 %701  ;;  %4562 = vmatmul.mubr.msk.f32.gmra.mrb[82].mxu1 %vm1030_vm3, %v5280_v59  ;;  %vm1038_vm3 = vcmp.eq.s32.totalorder %v5757_v56, %v6677_v43  ;;  %v5264_v43 = vld [vmem:[%s8680_s2 + $0x98] sm:$0xff] }
 0x16b   :  { %4563 = vmatprep.mubr.msk.f32.mxu1 %vm1033_vm4, %v5280_v59  ;;  %vm773_vm5 = vcmp.eq.s32.totalorder %v5762_v57, %v702_v63  ;;  %vm772_vm6 = vcmp.eq.s32.totalorder %v5757_v56, %v702_v63  ;;  %4997 = vmatpush1.bf16.msra.mxu0 %v4996_v25  ;;  %vm1041_vm4 = vcmp.eq.s32.totalorder %v5762_v57, %v6704_v15 }
 0x16c   :  { %v7016_v62 = vpop.f32.mrb[10].mxu0  ;;  %4527 = vmatprep.mubr.msk.f32.mxu0 %vm773_vm5, %v5280_v59  ;;  %5027 = vmatpush1.bf16.msra.mxu1 %v5026_v30 }
 0x16d   :  { %v7019_v3 = vpop.permute.xlu0 %998  ;;  %v2065_v18 = vpop.f32.mrb[11].mxu0  ;;  %4528 = vmatmul.mubr.msk.f32.gmra.mrb[112].mxu0 %vm772_vm6, %v5280_v59  ;;  %1265 = vperm.xlu0 %5095, %v7027_v54  }
 0x16e   :  { %5091 = vset.pattern.permute.xlu1 %v5282_v24  ;;  %v705_v17 = vpop.permute.xlu1 %704  ;;  %4564 = vmatmul.mubr.msk.f32.gmra.mrb[84].mxu1 %vm1032_vm7, %v5280_v59  ;;  %vm1040_vm7 = vcmp.eq.s32.totalorder %v5757_v56, %v6704_v15  ;;  %v5035_v15 = vpack.c.bf16 %v1959_v29, %v1958_v2  ;;  %v1966_v2 = vld [vmem:[%s8681_s1 + $0x5d0] sm:$0xff]  ;;  %v1967_v29 = vld [vmem:[%s8681_s1 + $0x5d8] sm:$0xff] }
 0x16f   :  { %1541 = vperm.xlu1 %5091, %v5262_v41   ;;  %4565 = vmatprep.mubr.msk.f32.mxu1 %vm1035_vm8, %v5280_v59  ;;  %vm775_vm9 = vcmp.eq.s32.totalorder %v5762_v57, %v705_v17  ;;  %vm774_vm10 = vcmp.eq.s32.totalorder %v5757_v56, %v705_v17  ;;  %vm1043_vm8 = vcmp.eq.s32.totalorder %v5762_v57, %v6730_v58  ;;  %v7132_v41 = vld [vmem:[%s8680_s2 + $0xb8] sm:$0xff] }
 0x170   :  { %v7049_v13 = vpop.f32.mrb[12].mxu0  ;;  %4529 = vmatprep.mubr.msk.f32.mxu0 %vm775_vm9, %v5280_v59  ;;  %4998 = vmatprep.subr.bf16.mxu0 %v5277_v5 }
 0x171   :  { %v2070_v49 = vpop.f32.mrb[13].mxu0  ;;  %4530 = vmatmul.mubr.msk.f32.gmra.mrb[114].mxu0 %vm774_vm10, %v5280_v59  ;;  %5028 = vmatprep.subr.bf16.mxu1 %v5277_v5  ;;  %v7057_v14 = vpop.permute.xlu0 %1001 }
 0x172   :  { %v708_v11 = vpop.permute.xlu1 %707  ;;  %4566 = vmatmul.mubr.msk.f32.gmra.mrb[86].mxu1 %vm1034_vm11, %v5280_v59  ;;  %5000 = vmatpush1.bf16.msra.mxu0 %v4999_v44  ;;  %vm1042_vm11 = vcmp.eq.s32.totalorder %v5757_v56, %v6730_v58  ;;  %v5038_v44 = vpack.c.bf16 %v1961_v35, %v1960_v23  ;;  %v5266_v58 = vld [vmem:[%s8680_s2 + $0xa8] sm:$0xff]  ;;  %v1963_v49 = vld [vmem:[%s8681_s1 + $0x5b8] sm:$0xff]  ;;  %v5047_v23 = vpack.c.bf16 %v1967_v29, %v1966_v2  ;;  %v1968_v35 = vld [vmem:[%s8681_s1 + $0x5e0] sm:$0xff] }
 0x173   :  { %1544 = vperm.xlu1 %5091, %v6726_v21   ;;  %4567 = vmatprep.mubr.msk.f32.mxu1 %vm1037_vm12, %v5280_v59  ;;  %vm777_vm13 = vcmp.eq.s32.totalorder %v5762_v57, %v708_v11  ;;  %vm776_vm14 = vcmp.eq.s32.totalorder %v5757_v56, %v708_v11  ;;  %vm1045_vm12 = vcmp.eq.s32.totalorder %v5762_v57, %v6753_v48  ;;  %v7192_v11 = vld [vmem:[%s8680_s2 + $0xc0] sm:$0xff] }
 0x174   :  { %v7072_v10 = vpop.f32.mrb[14].mxu0  ;;  %4531 = vmatprep.mubr.msk.f32.mxu0 %vm777_vm13, %v5280_v59  ;;  %5001 = vmatprep.subr.bf16.mxu0 %v5277_v5 }
 0x175   :  { %v2075_v21 = vpop.f32.mrb[15].mxu0  ;;  %4532 = vmatmul.mubr.msk.f32.gmra.mrb[116].mxu0 %vm776_vm14, %v5280_v59  ;;  %5030 = vmatpush1.bf16.msra.mxu1 %v5029_v28  ;;  %v7092_v1 = vpop.permute.xlu0 %1004 }
 0x176   :  { %v711_v61 = vpop.permute.xlu1 %710  ;;  %4568 = vmatmul.mubr.msk.f32.gmra.mrb[88].mxu1 %vm1036_vm15, %v5280_v59  ;;  %5003 = vmatpush1.bf16.msra.mxu0 %v5002_v19  ;;  %vm1044_vm15 = vcmp.eq.s32.totalorder %v5757_v56, %v6753_v48  ;;  %v5041_v19 = vpack.c.bf16 %v1963_v49, %v1962_v50  ;;  %v7299_v49 = vld [vmem:[%s8680_s2 + $0xe8] sm:$0xff] }
 0x177   :  { %5093 = vset.pattern.permute.xlu1 %v5283_v9  ;;  %4569 = vmatprep.mubr.msk.f32.mxu1 %vm1039_vm0, %v5280_v59  ;;  %vm779_vm1 = vcmp.eq.s32.totalorder %v5762_v57, %v711_v61  ;;  %vm778_vm2 = vcmp.eq.s32.totalorder %v5757_v56, %v711_v61  ;;  %vm1047_vm0 = vcmp.eq.s32.totalorder %v5762_v57, %v6767_v22  ;;  %v7215_v61 = vld [vmem:[%s8680_s2 + $0xd0] sm:$0xff] }
 0x178   :  { %1259 = vperm.xlu1 %5093, %v6816_v27   ;;  %v7095_v60 = vpop.f32.mrb[16].mxu0  ;;  %4533 = vmatprep.mubr.msk.f32.mxu0 %vm779_vm1, %v5280_v59 }
 0x179   :  { %v2080_v16 = vpop.f32.mrb[17].mxu0  ;;  %4534 = vmatmul.mubr.msk.f32.gmra.mrb[118].mxu0 %vm778_vm2, %v5280_v59  ;;  %5004 = vmatprep.subr.bf16.mxu0 %v5277_v5  ;;  %v7124_v30 = vpop.permute.xlu0 %1007 }
 0x17a   :  { %v714_v34 = vpop.permute.xlu1 %713  ;;  %4570 = vmatmul.mubr.msk.f32.gmra.mrb[90].mxu1 %vm1038_vm3, %v5280_v59  ;;  %5006 = vmatpush1.bf16.msra.mxu0 %v5005_v46  ;;  %vm1046_vm3 = vcmp.eq.s32.totalorder %v5757_v56, %v6767_v22  ;;  %v5269_v46 = vld [vmem:[%s8680_s2 + $0xb0] sm:$0xff] }
 0x17b   :  { %4571 = vmatprep.mubr.msk.f32.mxu1 %vm1041_vm4, %v5280_v59  ;;  %vm781_vm5 = vcmp.eq.s32.totalorder %v5762_v57, %v714_v34  ;;  %vm780_vm6 = vcmp.eq.s32.totalorder %v5757_v56, %v714_v34  ;;  %5031 = vmatprep.subr.bf16.mxu1 %v5277_v5  ;;  %vm1049_vm4 = vcmp.eq.s32.totalorder %v5762_v57, %v6802_v4 }
 0x17c   :  { %1262 = vperm.xlu1 %5093, %v5264_v43   ;;  %v7112_v27 = vpop.f32.mrb[18].mxu0  ;;  %4535 = vmatprep.mubr.msk.f32.mxu0 %vm781_vm5, %v5280_v59 }
 0x17d   :  { %v2085_v25 = vpop.f32.mrb[19].mxu0  ;;  %4536 = vmatmul.mubr.msk.f32.gmra.mrb[120].mxu0 %vm780_vm6, %v5280_v59  ;;  %5033 = vmatpush1.bf16.msra.mxu1 %v5032_v33  ;;  %v7159_v47 = vpop.permute.xlu0 %1010 }
 0x17e   :  { %v717_v20 = vpop.permute.xlu1 %716  ;;  %4572 = vmatmul.mubr.msk.f32.gmra.mrb[92].mxu1 %vm1040_vm7, %v5280_v59  ;;  %1274 = vperm.xlu0 %5095, %v7132_v41   ;;  %vm1048_vm7 = vcmp.eq.s32.totalorder %v5757_v56, %v6802_v4  ;;  %v1964_v4 = vld [vmem:[%s8681_s1 + $0x5c0] sm:$0xff] }
 0x17f   :  { %4573 = vmatprep.mubr.msk.f32.mxu1 %vm1043_vm8, %v5280_v59  ;;  %vm783_vm9 = vcmp.eq.s32.totalorder %v5762_v57, %v717_v20  ;;  %vm782_vm10 = vcmp.eq.s32.totalorder %v5757_v56, %v717_v20  ;;  %5034 = vmatprep.subr.bf16.mxu1 %v5277_v5  ;;  %vm1051_vm8 = vcmp.eq.s32.totalorder %v5762_v57, %v6829_v53 }
 0x180   :  { %5094 = vset.pattern.permute.xlu1 %v5282_v24  ;;  %v7140_v63 = vpop.f32.mrb[20].mxu0  ;;  %4537 = vmatprep.mubr.msk.f32.mxu0 %vm783_vm9, %v5280_v59 }
 0x181   :  { %1550 = vperm.xlu1 %5094, %v5264_v43   ;;  %v2090_v18 = vpop.f32.mrb[21].mxu0  ;;  %4538 = vmatmul.mubr.msk.f32.gmra.mrb[122].mxu0 %vm782_vm10, %v5280_v59  ;;  %v5044_v43 = vpack.c.bf16 %v1965_v32, %v1964_v4 }
 0x182   :  { %v720_v17 = vpop.permute.xlu1 %719  ;;  %4574 = vmatmul.mubr.msk.f32.gmra.mrb[94].mxu1 %vm1042_vm11, %v5280_v59  ;;  %5098 = vset.pattern.permute.xlu0 %v5282_v24  ;;  %vm1050_vm11 = vcmp.eq.s32.totalorder %v5757_v56, %v6829_v53 }
 0x183   :  { %4575 = vmatprep.mubr.msk.f32.mxu1 %vm1045_vm12, %v5280_v59  ;;  %vm785_vm13 = vcmp.eq.s32.totalorder %v5762_v57, %v720_v17  ;;  %vm784_vm14 = vcmp.eq.s32.totalorder %v5757_v56, %v720_v17  ;;  %5036 = vmatpush1.bf16.msra.mxu1 %v5035_v15  ;;  %v7267_v15 = vld [vmem:[%s8680_s2 + $0xd8] sm:$0xff] }
 0x184   :  { %v7161_v51 = vpop.f32.mrb[22].mxu0  ;;  %4539 = vmatprep.mubr.msk.f32.mxu0 %vm785_vm13, %v5280_v59  ;;  %1556 = vperm.xlu0 %5098, %v5266_v58   ;;  %vm1053_vm13 = vcmp.eq.s32.totalorder %v5762_v57, %v6853_v36 }
 0x185   :  { %1553 = vperm.xlu1 %5094, %v7027_v54   ;;  %v2095_v45 = vpop.f32.mrb[23].mxu0  ;;  %4540 = vmatmul.mubr.msk.f32.gmra.mrb[124].mxu0 %vm784_vm14, %v5280_v59  ;;  %v7187_v54 = vpop.permute.xlu0 %1493 }
 0x186   :  { %v723_v28 = vpop.permute.xlu1 %722  ;;  %4576 = vmatmul.mubr.msk.f32.gmra.mrb[96].mxu1 %vm1044_vm15, %v5280_v59  ;;  %5037 = vmatprep.subr.bf16.mxu1 %v5277_v5  ;;  %vm1052_vm15 = vcmp.eq.s32.totalorder %v5757_v56, %v6853_v36  ;;  %v1969_v36 = vld [vmem:[%s8681_s1 + $0x5e8] sm:$0xff] }
 0x187   :  { %4577 = vmatprep.mubr.msk.f32.mxu1 %vm1047_vm0, %v5280_v59  ;;  %vm787_vm1 = vcmp.eq.s32.totalorder %v5762_v57, %v723_v28  ;;  %vm786_vm2 = vcmp.eq.s32.totalorder %v5757_v56, %v723_v28  ;;  %5039 = vmatpush1.bf16.msra.mxu1 %v5038_v44  ;;  %vm1055_vm0 = vcmp.eq.s32.totalorder %v5762_v57, %v6881_v0 }
 0x188   :  { %v7184_v48 = vpop.f32.mrb[24].mxu0  ;;  %4541 = vmatprep.mubr.msk.f32.mxu0 %vm787_vm1, %v5280_v59  ;;  %1565 = vperm.xlu0 %5098, %v7192_v11   ;;  %vm1054_vm1 = vcmp.eq.s32.totalorder %v5757_v56, %v6881_v0  ;;  %v5050_v45 = vpack.c.bf16 %v1969_v36, %v1968_v35 }
 0x189   :  { %5096 = vset.pattern.permute.xlu1 %v5283_v9  ;;  %v2100_v55 = vpop.f32.mrb[25].mxu0  ;;  %4542 = vmatmul.mubr.msk.f32.gmra.mrb[126].mxu0 %vm786_vm2, %v5280_v59  ;;  %v1212_v52 = vpop.permute.xlu0 %1211  ;;  %vm1057_vm2 = vcmp.eq.s32.totalorder %v5762_v57, %v6899_v12 }
 0x18a   :  { %1268 = vperm.xlu1 %5096, %v5266_v58   ;;  %4578 = vmatmul.mubr.msk.f32.gmra.mrb[98].mxu1 %vm1046_vm3, %v5280_v59  ;;  %vm1305_vm12 = vcmp.eq.s32.totalorder %v5762_v57, %v1212_v52  ;;  %vm1304_vm14 = vcmp.eq.s32.totalorder %v5757_v56, %v1212_v52  ;;  %vm1056_vm3 = vcmp.eq.s32.totalorder %v5757_v56, %v6899_v12  ;;  %v5272_v12 = vld [vmem:[%s8680_s2 + $0xc8] sm:$0xff]  ;;  %v1971_v52 = vld [vmem:[%s8681_s1 + $0x5f8] sm:$0xff] }
 0x18b   :  { %v1206_v39 = vpop.permute.xlu1 %1205  ;;  %4579 = vmatprep.mubr.msk.f32.mxu1 %vm1049_vm4, %v5280_v59  ;;  %5040 = vmatprep.subr.bf16.mxu1 %v5277_v5  ;;  %vm1059_vm4 = vcmp.eq.s32.totalorder %v5762_v57, %v6927_v7 }
 0x18c   :  { %vm1300_vm5 = vcmp.eq.s32.totalorder %v5757_v56, %v1206_v39  ;;  %v7205_v21 = vpop.f32.mrb[26].mxu0  ;;  %vm1301_vm6 = vcmp.eq.s32.totalorder %v5762_v57, %v1206_v39  ;;  %5101 = vset.pattern.permute.xlu0 %v5283_v9  ;;  %5042 = vmatpush1.bf16.msra.mxu1 %v5041_v19 }
 0x18d   :  { %v2105_v22 = vpop.f32.mrb[27].mxu0  ;;  %4607 = vmatprep.mubr.msk.f32.mxu0 %vm1301_vm6, %v5280_v59  ;;  %1283 = vperm.xlu0 %5101, %v7215_v61  }
 0x18e   :  { %1271 = vperm.xlu1 %5096, %v5269_v46   ;;  %4580 = vmatmul.mubr.msk.f32.gmra.mrb[100].mxu1 %vm1048_vm7, %v5280_v59  ;;  %vm1058_vm7 = vcmp.eq.s32.totalorder %v5757_v56, %v6927_v7 }
 0x18f   :  { %4608 = vmatmul.mubr.msk.f32.vlgmr.msra.gmra.mrb[128].mxu0 %vm1300_vm5, %v5280_v59  ;;  %v1209_v16 = vpop.permute.xlu1 %1208  ;;  %4581 = vmatprep.mubr.msk.f32.mxu1 %vm1051_vm8, %v5280_v59  ;;  %vm1061_vm8 = vcmp.eq.s32.totalorder %v5762_v57, %v6950_v26 }
 0x190   :  { %v7234_v33 = vpop.f32.mrb[28].mxu0  ;;  %vm1303_vm9 = vcmp.eq.s32.totalorder %v5762_v57, %v1209_v16  ;;  %vm1302_vm10 = vcmp.eq.s32.totalorder %v5757_v56, %v1209_v16  ;;  %5043 = vmatprep.subr.bf16.mxu1 %v5277_v5 }
 0x191   :  { %v2110_v34 = vpop.f32.mrb[29].mxu0  ;;  %4609 = vmatprep.mubr.msk.f32.mxu0 %vm1303_vm9, %v5280_v59  ;;  %5103 = vset.pattern.permute.xlu0 %v5282_v24 }
 0x192   :  { %5097 = vset.pattern.permute.xlu1 %v5282_v24  ;;  %4582 = vmatmul.mubr.msk.f32.gmra.mrb[102].mxu1 %vm1050_vm11, %v5280_v59  ;;  %v7341_v34 = vld [vmem:[%s8680_s2 + $0xf0] sm:$0xff] }
 0x193   :  { %4610 = vmatmul.mubr.msk.f32.gmra.mrb[130].mxu0 %vm1302_vm10, %v5280_v59  ;;  %1559 = vperm.xlu1 %5097, %v5269_v46   ;;  %v1970_v46 = vld [vmem:[%s8681_s1 + $0x5f0] sm:$0xff] }
 0x194   :  { %4583 = vmatprep.mubr.msk.f32.mxu1 %vm1053_vm13, %v5280_v59  ;;  %v7256_v53 = vpop.permute.xlu1 %1496  ;;  %v7258_v25 = vpop.f32.mrb[30].mxu0  ;;  %4611 = vmatprep.mubr.msk.f32.mxu0 %vm1305_vm12, %v5280_v59  ;;  %vm1060_vm12 = vcmp.eq.s32.totalorder %v5757_v56, %v6950_v26 }
 0x195   :  { %v2115_v20 = vpop.f32.mrb[31].mxu0  ;;  %5045 = vmatpush1.bf16.msra.mxu1 %v5044_v43  ;;  %1574 = vperm.xlu0 %5103, %v7267_v15  }
 0x196   :  { %4584 = vmatmul.mubr.msk.f32.gmra.mrb[104].mxu1 %vm1052_vm15, %v5280_v59  ;;  %5046 = vmatprep.subr.bf16.mxu1 %v5277_v5  ;;  %vm1062_vm15 = vcmp.eq.s32.totalorder %v5757_v56, %v6972_v31 }
 0x197   :  { %4612 = vmatmul.mubr.msk.f32.gmra.mrb[132].mxu0 %vm1304_vm14, %v5280_v59  ;;  %1562 = vperm.xlu1 %5097, %v7132_v41   ;;  %vm1063_vm14 = vcmp.eq.s32.totalorder %v5762_v57, %v6972_v31 }
 0x198   :  { %4585 = vmatprep.mubr.msk.f32.mxu1 %vm1055_vm0, %v5280_v59  ;;  %v7283_v18 = vpop.permute.xlu1 %1499  ;;  %v7285_v17 = vpop.f32.mrb[32].mxu0  ;;  %vm1065_vm0 = vcmp.eq.s32.totalorder %v5762_v57, %v6995_v6 }
 0x199   :  { %v2120_v44 = vpop.f32.mrb[33].mxu0  ;;  %v2263_v58 = vpop.f32.mrb[0].mxu1  ;;  %5105 = vset.pattern.permute.xlu0 %v5283_v9  ;;  %5048 = vmatpush1.bf16.msra.mxu1 %v5047_v23 }
 0x19a   :  { %v7291_v41 = vadd.f32 %v2263_v58, %v6897_v40  ;;  %4586 = vmatmul.mubr.msk.f32.gmra.mrb[106].mxu1 %vm1054_vm1, %v5280_v59  ;;  %v2265_v50 = vpop.f32.mrb[1].mxu1  ;;  %1292 = vperm.xlu0 %5105, %v7299_v49   ;;  %vm1064_vm1 = vcmp.eq.s32.totalorder %v5757_v56, %v6995_v6 }
 0x19b   :  { %5099 = vset.pattern.permute.xlu1 %v5283_v9  ;;  %4587 = vmatprep.mubr.msk.f32.mxu1 %vm1057_vm2, %v5280_v59  ;;  %vm1067_vm2 = vcmp.eq.s32.totalorder %v5762_v57, %v7019_v3 }
 0x19c   :  { %1277 = vperm.xlu1 %5099, %v7192_v11   ;;  %v7305_v0 = vpop.f32.mrb[34].mxu0  ;;  %v2268_v40 = vpop.f32.mrb[2].mxu1  ;;  %5049 = vmatprep.subr.bf16.mxu1 %v5277_v5 }
 0x19d   :  { %v1215_v28 = vpop.permute.xlu1 %1214  ;;  %v2125_v19 = vpop.f32.mrb[35].mxu0  ;;  %v7309_v55 = vadd.f32 %v2268_v40, %v6919_v37  ;;  %5051 = vmatpush1.bf16.msra.mxu1 %v5050_v45 }
 0x19e   :  { %v2270_v39 = vpop.f32.mrb[3].mxu1  ;;  %4588 = vmatmul.mubr.msk.f32.gmra.mrb[108].mxu1 %vm1056_vm3, %v5280_v59  ;;  %vm1307_vm5 = vcmp.eq.s32.totalorder %v5762_v57, %v1215_v28  ;;  %vm1306_vm6 = vcmp.eq.s32.totalorder %v5757_v56, %v1215_v28  ;;  %5107 = vset.pattern.permute.xlu0 %v5282_v24  ;;  %v1221_v37 = vpop.permute.xlu0 %1220 }
 0x19f   :  { %4589 = vmatprep.mubr.msk.f32.mxu1 %vm1059_vm4, %v5280_v59  ;;  %4613 = vmatprep.mubr.msk.f32.mxu0 %vm1307_vm5, %v5280_v59  ;;  %vm1311_vm11 = vcmp.eq.s32.totalorder %v5762_v57, %v1221_v37  ;;  %vm1310_vm13 = vcmp.eq.s32.totalorder %v5757_v56, %v1221_v37  ;;  %vm1066_vm5 = vcmp.eq.s32.totalorder %v5757_v56, %v7019_v3 }
 0x1a0   :  { %1280 = vperm.xlu1 %5099, %v5272_v12   ;;  %v7324_v11 = vpop.f32.mrb[36].mxu0  ;;  %4614 = vmatmul.mubr.msk.f32.gmra.mrb[134].mxu0 %vm1306_vm6, %v5280_v59  ;;  %v2273_v22 = vpop.f32.mrb[4].mxu1  ;;  %vm1069_vm6 = vcmp.eq.s32.totalorder %v5762_v57, %v7057_v14 }
 0x1a1   :  { %v1218_v4 = vpop.permute.xlu1 %1217  ;;  %v2130_v32 = vpop.f32.mrb[37].mxu0  ;;  %v7334_v16 = vadd.f32 %v2273_v22, %v6946_v38  ;;  %1583 = vperm.xlu0 %5107, %v7341_v34   ;;  %5052 = vmatprep.subr.bf16.mxu1 %v5277_v5  ;;  %v5053_v38 = vpack.c.bf16 %v1971_v52, %v1970_v46 }
 0x1a2   :  { %v2275_v43 = vpop.f32.mrb[5].mxu1  ;;  %4590 = vmatmul.mubr.msk.f32.gmra.mrb[110].mxu1 %vm1058_vm7, %v5280_v59  ;;  %vm1309_vm9 = vcmp.eq.s32.totalorder %v5762_v57, %v1218_v4  ;;  %vm1308_vm10 = vcmp.eq.s32.totalorder %v5757_v56, %v1218_v4  ;;  %v7353_v7 = vpop.permute.xlu0 %1502 }
 0x1a3   :  { %4591 = vmatprep.mubr.msk.f32.mxu1 %vm1061_vm8, %v5280_v59  ;;  %4615 = vmatprep.mubr.msk.f32.mxu0 %vm1309_vm9, %v5280_v59  ;;  %vm1068_vm9 = vcmp.eq.s32.totalorder %v5757_v56, %v7057_v14 }
 0x1a4   :  { %5100 = vset.pattern.permute.xlu1 %v5282_v24  ;;  %v7356_v5 = vpop.f32.mrb[38].mxu0  ;;  %4616 = vmatmul.mubr.msk.f32.gmra.mrb[136].mxu0 %vm1308_vm10, %v5280_v59  ;;  %v2278_v2 = vpop.f32.mrb[6].mxu1 }
 0x1a5   :  { %1568 = vperm.xlu1 %5100, %v5272_v12   ;;  %v2135_v29 = vpop.f32.mrb[39].mxu0  ;;  %v7360_v20 = vadd.f32 %v2278_v2, %v6962_v42  ;;  %v2280_v23 = vpop.f32.mrb[7].mxu1  ;;  %4617 = vmatprep.mubr.msk.f32.mxu0 %vm1311_vm11, %v5280_v59  ;;  %v5274_v12 = vld [vmem:[%s8680_s2 + $0xe0] sm:$0xff]  ;;  %vm1071_vm11 = vcmp.eq.s32.totalorder %v5762_v57, %v7092_v1 }
 0x1a6   :  { %v7366_v35 = vpop.permute.xlu1 %1505  ;;  %4592 = vmatmul.mubr.msk.f32.gmra.mrb[112].mxu1 %vm1060_vm12, %v5280_v59  ;;  %v7387_v50 = vpop.permute.xlu0 %1511 }
 0x1a7   :  { %4593 = vmatprep.mubr.msk.f32.mxu1 %vm1063_vm14, %v5280_v59  ;;  %5054 = vmatpush1.bf16.msra.mxu1 %v5053_v38  ;;  %vm1073_vm14 = vcmp.eq.s32.totalorder %v5762_v57, %v7124_v30 }
 0x1a8   :  { %v7372_v42 = vpop.f32.mrb[40].mxu0  ;;  %4618 = vmatmul.mubr.msk.f32.gmra.mrb[138].mxu0 %vm1310_vm13, %v5280_v59  ;;  %v2283_v36 = vpop.f32.mrb[8].mxu1  ;;  %vm1070_vm13 = vcmp.eq.s32.totalorder %v5757_v56, %v7092_v1 }
 0x1a9   :  { %1571 = vperm.xlu1 %5100, %v7215_v61   ;;  %v2140_v26 = vpop.f32.mrb[41].mxu0  ;;  %v7377_v44 = vadd.f32 %v2283_v36, %v6991_v8  ;;  %v2285_v58 = vpop.f32.mrb[9].mxu1 }
 0x1aa   :  { %v7381_v45 = vpop.permute.xlu1 %1508  ;;  %4594 = vmatmul.mubr.msk.f32.gmra.mrb[114].mxu1 %vm1062_vm15, %v5280_v59  ;;  %v1230_v22 = vpop.permute.xlu0 %1229  ;;  %vm1072_vm15 = vcmp.eq.s32.totalorder %v5757_v56, %v7124_v30 }
 0x1ab   :  { %4595 = vmatprep.mubr.msk.f32.mxu1 %vm1065_vm0, %v5280_v59  ;;  %vm1317_vm10 = vcmp.eq.s32.totalorder %v5762_v57, %v1230_v22  ;;  %vm1316_vm12 = vcmp.eq.s32.totalorder %v5757_v56, %v1230_v22  ;;  %vm1075_vm0 = vcmp.eq.s32.totalorder %v5762_v57, %v7159_v47 }
 0x1ac   :  { %v7389_v61 = vpop.f32.mrb[42].mxu0  ;;  %v2288_v40 = vpop.f32.mrb[10].mxu1 }
 0x1ad   :  { %5102 = vset.pattern.permute.xlu1 %v5283_v9  ;;  %v2145_v8 = vpop.f32.mrb[43].mxu0  ;;  %v7393_v28 = vadd.f32 %v2288_v40, %v7016_v62  ;;  %v2290_v31 = vpop.f32.mrb[11].mxu1 }
 0x1ae   :  { %1286 = vperm.xlu1 %5102, %v7267_v15   ;;  %4596 = vmatmul.mubr.msk.f32.gmra.mrb[116].mxu1 %vm1064_vm1, %v5280_v59  ;;  %vm1589_vm1 = vcmp.eq.s32.totalorder %v5762_v57, %v7187_v54 }
 0x1af   :  { %v1224_v19 = vpop.permute.xlu1 %1223  ;;  %4597 = vmatprep.mubr.msk.f32.mxu1 %vm1067_vm2, %v5280_v59  ;;  %vm1074_vm2 = vcmp.eq.s32.totalorder %v5757_v56, %v7159_v47 }
 0x1b0   :  { %v7402_v39 = vpop.f32.mrb[44].mxu0  ;;  %v2293_v37 = vpop.f32.mrb[12].mxu1  ;;  %vm1313_vm3 = vcmp.eq.s32.totalorder %v5762_v57, %v1224_v19  ;;  %vm1312_vm4 = vcmp.eq.s32.totalorder %v5757_v56, %v1224_v19 }
 0x1b1   :  { %v2150_v62 = vpop.f32.mrb[45].mxu0  ;;  %v7407_v6 = vadd.f32 %v2293_v37, %v7049_v13  ;;  %4619 = vmatprep.mubr.msk.f32.mxu0 %vm1313_vm3, %v5280_v59  ;;  %v2295_v15 = vpop.f32.mrb[13].mxu1 }
 0x1b2   :  { %1289 = vperm.xlu1 %5102, %v5274_v12   ;;  %4598 = vmatmul.mubr.msk.f32.gmra.mrb[118].mxu1 %vm1066_vm5, %v5280_v59  ;;  %vm1588_vm5 = vcmp.eq.s32.totalorder %v5757_v56, %v7187_v54 }
 0x1b3   :  { %4620 = vmatmul.mubr.msk.f32.gmra.mrb[140].mxu0 %vm1312_vm4, %v5280_v59  ;;  %v1227_v13 = vpop.permute.xlu1 %1226  ;;  %4599 = vmatprep.mubr.msk.f32.mxu1 %vm1069_vm6, %v5280_v59 }
 0x1b4   :  { %v7420_v46 = vpop.f32.mrb[46].mxu0  ;;  %v2298_v52 = vpop.f32.mrb[14].mxu1  ;;  %vm1315_vm7 = vcmp.eq.s32.totalorder %v5762_v57, %v1227_v13  ;;  %vm1314_vm8 = vcmp.eq.s32.totalorder %v5757_v56, %v1227_v13 }
 0x1b5   :  { %v2155_v3 = vpop.f32.mrb[47].mxu0  ;;  %v7425_v4 = vadd.f32 %v2298_v52, %v7072_v10  ;;  %4621 = vmatprep.mubr.msk.f32.mxu0 %vm1315_vm7, %v5280_v59  ;;  %v2300_v32 = vpop.f32.mrb[15].mxu1  ;;  %vm1591_vm7 = vcmp.eq.s32.totalorder %v5762_v57, %v7256_v53 }
 0x1b6   :  { %5104 = vset.pattern.permute.xlu1 %v5282_v24  ;;  %4600 = vmatmul.mubr.msk.f32.gmra.mrb[120].mxu1 %vm1068_vm9, %v5280_v59 }
 0x1b7   :  { %4622 = vmatmul.mubr.msk.f32.gmra.mrb[142].mxu0 %vm1314_vm8, %v5280_v59  ;;  %1577 = vperm.xlu1 %5104, %v5274_v12  }
 0x1b8   :  { %4601 = vmatprep.mubr.msk.f32.mxu1 %vm1071_vm11, %v5280_v59  ;;  %v7438_v10 = vpop.permute.xlu1 %1514  ;;  %v7440_v43 = vpop.f32.mrb[48].mxu0  ;;  %4623 = vmatprep.mubr.msk.f32.mxu0 %vm1317_vm10, %v5280_v59  ;;  %vm1590_vm11 = vcmp.eq.s32.totalorder %v5757_v56, %v7256_v53 }
 0x1b9   :  { %v2160_v14 = vpop.f32.mrb[49].mxu0  ;;  %v2303_v38 = vpop.f32.mrb[16].mxu1 }
 0x1ba   :  { %v7446_v2 = vadd.f32 %v2303_v38, %v7095_v60  ;;  %v2305_v29 = vpop.f32.mrb[17].mxu1  ;;  %4602 = vmatmul.mubr.msk.f32.gmra.mrb[122].mxu1 %vm1070_vm13, %v5280_v59  ;;  %vm1595_vm13 = vcmp.eq.s32.totalorder %v5762_v57, %v7353_v7 }
 0x1bb   :  { %4624 = vmatmul.mubr.msk.f32.gmra.mrb[144].mxu0 %vm1316_vm12, %v5280_v59  ;;  %1580 = vperm.xlu1 %5104, %v7299_v49   ;;  %v1239_v49 = vpop.permute.xlu0 %1238  ;;  %vm1593_vm12 = vcmp.eq.s32.totalorder %v5762_v57, %v7283_v18 }
 0x1bc   :  { %4603 = vmatprep.mubr.msk.f32.mxu1 %vm1073_vm14, %v5280_v59  ;;  %v7454_v23 = vpop.permute.xlu1 %1517  ;;  %v7456_v36 = vpop.f32.mrb[50].mxu0  ;;  %vm1323_vm9 = vcmp.eq.s32.totalorder %v5762_v57, %v1239_v49  ;;  %vm1322_vm10 = vcmp.eq.s32.totalorder %v5757_v56, %v1239_v49  ;;  %vm1592_vm14 = vcmp.eq.s32.totalorder %v5757_v56, %v7283_v18 }
 0x1bd   :  { %v2165_v1 = vpop.f32.mrb[51].mxu0  ;;  %v2308_v26 = vpop.f32.mrb[18].mxu1 }
 0x1be   :  { %v7461_v60 = vadd.f32 %v2308_v26, %v7112_v27  ;;  %v2310_v58 = vpop.f32.mrb[19].mxu1  ;;  %4604 = vmatmul.mubr.msk.f32.gmra.mrb[124].mxu1 %vm1072_vm15, %v5280_v59  ;;  %vm1594_vm15 = vcmp.eq.s32.totalorder %v5757_v56, %v7353_v7 }
 0x1bf   :  { %5106 = vset.pattern.permute.xlu1 %v5283_v9  ;;  %4605 = vmatprep.mubr.msk.f32.mxu1 %vm1075_vm0, %v5280_v59  ;;  %vm1597_vm0 = vcmp.eq.s32.totalorder %v5762_v57, %v7366_v35 }
 0x1c0   :  { %1295 = vperm.xlu1 %5106, %v7341_v34   ;;  %v7469_v40 = vpop.f32.mrb[52].mxu0  ;;  %v2313_v8 = vpop.f32.mrb[20].mxu1 }
 0x1c1   :  { %v1233_v27 = vpop.permute.xlu1 %1232  ;;  %v2170_v30 = vpop.f32.mrb[53].mxu0  ;;  %v7474_v31 = vadd.f32 %v2313_v8, %v7140_v63  ;;  %v5275_v63 = vld [vmem:[%s8680_s2 + $0xf8] sm:$0xff] }
 0x1c2   :  { %v2315_v9 = vpop.f32.mrb[21].mxu1  ;;  %4606 = vmatmul.mubr.msk.f32.gmra.mrb[126].mxu1 %vm1074_vm2, %v5280_v59  ;;  %vm1319_vm3 = vcmp.eq.s32.totalorder %v5762_v57, %v1233_v27  ;;  %vm1318_vm4 = vcmp.eq.s32.totalorder %v5757_v56, %v1233_v27  ;;  %v7485_v34 = vpop.permute.xlu0 %1520 }
 0x1c3   :  { %4625 = vmatprep.mubr.msk.f32.mxu0 %vm1319_vm3, %v5280_v59  ;;  %4671 = vmatprep.mubr.msk.f32.mxu1 %vm1589_vm1, %v5280_v59  ;;  %vm1596_vm3 = vcmp.eq.s32.totalorder %v5757_v56, %v7366_v35 }
 0x1c4   :  { %1298 = vperm.xlu1 %5106, %v5275_v63   ;;  %v7490_v47 = vpop.f32.mrb[54].mxu0  ;;  %4626 = vmatmul.mubr.msk.f32.gmra.mrb[146].mxu0 %vm1318_vm4, %v5280_v59  ;;  %v2318_v19 = vpop.f32.mrb[22].mxu1  ;;  %vm1599_vm4 = vcmp.eq.s32.totalorder %v5762_v57, %v7381_v45 }
 0x1c5   :  { %v1236_v37 = vpop.permute.xlu1 %1235  ;;  %v2175_v62 = vpop.f32.mrb[55].mxu0  ;;  %v7494_v54 = vadd.f32 %v2318_v19, %v7161_v51 }
 0x1c6   :  { %v2320_v15 = vpop.f32.mrb[23].mxu1  ;;  %4672 = vmatmul.mubr.msk.f32.vlgmr.msra.gmra.mrb[128].mxu1 %vm1588_vm5, %v5280_v59  ;;  %vm1321_vm6 = vcmp.eq.s32.totalorder %v5762_v57, %v1236_v37  ;;  %vm1320_vm8 = vcmp.eq.s32.totalorder %v5757_v56, %v1236_v37  ;;  %vm1601_vm5 = vcmp.eq.s32.totalorder %v5762_v57, %v7387_v50 }
 0x1c7   :  { %4627 = vmatprep.mubr.msk.f32.mxu0 %vm1321_vm6, %v5280_v59  ;;  %4673 = vmatprep.mubr.msk.f32.mxu1 %vm1591_vm7, %v5280_v59 }
 0x1c8   :  { %5108 = vset.pattern.permute.xlu1 %v5282_v24  ;;  %v7505_v51 = vpop.f32.mrb[56].mxu0  ;;  %4628 = vmatmul.mubr.msk.f32.gmra.mrb[148].mxu0 %vm1320_vm8, %v5280_v59  ;;  %v2323_v12 = vpop.f32.mrb[24].mxu1 }
 0x1c9   :  { %1586 = vperm.xlu1 %5108, %v5275_v63   ;;  %v2180_v22 = vpop.f32.mrb[57].mxu0  ;;  %v7510_v13 = vadd.f32 %v2323_v12, %v7184_v48  ;;  %v2325_v52 = vpop.f32.mrb[25].mxu1  ;;  %4629 = vmatprep.mubr.msk.f32.mxu0 %vm1323_vm9, %v5280_v59  ;;  %vm1598_vm9 = vcmp.eq.s32.totalorder %v5757_v56, %v7381_v45 }
 0x1ca   :  { %v7515_v3 = vpop.permute.xlu1 %1523  ;;  %4674 = vmatmul.mubr.msk.f32.gmra.mrb[130].mxu1 %vm1590_vm11, %v5280_v59  ;;  %v7521_v24 = vpop.permute.xlu0 %1529  ;;  %vm1600_vm11 = vcmp.eq.s32.totalorder %v5757_v56, %v7387_v50 }
 0x1cb   :  { %4675 = vmatprep.mubr.msk.f32.mxu1 %vm1593_vm12, %v5280_v59  ;;  %vm1603_vm12 = vcmp.eq.s32.totalorder %v5762_v57, %v7438_v10 }
 0x1cc   :  { %v7523_v32 = vpop.f32.mrb[58].mxu0  ;;  %4630 = vmatmul.mubr.msk.f32.gmra.mrb[150].mxu0 %vm1322_vm10, %v5280_v59  ;;  %v2328_v48 = vpop.f32.mrb[26].mxu1 }
 0x1cd   :  { %v2185_v53 = vpop.f32.mrb[59].mxu0  ;;  %v7529_v14 = vadd.f32 %v2328_v48, %v7205_v21  ;;  %v2330_v38 = vpop.f32.mrb[27].mxu1 }
 0x1ce   :  { %v7533_v29 = vpop.permute.xlu1 %1526  ;;  %4676 = vmatmul.mubr.msk.f32.gmra.mrb[132].mxu1 %vm1592_vm14, %v5280_v59  ;;  %v1248_v8 = vpop.permute.xlu0 %1247  ;;  %vm1605_vm14 = vcmp.eq.s32.totalorder %v5762_v57, %v7454_v23 }
 0x1cf   :  { %4677 = vmatprep.mubr.msk.f32.mxu1 %vm1595_vm13, %v5280_v59  ;;  %vm1329_vm8 = vcmp.eq.s32.totalorder %v5762_v57, %v1248_v8  ;;  %vm1328_vm10 = vcmp.eq.s32.totalorder %v5757_v56, %v1248_v8  ;;  %vm1602_vm13 = vcmp.eq.s32.totalorder %v5757_v56, %v7438_v10 }
 0x1d0   :  { %v7539_v1 = vpop.f32.mrb[60].mxu0  ;;  %v2333_v26 = vpop.f32.mrb[28].mxu1 }
 0x1d1   :  { %v2190_v58 = vpop.f32.mrb[61].mxu0  ;;  %v7542_v21 = vadd.f32 %v2333_v26, %v7234_v33  ;;  %v2335_v49 = vpop.f32.mrb[29].mxu1 }
 0x1d2   :  { %4678 = vmatmul.mubr.msk.f32.gmra.mrb[134].mxu1 %vm1594_vm15, %v5280_v59  ;;  %vm1607_vm15 = vcmp.eq.s32.totalorder %v5762_v57, %v7485_v34  ;;  %v1257_v8 = vpop.permute.xlu0 %1256 }
 0x1d3   :  { %v1242_v18 = vpop.permute.xlu1 %1241  ;;  %4679 = vmatprep.mubr.msk.f32.mxu1 %vm1597_vm0, %v5280_v59  ;;  %vm1604_vm0 = vcmp.eq.s32.totalorder %v5757_v56, %v7454_v23 }
 0x1d4   :  { %v7548_v27 = vpop.f32.mrb[62].mxu0  ;;  %v2338_v7 = vpop.f32.mrb[30].mxu1  ;;  %vm1325_vm1 = vcmp.eq.s32.totalorder %v5762_v57, %v1242_v18  ;;  %vm1324_vm2 = vcmp.eq.s32.totalorder %v5757_v56, %v1242_v18 }
 0x1d5   :  { %v2195_v30 = vpop.f32.mrb[63].mxu0  ;;  %v7553_v33 = vadd.f32 %v2338_v7, %v7258_v25  ;;  %4631 = vmatprep.mubr.msk.f32.mxu0 %vm1325_vm1, %v5280_v59  ;;  %v2340_v9 = vpop.f32.mrb[31].mxu1 }
 0x1d6   :  { %4632 = vmatmul.mubr.msk.f32.gmra.mrb[152].mxu0 %vm1324_vm2, %v5280_v59  ;;  %4680 = vmatmul.mubr.msk.f32.gmra.mrb[136].mxu1 %vm1596_vm3, %v5280_v59  ;;  %vm1606_vm3 = vcmp.eq.s32.totalorder %v5757_v56, %v7485_v34 }
 0x1d7   :  { %v1245_v63 = vpop.permute.xlu1 %1244  ;;  %4681 = vmatprep.mubr.msk.f32.mxu1 %vm1599_vm4, %v5280_v59 }
 0x1d8   :  { %v2343_v25 = vpop.f32.mrb[32].mxu1  ;;  %vm1327_vm6 = vcmp.eq.s32.totalorder %v5762_v57, %v1245_v63  ;;  %vm1326_vm7 = vcmp.eq.s32.totalorder %v5757_v56, %v1245_v63 }
 0x1d9   :  { %v7569_v35 = vadd.f32 %v2343_v25, %v7285_v17  ;;  %4633 = vmatprep.mubr.msk.f32.mxu0 %vm1327_vm6, %v5280_v59  ;;  %v2345_v19 = vpop.f32.mrb[33].mxu1  ;;  %v2488_v37 = vpop.f32.mrb[64].mxu0 }
 0x1da   :  { %v7575_v62 = vadd.f32 %v2488_v37, %v7291_v41  ;;  %4634 = vmatmul.mubr.msk.f32.gmra.mrb[154].mxu0 %vm1326_vm7, %v5280_v59  ;;  %4682 = vmatmul.mubr.msk.f32.gmra.mrb[138].mxu1 %vm1598_vm9, %v5280_v59  ;;  %v2490_v15 = vpop.f32.mrb[65].mxu0  ;;  %vm1335_vm7 = vcmp.eq.s32.totalorder %v5762_v57, %v1257_v8  ;;  %vm1608_vm9 = vcmp.eq.s32.totalorder %v5757_v56, %v7515_v3 }
 0x1db   :  { %4683 = vmatprep.mubr.msk.f32.mxu1 %vm1601_vm5, %v5280_v59  ;;  %4635 = vmatprep.mubr.msk.f32.mxu0 %vm1329_vm8, %v5280_v59  ;;  %vm1609_vm5 = vcmp.eq.s32.totalorder %v5762_v57, %v7515_v3  ;;  %vm1334_vm8 = vcmp.eq.s32.totalorder %v5757_v56, %v1257_v8 }
 0x1dc   :  { %v7582_v17 = vpop.permute.xlu1 %1532  ;;  %v2348_v12 = vpop.f32.mrb[34].mxu1 }
 0x1dd   :  { %v7587_v41 = vadd.f32 %v2348_v12, %v7305_v0  ;;  %v2350_v45 = vpop.f32.mrb[35].mxu1  ;;  %v2493_v22 = vpop.f32.mrb[66].mxu0 }
 0x1de   :  { %v7590_v52 = vadd.f32 %v2493_v22, %v7309_v55  ;;  %4636 = vmatmul.mubr.msk.f32.gmra.mrb[156].mxu0 %vm1328_vm10, %v5280_v59  ;;  %4684 = vmatmul.mubr.msk.f32.gmra.mrb[140].mxu1 %vm1600_vm11, %v5280_v59  ;;  %v2495_v48 = vpop.f32.mrb[67].mxu0  ;;  %vm1611_vm10 = vcmp.eq.s32.totalorder %v5762_v57, %v7533_v29  ;;  %vm1613_vm11 = vcmp.eq.s32.totalorder %v5762_v57, %v7521_v24 }
 0x1df   :  { %4685 = vmatprep.mubr.msk.f32.mxu1 %vm1603_vm12, %v5280_v59  ;;  %vm1610_vm12 = vcmp.eq.s32.totalorder %v5757_v56, %v7533_v29 }
 0x1e0   :  { %v7597_v53 = vpop.permute.xlu1 %1535  ;;  %v2353_v50 = vpop.f32.mrb[36].mxu1 }
 0x1e1   :  { %v7600_v0 = vadd.f32 %v2353_v50, %v7324_v11  ;;  %v2355_v38 = vpop.f32.mrb[37].mxu1  ;;  %v2498_v26 = vpop.f32.mrb[68].mxu0 }
 0x1e2   :  { %v7605_v55 = vadd.f32 %v2498_v26, %v7334_v16  ;;  %4686 = vmatmul.mubr.msk.f32.gmra.mrb[142].mxu1 %vm1602_vm13, %v5280_v59  ;;  %v2500_v58 = vpop.f32.mrb[69].mxu0  ;;  %vm1612_vm13 = vcmp.eq.s32.totalorder %v5757_v56, %v7521_v24 }
 0x1e3   :  { %4687 = vmatprep.mubr.msk.f32.mxu1 %vm1605_vm14, %v5280_v59  ;;  %vm1615_vm14 = vcmp.eq.s32.totalorder %v5762_v57, %v7582_v17 }
 0x1e4   :  { %v2358_v11 = vpop.f32.mrb[38].mxu1 }
 0x1e5   :  { %v1251_v49 = vpop.permute.xlu1 %1250  ;;  %v7614_v18 = vadd.f32 %v2358_v11, %v7356_v5  ;;  %v2360_v10 = vpop.f32.mrb[39].mxu1 }
 0x1e6   :  { %v2503_v16 = vpop.f32.mrb[70].mxu0  ;;  %4688 = vmatmul.mubr.msk.f32.gmra.mrb[144].mxu1 %vm1604_vm0, %v5280_v59  ;;  %vm1331_vm1 = vcmp.eq.s32.totalorder %v5762_v57, %v1251_v49  ;;  %vm1330_vm2 = vcmp.eq.s32.totalorder %v5757_v56, %v1251_v49 }
 0x1e7   :  { %v7624_v7 = vadd.f32 %v2503_v16, %v7360_v20  ;;  %v2505_v5 = vpop.f32.mrb[71].mxu0  ;;  %4637 = vmatprep.mubr.msk.f32.mxu0 %vm1331_vm1, %v5280_v59  ;;  %4689 = vmatprep.mubr.msk.f32.mxu1 %vm1607_vm15, %v5280_v59  ;;  %v7638_v20 = vpop.permute.xlu0 %1538  ;;  %vm1614_vm1 = vcmp.eq.s32.totalorder %v5757_v56, %v7582_v17 }
 0x1e8   :  { %4638 = vmatmul.mubr.msk.f32.gmra.mrb[158].mxu0 %vm1330_vm2, %v5280_v59  ;;  %v2363_v23 = vpop.f32.mrb[40].mxu1  ;;  %vm1617_vm2 = vcmp.eq.s32.totalorder %v5762_v57, %v7597_v53 }
 0x1e9   :  { %v1254_v30 = vpop.permute.xlu1 %1253  ;;  %v7630_v9 = vadd.f32 %v2363_v23, %v7372_v42  ;;  %v2365_v63 = vpop.f32.mrb[41].mxu1 }
 0x1ea   :  { %4690 = vmatmul.mubr.msk.f32.gmra.mrb[146].mxu1 %vm1606_vm3, %v5280_v59  ;;  %vm1333_vm4 = vcmp.eq.s32.totalorder %v5762_v57, %v1254_v30  ;;  %vm1332_vm6 = vcmp.eq.s32.totalorder %v5757_v56, %v1254_v30  ;;  %vm1619_vm3 = vcmp.eq.s32.totalorder %v5762_v57, %v7638_v20 }
 0x1eb   :  { %4639 = vmatprep.mubr.msk.f32.mxu0 %vm1333_vm4, %v5280_v59  ;;  %4691 = vmatprep.mubr.msk.f32.mxu1 %vm1609_vm5, %v5280_v59  ;;  %v7659_v37 = vpop.permute.xlu0 %1547 }
 0x1ec   :  { %4640 = vmatmul.mubr.msk.f32.gmra.mrb[160].mxu0 %vm1332_vm6, %v5280_v59  ;;  %v2368_v42 = vpop.f32.mrb[42].mxu1 }
 0x1ed   :  { %v7645_v34 = vadd.f32 %v2368_v42, %v7389_v61  ;;  %v2370_v25 = vpop.f32.mrb[43].mxu1  ;;  %4641 = vmatprep.mubr.msk.f32.mxu0 %vm1335_vm7, %v5280_v59  ;;  %vm1616_vm7 = vcmp.eq.s32.totalorder %v5757_v56, %v7597_v53 }
 0x1ee   :  { %v7650_v19 = vpop.permute.xlu1 %1541  ;;  %4692 = vmatmul.mubr.msk.f32.gmra.mrb[148].mxu1 %vm1608_vm9, %v5280_v59 }
 0x1ef   :  { %4693 = vmatprep.mubr.msk.f32.mxu1 %vm1611_vm10, %v5280_v59  ;;  %vm1621_vm10 = vcmp.eq.s32.totalorder %v5762_v57, %v7650_v19 }
 0x1f0   :  { %v2508_v61 = vpop.f32.mrb[72].mxu0  ;;  %4642 = vmatmul.mubr.msk.f32.gmra.mrb[162].mxu0 %vm1334_vm8, %v5280_v59  ;;  %vm1618_vm8 = vcmp.eq.s32.totalorder %v5757_v56, %v7638_v20 }
 0x1f1   :  { %v7662_v3 = vadd.f32 %v2508_v61, %v7377_v44  ;;  %v2373_v15 = vpop.f32.mrb[44].mxu1  ;;  %v2510_v12 = vpop.f32.mrb[73].mxu0 }
 0x1f2   :  { %v7667_v45 = vadd.f32 %v2373_v15, %v7402_v39  ;;  %v7669_v22 = vpop.permute.xlu1 %1544  ;;  %v2375_v48 = vpop.f32.mrb[45].mxu1  ;;  %4694 = vmatmul.mubr.msk.f32.gmra.mrb[150].mxu1 %vm1610_vm12, %v5280_v59 }
 0x1f3   :  { %4695 = vmatprep.mubr.msk.f32.mxu1 %vm1613_vm11, %v5280_v59  ;;  %vm1620_vm11 = vcmp.eq.s32.totalorder %v5757_v56, %v7650_v19  ;;  %vm1623_vm12 = vcmp.eq.s32.totalorder %v5762_v57, %v7669_v22 }
 0x1f4   :  { %v2513_v50 = vpop.f32.mrb[74].mxu0 }
 0x1f5   :  { %v7676_v44 = vadd.f32 %v2513_v50, %v7393_v28  ;;  %v2378_v38 = vpop.f32.mrb[46].mxu1  ;;  %v2515_v26 = vpop.f32.mrb[75].mxu0 }
 0x1f6   :  { %v7679_v29 = vadd.f32 %v2378_v38, %v7420_v46  ;;  %v2380_v39 = vpop.f32.mrb[47].mxu1  ;;  %4696 = vmatmul.mubr.msk.f32.gmra.mrb[152].mxu1 %vm1612_vm13, %v5280_v59  ;;  %v1266_v28 = vpop.permute.xlu0 %1265  ;;  %vm1625_vm13 = vcmp.eq.s32.totalorder %v5762_v57, %v7659_v37 }
 0x1f7   :  { %v1260_v58 = vpop.permute.xlu1 %1259  ;;  %4697 = vmatprep.mubr.msk.f32.mxu1 %vm1615_vm14, %v5280_v59  ;;  %vm1341_vm6 = vcmp.eq.s32.totalorder %v5762_v57, %v1266_v28  ;;  %vm1340_vm9 = vcmp.eq.s32.totalorder %v5757_v56, %v1266_v28  ;;  %vm1622_vm14 = vcmp.eq.s32.totalorder %v5757_v56, %v7669_v22 }
 0x1f8   :  { %v2518_v11 = vpop.f32.mrb[76].mxu0  ;;  %vm1337_vm15 = vcmp.eq.s32.totalorder %v5762_v57, %v1260_v58  ;;  %vm1336_vm0 = vcmp.eq.s32.totalorder %v5757_v56, %v1260_v58 }
 0x1f9   :  { %v7688_v24 = vadd.f32 %v2518_v11, %v7407_v6  ;;  %v2383_v46 = vpop.f32.mrb[48].mxu1  ;;  %v2520_v49 = vpop.f32.mrb[77].mxu0  ;;  %4643 = vmatprep.mubr.msk.f32.mxu0 %vm1337_vm15, %v5280_v59 }
 0x1fa   :  { %v7694_v10 = vadd.f32 %v2383_v46, %v7440_v43  ;;  %v2385_v16 = vpop.f32.mrb[49].mxu1  ;;  %4644 = vmatmul.mubr.msk.f32.gmra.mrb[164].mxu0 %vm1336_vm0, %v5280_v59  ;;  %4698 = vmatmul.mubr.msk.f32.gmra.mrb[154].mxu1 %vm1614_vm1, %v5280_v59  ;;  %vm1624_vm1 = vcmp.eq.s32.totalorder %v5757_v56, %v7659_v37 }
 0x1fb   :  { %v1263_v6 = vpop.permute.xlu1 %1262  ;;  %4699 = vmatprep.mubr.msk.f32.mxu1 %vm1617_vm2, %v5280_v59 }
 0x1fc   :  { %v2523_v8 = vpop.f32.mrb[78].mxu0  ;;  %vm1339_vm4 = vcmp.eq.s32.totalorder %v5762_v57, %v1263_v6  ;;  %vm1338_vm5 = vcmp.eq.s32.totalorder %v5757_v56, %v1263_v6 }
 0x1fd   :  { %v7707_v43 = vadd.f32 %v2523_v8, %v7425_v4  ;;  %v2388_v17 = vpop.f32.mrb[50].mxu1  ;;  %v2525_v5 = vpop.f32.mrb[79].mxu0  ;;  %4645 = vmatprep.mubr.msk.f32.mxu0 %vm1339_vm4, %v5280_v59 }
 0x1fe   :  { %v7713_v23 = vadd.f32 %v2388_v17, %v7456_v36  ;;  %v2390_v30 = vpop.f32.mrb[51].mxu1  ;;  %4646 = vmatmul.mubr.msk.f32.gmra.mrb[166].mxu0 %vm1338_vm5, %v5280_v59  ;;  %4700 = vmatmul.mubr.msk.f32.gmra.mrb[156].mxu1 %vm1616_vm7, %v5280_v59  ;;  %v1275_v38 = vpop.permute.xlu0 %1274 }
 0x1ff   :  { %4647 = vmatprep.mubr.msk.f32.mxu0 %vm1341_vm6, %v5280_v59  ;;  %4701 = vmatprep.mubr.msk.f32.mxu1 %vm1619_vm3, %v5280_v59  ;;  %vm1347_vm2 = vcmp.eq.s32.totalorder %v5762_v57, %v1275_v38  ;;  %vm1346_vm7 = vcmp.eq.s32.totalorder %v5757_v56, %v1275_v38 }
 0x200   :  { %v7725_v4 = vpop.permute.xlu1 %1550  ;;  %v2528_v36 = vpop.f32.mrb[80].mxu0 }
 0x201   :  { %v7728_v53 = vadd.f32 %v2528_v36, %v7446_v2  ;;  %v2393_v63 = vpop.f32.mrb[52].mxu1  ;;  %v2530_v42 = vpop.f32.mrb[81].mxu0  ;;  %vm1627_vm3 = vcmp.eq.s32.totalorder %v5762_v57, %v7725_v4  ;;  %vm1626_vm6 = vcmp.eq.s32.totalorder %v5757_v56, %v7725_v4 }
 0x202   :  { %v7731_v25 = vadd.f32 %v2393_v63, %v7469_v40  ;;  %v2395_v61 = vpop.f32.mrb[53].mxu1  ;;  %4648 = vmatmul.mubr.msk.f32.gmra.mrb[168].mxu0 %vm1340_vm9, %v5280_v59  ;;  %4702 = vmatmul.mubr.msk.f32.gmra.mrb[158].mxu1 %vm1618_vm8, %v5280_v59 }
 0x203   :  { %4703 = vmatprep.mubr.msk.f32.mxu1 %vm1621_vm10, %v5280_v59  ;;  %v1557_v37 = vpop.permute.xlu0 %1556 }
 0x204   :  { %v7738_v20 = vpop.permute.xlu1 %1553  ;;  %v2533_v15 = vpop.f32.mrb[82].mxu0  ;;  %vm1631_vm9 = vcmp.eq.s32.totalorder %v5762_v57, %v1557_v37 }
 0x205   :  { %v7741_v2 = vadd.f32 %v2533_v15, %v7461_v60  ;;  %v2398_v12 = vpop.f32.mrb[54].mxu1  ;;  %v2535_v48 = vpop.f32.mrb[83].mxu0  ;;  %vm1629_vm8 = vcmp.eq.s32.totalorder %v5762_v57, %v7738_v20  ;;  %vm1628_vm10 = vcmp.eq.s32.totalorder %v5757_v56, %v7738_v20 }
 0x206   :  { %v7746_v40 = vadd.f32 %v2398_v12, %v7490_v47  ;;  %v2400_v50 = vpop.f32.mrb[55].mxu1  ;;  %4704 = vmatmul.mubr.msk.f32.gmra.mrb[160].mxu1 %vm1620_vm11, %v5280_v59  ;;  %vm1630_vm11 = vcmp.eq.s32.totalorder %v5757_v56, %v1557_v37 }
 0x207   :  { %4705 = vmatprep.mubr.msk.f32.mxu1 %vm1623_vm12, %v5280_v59  ;;  %v7803_v4 = vpop.permute.xlu0 %1565 }
 0x208   :  { %v2538_v60 = vpop.f32.mrb[84].mxu0 }
 0x209   :  { %v7755_v26 = vadd.f32 %v2538_v60, %v7474_v31  ;;  %v1269_v19 = vpop.permute.xlu1 %1268  ;;  %v2403_v39 = vpop.f32.mrb[56].mxu1 }
 0x20a   :  { %vm1342_vm15 = vcmp.eq.s32.totalorder %v5757_v56, %v1269_v19  ;;  %vm1343_vm0 = vcmp.eq.s32.totalorder %v5762_v57, %v1269_v19  ;;  %v7762_v47 = vadd.f32 %v2403_v39, %v7505_v51  ;;  %v2540_v58 = vpop.f32.mrb[85].mxu0  ;;  %v2405_v11 = vpop.f32.mrb[57].mxu1  ;;  %4706 = vmatmul.mubr.msk.f32.gmra.mrb[162].mxu1 %vm1622_vm14, %v5280_v59 }
 0x20b   :  { %4649 = vmatprep.mubr.msk.f32.mxu0 %vm1343_vm0, %v5280_v59  ;;  %4707 = vmatprep.mubr.msk.f32.mxu1 %vm1625_vm13, %v5280_v59 }
 0x20c   :  { %v2543_v31 = vpop.f32.mrb[86].mxu0  ;;  %4650 = vmatmul.mubr.msk.f32.gmra.mrb[170].mxu0 %vm1342_vm15, %v5280_v59 }
 0x20d   :  { %v7771_v22 = vadd.f32 %v2543_v31, %v7494_v54  ;;  %v1272_v28 = vpop.permute.xlu1 %1271  ;;  %v2408_v51 = vpop.f32.mrb[58].mxu1 }
 0x20e   :  { %vm1344_vm4 = vcmp.eq.s32.totalorder %v5757_v56, %v1272_v28  ;;  %vm1345_vm5 = vcmp.eq.s32.totalorder %v5762_v57, %v1272_v28  ;;  %v7779_v46 = vadd.f32 %v2408_v51, %v7523_v32  ;;  %v2545_v49 = vpop.f32.mrb[87].mxu0  ;;  %v2410_v16 = vpop.f32.mrb[59].mxu1  ;;  %4708 = vmatmul.mubr.msk.f32.gmra.mrb[164].mxu1 %vm1624_vm1, %v5280_v59 }
 0x20f   :  { %4651 = vmatprep.mubr.msk.f32.mxu0 %vm1345_vm5, %v5280_v59  ;;  %4709 = vmatprep.mubr.msk.f32.mxu1 %vm1627_vm3, %v5280_v59  ;;  %vm1637_vm3 = vcmp.eq.s32.totalorder %v5762_v57, %v7803_v4 }
 0x210   :  { %v2548_v54 = vpop.f32.mrb[88].mxu0  ;;  %4652 = vmatmul.mubr.msk.f32.gmra.mrb[172].mxu0 %vm1344_vm4, %v5280_v59 }
 0x211   :  { %v7788_v6 = vadd.f32 %v2548_v54, %v7510_v13  ;;  %v2413_v32 = vpop.f32.mrb[60].mxu1  ;;  %v2550_v8 = vpop.f32.mrb[89].mxu0  ;;  %4653 = vmatprep.mubr.msk.f32.mxu0 %vm1347_vm2, %v5280_v59 }
 0x212   :  { %v7797_v17 = vadd.f32 %v2413_v32, %v7539_v1  ;;  %v1560_v5 = vpop.permute.xlu1 %1559  ;;  %v2415_v30 = vpop.f32.mrb[61].mxu1  ;;  %4710 = vmatmul.mubr.msk.f32.gmra.mrb[166].mxu1 %vm1626_vm6, %v5280_v59 }
 0x213   :  { %4711 = vmatprep.mubr.msk.f32.mxu1 %vm1629_vm8, %v5280_v59  ;;  %vm1633_vm12 = vcmp.eq.s32.totalorder %v5762_v57, %v1560_v5  ;;  %vm1632_vm15 = vcmp.eq.s32.totalorder %v5757_v56, %v1560_v5 }
 0x214   :  { %v2553_v13 = vpop.f32.mrb[90].mxu0  ;;  %4654 = vmatmul.mubr.msk.f32.gmra.mrb[174].mxu0 %vm1346_vm7, %v5280_v59  ;;  %vm1636_vm7 = vcmp.eq.s32.totalorder %v5757_v56, %v7803_v4 }
 0x215   :  { %v7808_v36 = vadd.f32 %v2553_v13, %v7529_v14  ;;  %v2418_v1 = vpop.f32.mrb[62].mxu1  ;;  %v2555_v63 = vpop.f32.mrb[91].mxu0 }
 0x216   :  { %v7811_v42 = vadd.f32 %v2418_v1, %v7548_v27  ;;  %v1563_v61 = vpop.permute.xlu1 %1562  ;;  %v2420_v15 = vpop.f32.mrb[63].mxu1  ;;  %4712 = vmatmul.mubr.msk.f32.gmra.mrb[168].mxu1 %vm1628_vm10, %v5280_v59 }
 0x217   :  { %4713 = vmatprep.mubr.msk.f32.mxu1 %vm1631_vm9, %v5280_v59  ;;  %vm1635_vm0 = vcmp.eq.s32.totalorder %v5762_v57, %v1563_v61  ;;  %vm1634_vm5 = vcmp.eq.s32.totalorder %v5757_v56, %v1563_v61 }
 0x218   :  { %v2558_v12 = vpop.f32.mrb[92].mxu0 }
 0x219   :  { %v7817_v48 = vadd.f32 %v2558_v12, %v7542_v21  ;;  %v2560_v20 = vpop.f32.mrb[93].mxu0  ;;  %v2713_v14 = vpop.f32.mrb[64].mxu1 }
 0x21a   :  { %v7821_v50 = vadd.f32 %v2713_v14, %v7575_v62  ;;  %4714 = vmatmul.mubr.msk.f32.gmra.mrb[170].mxu1 %vm1630_vm11, %v5280_v59  ;;  %v2715_v27 = vpop.f32.mrb[65].mxu1  ;;  %v1284_v21 = vpop.permute.xlu0 %1283 }
 0x21b   :  { %v1278_v60 = vpop.permute.xlu1 %1277  ;;  %4715 = vmatprep.mubr.msk.f32.mxu1 %vm1633_vm12, %v5280_v59  ;;  %vm1353_vm4 = vcmp.eq.s32.totalorder %v5762_v57, %v1284_v21  ;;  %vm1352_vm6 = vcmp.eq.s32.totalorder %v5757_v56, %v1284_v21 }
 0x21c   :  { %vm1348_vm13 = vcmp.eq.s32.totalorder %v5757_v56, %v1278_v60  ;;  %vm1349_vm14 = vcmp.eq.s32.totalorder %v5762_v57, %v1278_v60  ;;  %v2563_v38 = vpop.f32.mrb[94].mxu0 }
 0x21d   :  { %v7829_v19 = vadd.f32 %v2563_v38, %v7553_v33  ;;  %v2565_v39 = vpop.f32.mrb[95].mxu0  ;;  %v2718_v62 = vpop.f32.mrb[66].mxu1  ;;  %4655 = vmatprep.mubr.msk.f32.mxu0 %vm1349_vm14, %v5280_v59 }
 0x21e   :  { %v7834_v58 = vadd.f32 %v2718_v62, %v7590_v52  ;;  %v2720_v11 = vpop.f32.mrb[67].mxu1  ;;  %4656 = vmatmul.mubr.msk.f32.gmra.mrb[176].mxu0 %vm1348_vm13, %v5280_v59  ;;  %4716 = vmatmul.mubr.msk.f32.gmra.mrb[172].mxu1 %vm1632_vm15, %v5280_v59  ;;  %v1575_v30 = vpop.permute.xlu0 %1574 }
 0x21f   :  { %v1281_v31 = vpop.permute.xlu1 %1280  ;;  %4717 = vmatprep.mubr.msk.f32.mxu1 %vm1635_vm0, %v5280_v59  ;;  %vm1643_vm11 = vcmp.eq.s32.totalorder %v5762_v57, %v1575_v30  ;;  %vm1642_vm15 = vcmp.eq.s32.totalorder %v5757_v56, %v1575_v30 }
 0x220   :  { %vm1350_vm1 = vcmp.eq.s32.totalorder %v5757_v56, %v1281_v31  ;;  %vm1351_vm2 = vcmp.eq.s32.totalorder %v5762_v57, %v1281_v31  ;;  %v2568_v33 = vpop.f32.mrb[96].mxu0 }
 0x221   :  { %v7846_v52 = vadd.f32 %v2568_v33, %v7569_v35  ;;  %v2570_v28 = vpop.f32.mrb[97].mxu0  ;;  %v2723_v51 = vpop.f32.mrb[68].mxu1  ;;  %4657 = vmatprep.mubr.msk.f32.mxu0 %vm1351_vm2, %v5280_v59 }
 0x222   :  { %v7850_v49 = vadd.f32 %v2723_v51, %v7605_v55  ;;  %v2725_v16 = vpop.f32.mrb[69].mxu1  ;;  %4658 = vmatmul.mubr.msk.f32.gmra.mrb[178].mxu0 %vm1350_vm1, %v5280_v59  ;;  %4718 = vmatmul.mubr.msk.f32.gmra.mrb[174].mxu1 %vm1634_vm5, %v5280_v59 }
 0x223   :  { %4719 = vmatprep.mubr.msk.f32.mxu1 %vm1637_vm3, %v5280_v59  ;;  %4659 = vmatprep.mubr.msk.f32.mxu0 %vm1353_vm4, %v5280_v59 }
 0x224   :  { %v1569_v35 = vpop.permute.xlu1 %1568  ;;  %v2573_v54 = vpop.f32.mrb[98].mxu0 }
 0x225   :  { %vm1639_vm8 = vcmp.eq.s32.totalorder %v5762_v57, %v1569_v35  ;;  %v7861_v55 = vadd.f32 %v2573_v54, %v7587_v41  ;;  %v2575_v37 = vpop.f32.mrb[99].mxu0  ;;  %v2728_v32 = vpop.f32.mrb[70].mxu1  ;;  %vm1638_vm9 = vcmp.eq.s32.totalorder %v5757_v56, %v1569_v35 }
 0x226   :  { %v7864_v8 = vadd.f32 %v2728_v32, %v7624_v7  ;;  %v2730_v5 = vpop.f32.mrb[71].mxu1  ;;  %4660 = vmatmul.mubr.msk.f32.gmra.mrb[180].mxu0 %vm1352_vm6, %v5280_v59  ;;  %4720 = vmatmul.mubr.msk.f32.gmra.mrb[176].mxu1 %vm1636_vm7, %v5280_v59 }
 0x227   :  { %4721 = vmatprep.mubr.msk.f32.mxu1 %vm1639_vm8, %v5280_v59 }
 0x228   :  { %v1572_v13 = vpop.permute.xlu1 %1571  ;;  %v2578_v4 = vpop.f32.mrb[100].mxu0 }
 0x229   :  { %vm1641_vm10 = vcmp.eq.s32.totalorder %v5762_v57, %v1572_v13  ;;  %v7872_v41 = vadd.f32 %v2578_v4, %v7600_v0  ;;  %v2580_v1 = vpop.f32.mrb[101].mxu0  ;;  %v2733_v7 = vpop.f32.mrb[72].mxu1  ;;  %vm1640_vm12 = vcmp.eq.s32.totalorder %v5757_v56, %v1572_v13 }
 0x22a   :  { %v7875_v63 = vadd.f32 %v2733_v7, %v7662_v3  ;;  %v2735_v61 = vpop.f32.mrb[73].mxu1  ;;  %4722 = vmatmul.mubr.msk.f32.gmra.mrb[178].mxu1 %vm1638_vm9, %v5280_v59 }
 0x22b   :  { %4723 = vmatprep.mubr.msk.f32.mxu1 %vm1641_vm10, %v5280_v59 }
 0x22c   :  { %v2583_v15 = vpop.f32.mrb[102].mxu0 }
 0x22d   :  { %v7882_v12 = vadd.f32 %v2583_v15, %v7614_v18  ;;  %v1287_v0 = vpop.permute.xlu1 %1286  ;;  %v2585_v20 = vpop.f32.mrb[103].mxu0 }
 0x22e   :  { %vm1354_vm13 = vcmp.eq.s32.totalorder %v5757_v56, %v1287_v0  ;;  %vm1355_vm14 = vcmp.eq.s32.totalorder %v5762_v57, %v1287_v0  ;;  %v2738_v3 = vpop.f32.mrb[74].mxu1  ;;  %4724 = vmatmul.mubr.msk.f32.gmra.mrb[180].mxu1 %vm1640_vm12, %v5280_v59  ;;  %v1293_v18 = vpop.permute.xlu0 %1292 }
 0x22f   :  { %v7888_v14 = vadd.f32 %v2738_v3, %v7676_v44  ;;  %v2740_v27 = vpop.f32.mrb[75].mxu1  ;;  %4661 = vmatprep.mubr.msk.f32.mxu0 %vm1355_vm14, %v5280_v59  ;;  %4725 = vmatprep.mubr.msk.f32.mxu1 %vm1643_vm11, %v5280_v59  ;;  %vm1359_vm2 = vcmp.eq.s32.totalorder %v5762_v57, %v1293_v18  ;;  %vm1358_vm3 = vcmp.eq.s32.totalorder %v5757_v56, %v1293_v18 }
 0x230   :  { %v2588_v60 = vpop.f32.mrb[104].mxu0  ;;  %4662 = vmatmul.mubr.msk.f32.gmra.mrb[182].mxu0 %vm1354_vm13, %v5280_v59 }
 0x231   :  { %v7895_v38 = vadd.f32 %v2588_v60, %v7630_v9  ;;  %v1290_v21 = vpop.permute.xlu1 %1289  ;;  %v2590_v39 = vpop.f32.mrb[105].mxu0 }
 0x232   :  { %vm1356_vm0 = vcmp.eq.s32.totalorder %v5757_v56, %v1290_v21  ;;  %vm1357_vm1 = vcmp.eq.s32.totalorder %v5762_v57, %v1290_v21  ;;  %v2743_v44 = vpop.f32.mrb[76].mxu1  ;;  %4726 = vmatmul.mubr.msk.f32.gmra.mrb[182].mxu1 %vm1642_vm15, %v5280_v59 }
 0x233   :  { %v7902_v62 = vadd.f32 %v2743_v44, %v7688_v24  ;;  %v2745_v11 = vpop.f32.mrb[77].mxu1  ;;  %4663 = vmatprep.mubr.msk.f32.mxu0 %vm1357_vm1, %v5280_v59 }
 0x234   :  { %v2593_v31 = vpop.f32.mrb[106].mxu0  ;;  %4664 = vmatmul.mubr.msk.f32.gmra.mrb[184].mxu0 %vm1356_vm0, %v5280_v59  ;;  %vm3930_vm0 = vcmask 261120  }
 0x235   :  { %v7907_v9 = vadd.f32 %v2593_v31, %v7645_v34  ;;  %v2595_v33 = vpop.f32.mrb[107].mxu0  ;;  %v2748_v28 = vpop.f32.mrb[78].mxu1  ;;  %4665 = vmatprep.mubr.msk.f32.mxu0 %vm1359_vm2, %v5280_v59 }
 0x236   :  { %v7912_v51 = vadd.f32 %v2748_v28, %v7707_v43  ;;  %v1578_v24 = vpop.permute.xlu1 %1577  ;;  %v2750_v16 = vpop.f32.mrb[79].mxu1 }
 0x237   :  { %vm1644_vm4 = vcmp.eq.s32.totalorder %v5757_v56, %v1578_v24  ;;  %vm1645_vm5 = vcmp.eq.s32.totalorder %v5762_v57, %v1578_v24  ;;  %v1584_v34 = vpop.permute.xlu0 %1583 }
 0x238   :  { %v2598_v35 = vpop.f32.mrb[108].mxu0  ;;  %4666 = vmatmul.mubr.msk.f32.gmra.mrb[186].mxu0 %vm1358_vm3, %v5280_v59  ;;  %4727 = vmatprep.mubr.msk.f32.mxu1 %vm1645_vm5, %v5280_v59  ;;  %vm1649_vm8 = vcmp.eq.s32.totalorder %v5762_v57, %v1584_v34  ;;  %vm1648_vm9 = vcmp.eq.s32.totalorder %v5757_v56, %v1584_v34 }
 0x239   :  { %v7919_v54 = vadd.f32 %v2598_v35, %v7667_v45  ;;  %v2600_v37 = vpop.f32.mrb[109].mxu0  ;;  %v2753_v32 = vpop.f32.mrb[80].mxu1  ;;  %4728 = vmatmul.mubr.msk.f32.gmra.mrb[184].mxu1 %vm1644_vm4, %v5280_v59 }
 0x23a   :  { %v7923_v43 = vadd.f32 %v2753_v32, %v7728_v53  ;;  %v1581_v5 = vpop.permute.xlu1 %1580  ;;  %v2755_v30 = vpop.f32.mrb[81].mxu1 }
 0x23b   :  { %vm1646_vm6 = vcmp.eq.s32.totalorder %v5757_v56, %v1581_v5  ;;  %vm1647_vm7 = vcmp.eq.s32.totalorder %v5762_v57, %v1581_v5 }
 0x23c   :  { %v2603_v13 = vpop.f32.mrb[110].mxu0  ;;  %4729 = vmatprep.mubr.msk.f32.mxu1 %vm1647_vm7, %v5280_v59 }
 0x23d   :  { %v7930_v45 = vadd.f32 %v2603_v13, %v7679_v29  ;;  %v2605_v4 = vpop.f32.mrb[111].mxu0  ;;  %v2758_v1 = vpop.f32.mrb[82].mxu1  ;;  %4730 = vmatmul.mubr.msk.f32.gmra.mrb[186].mxu1 %vm1646_vm6, %v5280_v59 }
 0x23e   :  { %v7934_v53 = vadd.f32 %v2758_v1, %v7741_v2  ;;  %v2760_v7 = vpop.f32.mrb[83].mxu1  ;;  %4731 = vmatprep.mubr.msk.f32.mxu1 %vm1649_vm8, %v5280_v59 }
 0x23f   :  { %v1296_v61 = vpop.permute.xlu1 %1295 }
 0x240   :  { %vm1360_vm10 = vcmp.eq.s32.totalorder %v5757_v56, %v1296_v61  ;;  %vm1361_vm11 = vcmp.eq.s32.totalorder %v5762_v57, %v1296_v61  ;;  %v2608_v15 = vpop.f32.mrb[112].mxu0 }
 0x241   :  { %v7941_v29 = vadd.f32 %v2608_v15, %v7694_v10  ;;  %v2610_v0 = vpop.f32.mrb[113].mxu0  ;;  %v2763_v20 = vpop.f32.mrb[84].mxu1  ;;  %4667 = vmatprep.mubr.msk.f32.mxu0 %vm1361_vm11, %v5280_v59  ;;  %4732 = vmatmul.mubr.msk.f32.gmra.mrb[188].mxu1 %vm1648_vm9, %v5280_v59 }
 0x242   :  { %v7946_v2 = vadd.f32 %v2763_v20, %v7755_v26  ;;  %v2765_v3 = vpop.f32.mrb[85].mxu1  ;;  %4668 = vmatmul.mubr.msk.f32.gmra.mrb[188].mxu0 %vm1360_vm10, %v5280_v59 }
 0x243   :  { %v1299_v27 = vpop.permute.xlu1 %1298 }
 0x244   :  { %vm1362_vm12 = vcmp.eq.s32.totalorder %v5757_v56, %v1299_v27  ;;  %vm1363_vm13 = vcmp.eq.s32.totalorder %v5762_v57, %v1299_v27  ;;  %v2613_v18 = vpop.f32.mrb[114].mxu0 }
 0x245   :  { %v7952_v10 = vadd.f32 %v2613_v18, %v7713_v23  ;;  %v2615_v60 = vpop.f32.mrb[115].mxu0  ;;  %v2768_v21 = vpop.f32.mrb[86].mxu1  ;;  %4669 = vmatprep.mubr.msk.f32.mxu0 %vm1363_vm13, %v5280_v59 }
 0x246   :  { %v7956_v39 = vadd.f32 %v2768_v21, %v7771_v22  ;;  %v2770_v26 = vpop.f32.mrb[87].mxu1  ;;  %4670 = vmatmul.mubr.msk.f32.gmra.mrb[190].mxu0 %vm1362_vm12, %v5280_v59 }
 0x248   :  { %v1587_v44 = vpop.permute.xlu1 %1586  ;;  %v2618_v11 = vpop.f32.mrb[116].mxu0 }
 0x249   :  { %vm1650_vm14 = vcmp.eq.s32.totalorder %v5757_v56, %v1587_v44  ;;  %vm1651_vm15 = vcmp.eq.s32.totalorder %v5762_v57, %v1587_v44  ;;  %v7962_v31 = vadd.f32 %v2618_v11, %v7731_v25  ;;  %v2620_v23 = vpop.f32.mrb[117].mxu0  ;;  %v2773_v33 = vpop.f32.mrb[88].mxu1 }
 0x24a   :  { %v7965_v28 = vadd.f32 %v2773_v33, %v7788_v6  ;;  %v2775_v24 = vpop.f32.mrb[89].mxu1  ;;  %4733 = vmatprep.mubr.msk.f32.mxu1 %vm1651_vm15, %v5280_v59 }
 0x24b   :  { %4734 = vmatmul.mubr.msk.f32.gmra.mrb[190].mxu1 %vm1650_vm14, %v5280_v59 }
 0x24c   :  { %v2623_v22 = vpop.f32.mrb[118].mxu0 }
 0x24d   :  { %v7970_v16 = vadd.f32 %v2623_v22, %v7746_v40  ;;  %v2625_v56 = vpop.f32.mrb[119].mxu0  ;;  %v2778_v35 = vpop.f32.mrb[90].mxu1 }
 0x24e   :  { %v7973_v57 = vadd.f32 %v2778_v35, %v7808_v36  ;;  %v2780_v25 = vpop.f32.mrb[91].mxu1 }
 0x250   :  { %v2628_v34 = vpop.f32.mrb[120].mxu0 }
 0x251   :  { %v7976_v37 = vadd.f32 %v2628_v34, %v7762_v47  ;;  %v2630_v6 = vpop.f32.mrb[121].mxu0  ;;  %v2783_v32 = vpop.f32.mrb[92].mxu1 }
 0x252   :  { %v7979_v5 = vadd.f32 %v2783_v32, %v7817_v48  ;;  %v2785_v59 = vpop.f32.mrb[93].mxu1 }
 0x254   :  { %v2633_v30 = vpop.f32.mrb[122].mxu0 }
 0x255   :  { %v7982_v40 = vadd.f32 %v2633_v30, %v7779_v46  ;;  %v2635_v13 = vpop.f32.mrb[123].mxu0  ;;  %v2788_v4 = vpop.f32.mrb[94].mxu1 }
 0x256   :  { %v7985_v36 = vadd.f32 %v2788_v4, %v7829_v19  ;;  %v2790_v1 = vpop.f32.mrb[95].mxu1 }
 0x258   :  { %v2638_v7 = vpop.f32.mrb[124].mxu0 }
 0x259   :  { %v7988_v47 = vadd.f32 %v2638_v7, %v7797_v17  ;;  %v2640_v61 = vpop.f32.mrb[125].mxu0  ;;  %v2793_v15 = vpop.f32.mrb[96].mxu1 }
 0x25a   :  { %v7991_v48 = vadd.f32 %v2793_v15, %v7846_v52  ;;  %v2795_v0 = vpop.f32.mrb[97].mxu1 }
 0x25c   :  { %v2643_v20 = vpop.f32.mrb[126].mxu0 }
 0x25d   :  { %v7994_v46 = vadd.f32 %v2643_v20, %v7811_v42  ;;  %v2645_v3 = vpop.f32.mrb[127].mxu0  ;;  %v2798_v27 = vpop.f32.mrb[98].mxu1 }
 0x25e   :  { %v7997_v19 = vadd.f32 %v2798_v27, %v7861_v55  ;;  %v2800_v18 = vpop.f32.mrb[99].mxu1 }
 0x261   :  { %v2803_v60 = vpop.f32.mrb[100].mxu1 }
 0x262   :  { %v8000_v17 = vadd.f32 %v2803_v60, %v7872_v41  ;;  %v2938_v21 = vpop.f32.mrb[128].mxu0  ;;  %v2805_v26 = vpop.f32.mrb[101].mxu1 }
 0x263   :  { %v8003_v52 = vadd.f32 %v2938_v21, %v7821_v50  ;;  %v2940_v44 = vpop.f32.mrb[129].mxu0 }
 0x265   :  { %v2808_v11 = vpop.f32.mrb[102].mxu1 }
 0x266   :  { %v8006_v42 = vadd.f32 %v2808_v11, %v7882_v12  ;;  %v2943_v23 = vpop.f32.mrb[130].mxu0  ;;  %v2810_v33 = vpop.f32.mrb[103].mxu1 }
 0x267   :  { %v8009_v55 = vadd.f32 %v2943_v23, %v7834_v58  ;;  %v2945_v24 = vpop.f32.mrb[131].mxu0 }
 0x269   :  { %v2813_v22 = vpop.f32.mrb[104].mxu1 }
 0x26a   :  { %v8012_v41 = vadd.f32 %v2813_v22, %v7895_v38  ;;  %v2948_v56 = vpop.f32.mrb[132].mxu0  ;;  %v2815_v35 = vpop.f32.mrb[105].mxu1 }
 0x26b   :  { %v8015_v50 = vadd.f32 %v2948_v56, %v7850_v49  ;;  %v2950_v25 = vpop.f32.mrb[133].mxu0 }
 0x26d   :  { %v2818_v34 = vpop.f32.mrb[106].mxu1 }
 0x26e   :  { %v8018_v12 = vadd.f32 %v2818_v34, %v7907_v9  ;;  %v2820_v6 = vpop.f32.mrb[107].mxu1 }
 0x271   :  { %v2823_v32 = vpop.f32.mrb[108].mxu1 }
 0x272   :  { %v8021_v58 = vadd.f32 %v2823_v32, %v7919_v54  ;;  %v2825_v59 = vpop.f32.mrb[109].mxu1 }
 0x273   :  { %v2953_v30 = vpop.f32.mrb[134].mxu0 }
 0x274   :  { %v8024_v38 = vadd.f32 %v2953_v30, %v7864_v8  ;;  %v2955_v13 = vpop.f32.mrb[135].mxu0 }
 0x275   :  { %v2828_v4 = vpop.f32.mrb[110].mxu1 }
 0x276   :  { %v8027_v49 = vadd.f32 %v2828_v4, %v7930_v45  ;;  %v2830_v1 = vpop.f32.mrb[111].mxu1 }
 0x277   :  { %v2958_v7 = vpop.f32.mrb[136].mxu0 }
 0x278   :  { %v8030_v9 = vadd.f32 %v2958_v7, %v7875_v63  ;;  %v2960_v61 = vpop.f32.mrb[137].mxu0 }
 0x279   :  { %v2833_v15 = vpop.f32.mrb[112].mxu1 }
 0x27a   :  { %v8033_v54 = vadd.f32 %v2833_v15, %v7941_v29  ;;  %v2835_v0 = vpop.f32.mrb[113].mxu1 }
 0x27b   :  { %v2963_v20 = vpop.f32.mrb[138].mxu0 }
 0x27c   :  { %v8036_v8 = vadd.f32 %v2963_v20, %v7888_v14  ;;  %v2965_v3 = vpop.f32.mrb[139].mxu0 }
 0x27d   :  { %v2838_v27 = vpop.f32.mrb[114].mxu1 }
 0x27e   :  { %v8039_v45 = vadd.f32 %v2838_v27, %v7952_v10  ;;  %v2840_v18 = vpop.f32.mrb[115].mxu1 }
 0x281   :  { %v2843_v60 = vpop.f32.mrb[116].mxu1 }
 0x282   :  { %v8042_v63 = vadd.f32 %v2843_v60, %v7962_v31  ;;  %v2845_v21 = vpop.f32.mrb[117].mxu1 }
 0x285   :  { %v2848_v26 = vpop.f32.mrb[118].mxu1 }
 0x286   :  { %v8045_v29 = vadd.f32 %v2848_v26, %v7970_v16  ;;  %v2968_v44 = vpop.f32.mrb[140].mxu0  ;;  %v2850_v11 = vpop.f32.mrb[119].mxu1 }
 0x287   :  { %v8048_v14 = vadd.f32 %v2968_v44, %v7902_v62  ;;  %v2970_v23 = vpop.f32.mrb[141].mxu0 }
 0x289   :  { %v2853_v33 = vpop.f32.mrb[120].mxu1 }
 0x28a   :  { %v8051_v10 = vadd.f32 %v2853_v33, %v7976_v37  ;;  %v2973_v24 = vpop.f32.mrb[142].mxu0  ;;  %v2855_v22 = vpop.f32.mrb[121].mxu1 }
 0x28b   :  { %v8054_v31 = vadd.f32 %v2973_v24, %v7912_v51  ;;  %v2975_v56 = vpop.f32.mrb[143].mxu0 }
 0x28c   :  { %v3325_v56 = vld [vmem:[%s8682_s0 + $0x18] sm:$0xff] }
 0x28d   :  { %v2858_v35 = vpop.f32.mrb[122].mxu1 }
 0x28e   :  { %v8057_v16 = vadd.f32 %v2858_v35, %v7982_v40  ;;  %v2978_v25 = vpop.f32.mrb[144].mxu0  ;;  %v2860_v34 = vpop.f32.mrb[123].mxu1 }
 0x28f   :  { %v8060_v62 = vadd.f32 %v2978_v25, %v7923_v43  ;;  %v2980_v6 = vpop.f32.mrb[145].mxu0  ;;  %v3322_v43 = vld [vmem:[%s8682_s0] sm:$0xff] }
 0x291   :  { %v2863_v32 = vpop.f32.mrb[124].mxu1 }
 0x292   :  { %v8063_v37 = vadd.f32 %v2863_v32, %v7988_v47  ;;  %v2865_v59 = vpop.f32.mrb[125].mxu1 }
 0x295   :  { %v2868_v30 = vpop.f32.mrb[126].mxu1 }
 0x296   :  { %v8066_v51 = vadd.f32 %v2868_v30, %v7994_v46  ;;  %v2870_v13 = vpop.f32.mrb[127].mxu1 }
 0x297   :  { %v2983_v4 = vpop.f32.mrb[146].mxu0 }
 0x298   :  { %v8069_v40 = vadd.f32 %v2983_v4, %v7934_v53  ;;  %v2985_v1 = vpop.f32.mrb[147].mxu0  ;;  %v3323_v53 = vld [vmem:[%s8682_s0 + $0x8] sm:$0xff] }
 0x299   :  { %v3163_v7 = vpop.f32.mrb[128].mxu1 }
 0x29a   :  { %v3164_v61 = vadd.f32 %v3163_v7, %v8003_v52  ;;  %v3165_v47 = vpop.f32.mrb[129].mxu1 }
 0x29b   :  { %v2988_v15 = vpop.f32.mrb[148].mxu0 }
 0x29c   :  { %v3354_v0 = vadd.f32 %v3322_v43, %v3164_v61  ;;  %v8076_v20 = vadd.f32 %v2988_v15, %v7946_v2  ;;  %v2990_v46 = vpop.f32.mrb[149].mxu0  ;;  %v3324_v2 = vld [vmem:[%s8682_s0 + $0x10] sm:$0xff]  ;;  %v3327_v15 = vld [vmem:[%s8682_s0 + $0x28] sm:$0xff] }
 0x29d   :  { %v3168_v3 = vpop.f32.mrb[130].mxu1 }
 0x29e   :  { %v4735_v27 = vmul.f32 -1.442695, %v3354_v0  ;;  %v3169_v18 = vadd.f32 %v3168_v3, %v8009_v55  ;;  %v3170_v60 = vpop.f32.mrb[131].mxu1 }
 0x29f   :  { %v2993_v21 = vpop.f32.mrb[150].mxu0 }
 0x2a0   :  { %5109 = vpow2.f32 %v4735_v27  ;;  %v3355_v26 = vadd.f32 %v3323_v53, %v3169_v18  ;;  %v8083_v52 = vadd.f32 %v2993_v21, %v7956_v39  ;;  %v2995_v44 = vpop.f32.mrb[151].mxu0 }
 0x2a1   :  { %v3173_v11 = vpop.f32.mrb[132].mxu1 }
 0x2a2   :  { %v4736_v23 = vmul.f32 -1.442695, %v3355_v26  ;;  %v3174_v33 = vadd.f32 %v3173_v11, %v8015_v50  ;;  %v3175_v24 = vpop.f32.mrb[133].mxu1  ;;  %v3326_v50 = vld [vmem:[%s8682_s0 + $0x20] sm:$0xff]  ;;  %v3328_v26 = vld [vmem:[%s8682_s0 + $0x30] sm:$0xff] }
 0x2a4   :  { %5111 = vpow2.f32 %v4736_v23  ;;  %v3356_v22 = vadd.f32 %v3324_v2, %v3174_v33 }
 0x2a5   :  { %v3178_v55 = vpop.f32.mrb[134].mxu1 }
 0x2a6   :  { %v4737_v35 = vmul.f32 -1.442695, %v3356_v22  ;;  %v3179_v39 = vadd.f32 %v3178_v55, %v8024_v38  ;;  %v3180_v25 = vpop.f32.mrb[135].mxu1  ;;  %v3329_v55 = vld [vmem:[%s8682_s0 + $0x38] sm:$0xff] }
 0x2a8   :  { %5113 = vpow2.f32 %v4737_v35  ;;  %v3357_v34 = vadd.f32 %v3325_v56, %v3179_v39 }
 0x2a9   :  { %v2998_v6 = vpop.f32.mrb[152].mxu0  ;;  %v3183_v32 = vpop.f32.mrb[136].mxu1 }
 0x2aa   :  { %v5110_v59 = vpop.eup %5109  ;;  %v4738_v30 = vmul.f32 -1.442695, %v3357_v34  ;;  %v8097_v13 = vadd.f32 %v2998_v6, %v7965_v28  ;;  %v3184_v4 = vadd.f32 %v3183_v32, %v8030_v9  ;;  %v3000_v1 = vpop.f32.mrb[153].mxu0  ;;  %v3330_v32 = vld [vmem:[%s8682_s0 + $0x40] sm:$0xff] }
 0x2ab   :  { %v3185_v7 = vpop.f32.mrb[137].mxu1  ;;  %v3482_v43 = vadd.f32 1.0, %v5110_v59 }
 0x2ac   :  { %5115 = vpow2.f32 %v4738_v30  ;;  %v3358_v38 = vadd.f32 %v3326_v50, %v3184_v4 }
 0x2ad   :  { %5117 = vrcp.f32 %v3482_v43  ;;  %v3003_v61 = vpop.f32.mrb[154].mxu0  ;;  %v3188_v47 = vpop.f32.mrb[138].mxu1 }
 0x2ae   :  { %v5112_v0 = vpop.eup %5111  ;;  %v4739_v46 = vmul.f32 -1.442695, %v3358_v38  ;;  %v8104_v3 = vadd.f32 %v3003_v61, %v7973_v57  ;;  %v3189_v28 = vadd.f32 %v3188_v47, %v8036_v8  ;;  %v3005_v9 = vpop.f32.mrb[155].mxu0  ;;  %v3331_v47 = vld [vmem:[%s8682_s0 + $0x48] sm:$0xff] }
 0x2af   :  { %v3190_v53 = vpop.f32.mrb[139].mxu1  ;;  %v3483_v27 = vadd.f32 1.0, %v5112_v0 }
 0x2b0   :  { %5119 = vpow2.f32 %v4739_v46  ;;  %v3359_v18 = vadd.f32 %v3327_v15, %v3189_v28 }
 0x2b1   :  { %5121 = vrcp.f32 %v3483_v27  ;;  %v3008_v60 = vpop.f32.mrb[156].mxu0  ;;  %v3193_v21 = vpop.f32.mrb[140].mxu1 }
 0x2b2   :  { %v5114_v44 = vpop.eup %5113  ;;  %v4740_v11 = vmul.f32 -1.442695, %v3359_v18  ;;  %v8111_v2 = vadd.f32 %v3008_v60, %v7979_v5  ;;  %v3194_v57 = vadd.f32 %v3193_v21, %v8048_v14  ;;  %v3195_v8 = vpop.f32.mrb[141].mxu1 }
 0x2b3   :  { %v3010_v23 = vpop.f32.mrb[157].mxu0  ;;  %v3484_v33 = vadd.f32 1.0, %v5114_v44 }
 0x2b4   :  { %5123 = vpow2.f32 %v4740_v11  ;;  %v3360_v24 = vadd.f32 %v3328_v26, %v3194_v57 }
 0x2b5   :  { %5125 = vrcp.f32 %v3484_v33  ;;  %v3198_v22 = vpop.f32.mrb[142].mxu1 }
 0x2b6   :  { %v5116_v56 = vpop.eup %5115  ;;  %v4741_v35 = vmul.f32 -1.442695, %v3360_v24  ;;  %v3199_v39 = vadd.f32 %v3198_v22, %v8054_v31  ;;  %v3200_v25 = vpop.f32.mrb[143].mxu1 }
 0x2b7   :  { %v8118_v5 = vpop.eup %5117  ;;  %v3485_v34 = vadd.f32 1.0, %v5116_v56 }
 0x2b8   :  { %5127 = vpow2.f32 %v4741_v35  ;;  %v3361_v14 = vadd.f32 %v3329_v55, %v3199_v39  ;;  %3610 = vrot.lane.b32.xlu0 %v8118_v5, %s5284_s9 }
 0x2b9   :  { %5129 = vrcp.f32 %v3485_v34  ;;  %v3203_v6 = vpop.f32.mrb[144].mxu1 }
 0x2ba   :  { %v5120_v50 = vpop.eup %5119  ;;  %v4742_v59 = vmul.f32 -1.442695, %v3361_v14  ;;  %v3204_v31 = vadd.f32 %v3203_v6, %v8060_v62  ;;  %v3205_v30 = vpop.f32.mrb[145].mxu1 }
 0x2bb   :  { %v8126_v4 = vpop.eup %5121  ;;  %v3486_v1 = vadd.f32 1.0, %v5120_v50  ;;  %v3013_v7 = vpop.f32.mrb[158].mxu0 }
 0x2bc   :  { %5131 = vpow2.f32 %v4742_v59  ;;  %v3362_v43 = vadd.f32 %v3330_v32, %v3204_v31  ;;  %v8129_v38 = vadd.f32 %v3013_v7, %v7985_v36  ;;  %v3015_v61 = vpop.f32.mrb[159].mxu0  ;;  %3612 = vrot.lane.b32.xlu1 %v8126_v4, %s5284_s9  ;;  %3738 = vrot.lane.b32.xlu0 %v8118_v5, %s5285_s12  ;;  %v3334_v32 = vld [vmem:[%s8682_s0 + $0x60] sm:$0xff] }
 0x2bd   :  { %5133 = vrcp.f32 %v3486_v1  ;;  %v3208_v62 = vpop.f32.mrb[146].mxu1 }
 0x2be   :  { %v5124_v15 = vpop.eup %5123  ;;  %v4743_v0 = vmul.f32 -1.442695, %v3362_v43  ;;  %v3209_v46 = vadd.f32 %v3208_v62, %v8069_v40  ;;  %v3210_v36 = vpop.f32.mrb[147].mxu1  ;;  %v3332_v40 = vld [vmem:[%s8682_s0 + $0x50] sm:$0xff]  ;;  %v3335_v62 = vld [vmem:[%s8682_s0 + $0x68] sm:$0xff] }
 0x2bf   :  { %v8139_v28 = vpop.eup %5125  ;;  %v3487_v9 = vadd.f32 1.0, %v5124_v15  ;;  %v3018_v53 = vpop.f32.mrb[160].mxu0 }
 0x2c0   :  { %5135 = vpow2.f32 %v4743_v0  ;;  %v3363_v27 = vadd.f32 %v3331_v47, %v3209_v46  ;;  %v8142_v18 = vadd.f32 %v3018_v53, %v7991_v48  ;;  %v3020_v60 = vpop.f32.mrb[161].mxu0  ;;  %3740 = vrot.lane.b32.xlu1 %v8126_v4, %s5285_s12  ;;  %3614 = vrot.lane.b32.xlu0 %v8139_v28, %s5284_s9 }
 0x2c1   :  { %5137 = vrcp.f32 %v3487_v9  ;;  %v3213_v21 = vpop.f32.mrb[148].mxu1 }
 0x2c2   :  { %v5128_v26 = vpop.eup %5127  ;;  %v4744_v44 = vmul.f32 -1.442695, %v3363_v27  ;;  %v3214_v11 = vadd.f32 %v3213_v21, %v8076_v20  ;;  %v3215_v57 = vpop.f32.mrb[149].mxu1  ;;  %v3333_v20 = vld [vmem:[%s8682_s0 + $0x58] sm:$0xff] }
 0x2c3   :  { %v8152_v48 = vpop.eup %5129  ;;  %v3488_v8 = vadd.f32 1.0, %v5128_v26  ;;  %v3023_v23 = vpop.f32.mrb[162].mxu0 }
 0x2c4   :  { %5139 = vpow2.f32 %v4744_v44  ;;  %v3364_v33 = vadd.f32 %v3332_v40, %v3214_v11  ;;  %v8155_v24 = vadd.f32 %v3023_v23, %v7997_v19  ;;  %3616 = vrot.lane.b32.xlu1 %v8152_v48, %s5284_s9  ;;  %3742 = vrot.lane.b32.xlu0 %v8139_v28, %s5285_s12  ;;  %v3025_v22 = vpop.f32.mrb[163].mxu0 }
 0x2c5   :  { %5141 = vrcp.f32 %v3488_v8  ;;  %v3218_v55 = vpop.f32.mrb[150].mxu1 }
 0x2c6   :  { %v5132_v56 = vpop.eup %5131  ;;  %v4745_v35 = vmul.f32 -1.442695, %v3364_v33  ;;  %v3219_v39 = vadd.f32 %v3218_v55, %v8083_v52  ;;  %v3220_v25 = vpop.f32.mrb[151].mxu1 }
 0x2c7   :  { %v8165_v19 = vpop.eup %5133  ;;  %v3489_v34 = vadd.f32 1.0, %v5132_v56 }
 0x2c8   :  { %5143 = vpow2.f32 %v4745_v35  ;;  %v3365_v14 = vadd.f32 %v3333_v20, %v3219_v39  ;;  %3744 = vrot.lane.b32.xlu1 %v8152_v48, %s5285_s12  ;;  %3618 = vrot.lane.b32.xlu0 %v8165_v19, %s5284_s9 }
 0x2c9   :  { %5145 = vrcp.f32 %v3489_v34  ;;  %v3223_v6 = vpop.f32.mrb[152].mxu1 }
 0x2ca   :  { %v5136_v50 = vpop.eup %5135  ;;  %v4746_v52 = vmul.f32 -1.442695, %v3365_v14  ;;  %v3224_v59 = vadd.f32 %v3223_v6, %v8097_v13  ;;  %v3225_v31 = vpop.f32.mrb[153].mxu1 }
 0x2cb   :  { %v8175_v30 = vpop.eup %5137  ;;  %v3490_v1 = vadd.f32 1.0, %v5136_v50 }
 0x2cc   :  { %5147 = vpow2.f32 %v4746_v52  ;;  %v3366_v7 = vadd.f32 %v3334_v32, %v3224_v59  ;;  %3620 = vrot.lane.b32.xlu1 %v8175_v30, %s5284_s9  ;;  %3746 = vrot.lane.b32.xlu0 %v8165_v19, %s5285_s12 }
 0x2cd   :  { %5149 = vrcp.f32 %v3490_v1  ;;  %v3028_v43 = vpop.f32.mrb[164].mxu0  ;;  %v3228_v61 = vpop.f32.mrb[154].mxu1 }
 0x2ce   :  { %v5140_v13 = vpop.eup %5139  ;;  %v4747_v47 = vmul.f32 -1.442695, %v3366_v7  ;;  %v8185_v15 = vadd.f32 %v3028_v43, %v8000_v17  ;;  %v3229_v0 = vadd.f32 %v3228_v61, %v8104_v3  ;;  %v3030_v46 = vpop.f32.mrb[165].mxu0  ;;  %v3336_v17 = vld [vmem:[%s8682_s0 + $0x70] sm:$0xff]  ;;  %v3339_v61 = vld [vmem:[%s8682_s0 + $0x88] sm:$0xff] }
 0x2cf   :  { %v3230_v36 = vpop.f32.mrb[155].mxu1  ;;  %v8188_v9 = vpop.eup %5141  ;;  %v3491_v53 = vadd.f32 1.0, %v5140_v13 }
 0x2d0   :  { %5151 = vpow2.f32 %v4747_v47  ;;  %v3367_v27 = vadd.f32 %v3335_v62, %v3229_v0  ;;  %3748 = vrot.lane.b32.xlu1 %v8175_v30, %s5285_s12  ;;  %3622 = vrot.lane.b32.xlu0 %v8188_v9, %s5284_s9 }
 0x2d1   :  { %5153 = vrcp.f32 %v3491_v53  ;;  %v3033_v60 = vpop.f32.mrb[166].mxu0  ;;  %v3233_v21 = vpop.f32.mrb[156].mxu1 }
 0x2d2   :  { %v5144_v3 = vpop.eup %5143  ;;  %v4748_v40 = vmul.f32 -1.442695, %v3367_v27  ;;  %v8198_v26 = vadd.f32 %v3033_v60, %v8006_v42  ;;  %v3234_v44 = vadd.f32 %v3233_v21, %v8111_v2  ;;  %v3035_v11 = vpop.f32.mrb[167].mxu0  ;;  %v3337_v42 = vld [vmem:[%s8682_s0 + $0x78] sm:$0xff] }
 0x2d3   :  { %v3235_v57 = vpop.f32.mrb[157].mxu1  ;;  %v8201_v8 = vpop.eup %5145  ;;  %v3492_v23 = vadd.f32 1.0, %v5144_v3 }
 0x2d4   :  { %5155 = vpow2.f32 %v4748_v40  ;;  %v3368_v33 = vadd.f32 %v3336_v17, %v3234_v44  ;;  %3624 = vrot.lane.b32.xlu1 %v8201_v8, %s5284_s9  ;;  %3750 = vrot.lane.b32.xlu0 %v8188_v9, %s5285_s12 }
 0x2d5   :  { %5157 = vrcp.f32 %v3492_v23  ;;  %v3038_v22 = vpop.f32.mrb[168].mxu0  ;;  %v3238_v55 = vpop.f32.mrb[158].mxu1 }
 0x2d6   :  { %v5148_v2 = vpop.eup %5147  ;;  %v4749_v20 = vmul.f32 -1.442695, %v3368_v33  ;;  %v8211_v56 = vadd.f32 %v3038_v22, %v8012_v41  ;;  %v3239_v35 = vadd.f32 %v3238_v55, %v8129_v38  ;;  %v3240_v39 = vpop.f32.mrb[159].mxu1  ;;  %v3338_v41 = vld [vmem:[%s8682_s0 + $0x80] sm:$0xff] }
 0x2d7   :  { %v3040_v25 = vpop.f32.mrb[169].mxu0  ;;  %v8214_v34 = vpop.eup %5149  ;;  %v3493_v14 = vadd.f32 1.0, %v5148_v2 }
 0x2d8   :  { %5159 = vpow2.f32 %v4749_v20  ;;  %v3369_v6 = vadd.f32 %v3337_v42, %v3239_v35  ;;  %3752 = vrot.lane.b32.xlu1 %v8201_v8, %s5285_s12  ;;  %3626 = vrot.lane.b32.xlu0 %v8214_v34, %s5284_s9 }
 0x2d9   :  { %5161 = vrcp.f32 %v3493_v14  ;;  %v3243_v32 = vpop.f32.mrb[160].mxu1 }
 0x2da   :  { %v5152_v38 = vpop.eup %5151  ;;  %v4750_v50 = vmul.f32 -1.442695, %v3369_v6  ;;  %v3244_v52 = vadd.f32 %v3243_v32, %v8142_v18  ;;  %v3245_v59 = vpop.f32.mrb[161].mxu1 }
 0x2db   :  { %v8224_v31 = vpop.eup %5153  ;;  %v3494_v1 = vadd.f32 1.0, %v5152_v38 }
 0x2dc   :  { %5163 = vpow2.f32 %v4750_v50  ;;  %v3370_v7 = vadd.f32 %v3338_v41, %v3244_v52  ;;  %3628 = vrot.lane.b32.xlu1 %v8224_v31, %s5284_s9  ;;  %3754 = vrot.lane.b32.xlu0 %v8214_v34, %s5285_s12 }
 0x2dd   :  { %5165 = vrcp.f32 %v3494_v1  ;;  %v3248_v43 = vpop.f32.mrb[162].mxu1 }
 0x2de   :  { %v5156_v62 = vpop.eup %5155  ;;  %v4751_v18 = vmul.f32 -1.442695, %v3370_v7  ;;  %v3249_v13 = vadd.f32 %v3248_v43, %v8155_v24  ;;  %v3250_v47 = vpop.f32.mrb[163].mxu1  ;;  %v3340_v24 = vld [vmem:[%s8682_s0 + $0x90] sm:$0xff] }
 0x2df   :  { %v8234_v0 = vpop.eup %5157  ;;  %v3495_v46 = vadd.f32 1.0, %v5156_v62  ;;  %v3043_v36 = vpop.f32.mrb[170].mxu0 }
 0x2e0   :  { %5167 = vpow2.f32 %v4751_v18  ;;  %v3371_v53 = vadd.f32 %v3339_v61, %v3249_v13  ;;  %v3044_v27 = vadd.f32 %v3043_v36, %v8018_v12  ;;  %v3045_v60 = vpop.f32.mrb[171].mxu0  ;;  %3756 = vrot.lane.b32.xlu1 %v8224_v31, %s5285_s12  ;;  %3630 = vrot.lane.b32.xlu0 %v8234_v0, %s5284_s9  ;;  %v3343_v61 = vld [vmem:[%s8682_s0 + $0xa8] sm:$0xff] }
 0x2e1   :  { %5169 = vrcp.f32 %v3495_v46  ;;  %v3253_v21 = vpop.f32.mrb[164].mxu1 }
 0x2e2   :  { %v5160_v17 = vpop.eup %5159  ;;  %v4752_v3 = vmul.f32 -1.442695, %v3371_v53  ;;  %v3254_v40 = vadd.f32 %v3253_v21, %v8185_v15  ;;  %v3255_v44 = vpop.f32.mrb[165].mxu1  ;;  %v3341_v15 = vld [vmem:[%s8682_s0 + $0x98] sm:$0xff]  ;;  %v3344_v21 = vld [vmem:[%s8682_s0 + $0xb0] sm:$0xff] }
 0x2e3   :  { %v8245_v11 = vpop.eup %5161  ;;  %v3496_v12 = vadd.f32 1.0, %v5160_v17  ;;  %v3048_v57 = vpop.f32.mrb[172].mxu0 }
 0x2e4   :  { %5171 = vpow2.f32 %v4752_v3  ;;  %v3372_v23 = vadd.f32 %v3340_v24, %v3254_v40  ;;  %v3049_v33 = vadd.f32 %v3048_v57, %v8021_v58  ;;  %v3050_v22 = vpop.f32.mrb[173].mxu0  ;;  %3632 = vrot.lane.b32.xlu1 %v8245_v11, %s5284_s9  ;;  %3758 = vrot.lane.b32.xlu0 %v8234_v0, %s5285_s12 }
 0x2e5   :  { %5173 = vrcp.f32 %v3496_v12  ;;  %v3258_v55 = vpop.f32.mrb[166].mxu1 }
 0x2e6   :  { %v5164_v42 = vpop.eup %5163  ;;  %v4753_v2 = vmul.f32 -1.442695, %v3372_v23  ;;  %v3259_v20 = vadd.f32 %v3258_v55, %v8198_v26  ;;  %v3260_v35 = vpop.f32.mrb[167].mxu1  ;;  %v3342_v26 = vld [vmem:[%s8682_s0 + $0xa0] sm:$0xff] }
 0x2e7   :  { %v8256_v39 = vpop.eup %5165  ;;  %v3497_v58 = vadd.f32 1.0, %v5164_v42  ;;  %v3053_v25 = vpop.f32.mrb[174].mxu0 }
 0x2e8   :  { %5175 = vpow2.f32 %v4753_v2  ;;  %v3373_v14 = vadd.f32 %v3341_v15, %v3259_v20  ;;  %v3054_v6 = vadd.f32 %v3053_v25, %v8027_v49  ;;  %3760 = vrot.lane.b32.xlu1 %v8245_v11, %s5285_s12  ;;  %3634 = vrot.lane.b32.xlu0 %v8256_v39, %s5284_s9  ;;  %v3055_v32 = vpop.f32.mrb[175].mxu0 }
 0x2e9   :  { %5177 = vrcp.f32 %v3497_v58  ;;  %v3263_v41 = vpop.f32.mrb[168].mxu1 }
 0x2ea   :  { %v5168_v38 = vpop.eup %5167  ;;  %v4754_v50 = vmul.f32 -1.442695, %v3373_v14  ;;  %v3264_v52 = vadd.f32 %v3263_v41, %v8211_v56  ;;  %v3265_v59 = vpop.f32.mrb[169].mxu1 }
 0x2eb   :  { %v8267_v1 = vpop.eup %5169  ;;  %v3498_v49 = vadd.f32 1.0, %v5168_v38 }
 0x2ec   :  { %5179 = vpow2.f32 %v4754_v50  ;;  %v3374_v7 = vadd.f32 %v3342_v26, %v3264_v52  ;;  %3636 = vrot.lane.b32.xlu1 %v8267_v1, %s5284_s9  ;;  %3762 = vrot.lane.b32.xlu0 %v8256_v39, %s5285_s12 }
 0x2ed   :  { %5181 = vrcp.f32 %v3498_v49  ;;  %v3268_v43 = vpop.f32.mrb[170].mxu1 }
 0x2ee   :  { %v5172_v62 = vpop.eup %5171  ;;  %v4755_v56 = vmul.f32 -1.442695, %v3374_v7  ;;  %v3269_v18 = vadd.f32 %v3268_v43, %v3044_v27  ;;  %v3270_v13 = vpop.f32.mrb[171].mxu1 }
 0x2ef   :  { %v8276_v47 = vpop.eup %5173  ;;  %v3499_v46 = vadd.f32 1.0, %v5172_v62 }
 0x2f0   :  { %5183 = vpow2.f32 %v4755_v56  ;;  %v3375_v36 = vadd.f32 %v3343_v61, %v3269_v18  ;;  %3764 = vrot.lane.b32.xlu1 %v8267_v1, %s5285_s12  ;;  %3638 = vrot.lane.b32.xlu0 %v8276_v47, %s5284_s9 }
 0x2f1   :  { %5185 = vrcp.f32 %v3499_v46  ;;  %v3058_v53 = vpop.f32.mrb[176].mxu0  ;;  %v3273_v60 = vpop.f32.mrb[172].mxu1 }
 0x2f2   :  { %v5176_v27 = vpop.eup %5175  ;;  %v4756_v24 = vmul.f32 -1.442695, %v3375_v36  ;;  %v3059_v17 = vadd.f32 %v3058_v53, %v8033_v54  ;;  %v3274_v3 = vadd.f32 %v3273_v60, %v3049_v33  ;;  %v3060_v40 = vpop.f32.mrb[177].mxu0  ;;  %v3345_v54 = vld [vmem:[%s8682_s0 + $0xb8] sm:$0xff] }
 0x2f3   :  { %v3275_v44 = vpop.f32.mrb[173].mxu1  ;;  %v8286_v12 = vpop.eup %5177  ;;  %v3500_v57 = vadd.f32 1.0, %v5176_v27 }
 0x2f4   :  { %5187 = vpow2.f32 %v4756_v24  ;;  %v3376_v23 = vadd.f32 %v3344_v21, %v3274_v3  ;;  %3640 = vrot.lane.b32.xlu1 %v8286_v12, %s5284_s9  ;;  %3766 = vrot.lane.b32.xlu0 %v8276_v47, %s5285_s12  ;;  %v3348_v21 = vld [vmem:[%s8682_s0 + $0xd0] sm:$0xff] }
 0x2f5   :  { %5189 = vrcp.f32 %v3500_v57  ;;  %v3063_v22 = vpop.f32.mrb[178].mxu0  ;;  %v3278_v55 = vpop.f32.mrb[174].mxu1 }
 0x2f6   :  { %v5180_v33 = vpop.eup %5179  ;;  %v4757_v15 = vmul.f32 -1.442695, %v3376_v23  ;;  %v3064_v42 = vadd.f32 %v3063_v22, %v8039_v45  ;;  %v3279_v2 = vadd.f32 %v3278_v55, %v3054_v6  ;;  %v3065_v20 = vpop.f32.mrb[179].mxu0  ;;  %v3346_v45 = vld [vmem:[%s8682_s0 + $0xc0] sm:$0xff] }
 0x2f7   :  { %v3280_v35 = vpop.f32.mrb[175].mxu1  ;;  %v8296_v58 = vpop.eup %5181  ;;  %v3501_v25 = vadd.f32 1.0, %v5180_v33  ;;  %v3349_v33 = vld [vmem:[%s8682_s0 + $0xd8] sm:$0xff] }
 0x2f8   :  { %5191 = vpow2.f32 %v4757_v15  ;;  %v3377_v14 = vadd.f32 %v3345_v54, %v3279_v2  ;;  %3768 = vrot.lane.b32.xlu1 %v8286_v12, %s5285_s12  ;;  %3642 = vrot.lane.b32.xlu0 %v8296_v58, %s5284_s9 }
 0x2f9   :  { %5193 = vrcp.f32 %v3501_v25  ;;  %v3068_v32 = vpop.f32.mrb[180].mxu0  ;;  %v3283_v41 = vpop.f32.mrb[176].mxu1 }
 0x2fa   :  { %v5184_v6 = vpop.eup %5183  ;;  %v4758_v26 = vmul.f32 -1.442695, %v3377_v14  ;;  %v3069_v38 = vadd.f32 %v3068_v32, %v8042_v63  ;;  %v3284_v50 = vadd.f32 %v3283_v41, %v3059_v17  ;;  %v3285_v52 = vpop.f32.mrb[177].mxu1  ;;  %v3347_v63 = vld [vmem:[%s8682_s0 + $0xc8] sm:$0xff] }
 0x2fb   :  { %v3070_v59 = vpop.f32.mrb[181].mxu0  ;;  %v8306_v49 = vpop.eup %5185  ;;  %v3502_v7 = vadd.f32 1.0, %v5184_v6 }
 0x2fc   :  { %5195 = vpow2.f32 %v4758_v26  ;;  %v3378_v43 = vadd.f32 %v3346_v45, %v3284_v50  ;;  %3644 = vrot.lane.b32.xlu1 %v8306_v49, %s5284_s9  ;;  %3770 = vrot.lane.b32.xlu0 %v8296_v58, %s5285_s12 }
 0x2fd   :  { %5197 = vrcp.f32 %v3502_v7  ;;  %v3288_v61 = vpop.f32.mrb[178].mxu1 }
 0x2fe   :  { %v5188_v62 = vpop.eup %5187  ;;  %v4759_v56 = vmul.f32 -1.442695, %v3378_v43  ;;  %v3289_v18 = vadd.f32 %v3288_v61, %v3064_v42  ;;  %v3290_v13 = vpop.f32.mrb[179].mxu1 }
 0x2ff   :  { %v8315_v46 = vpop.eup %5189  ;;  %v3503_v36 = vadd.f32 1.0, %v5188_v62  ;;  %v3351_v13 = vld [vmem:[%s8682_s0 + $0xe8] sm:$0xff] }
 0x300   :  { %5199 = vpow2.f32 %v4759_v56  ;;  %v3379_v53 = vadd.f32 %v3347_v63, %v3289_v18  ;;  %3772 = vrot.lane.b32.xlu1 %v8306_v49, %s5285_s12  ;;  %3646 = vrot.lane.b32.xlu0 %v8315_v46, %s5284_s9 }
 0x301   :  { %5201 = vrcp.f32 %v3503_v36  ;;  %v3293_v60 = vpop.f32.mrb[180].mxu1 }
 0x302   :  { %v5192_v27 = vpop.eup %5191  ;;  %v4760_v24 = vmul.f32 -1.442695, %v3379_v53  ;;  %v3294_v17 = vadd.f32 %v3293_v60, %v3069_v38  ;;  %v3295_v3 = vpop.f32.mrb[181].mxu1 }
 0x303   :  { %v8324_v40 = vpop.eup %5193  ;;  %v3504_v44 = vadd.f32 1.0, %v5192_v27  ;;  %v3073_v57 = vpop.f32.mrb[182].mxu0 }
 0x304   :  { %5203 = vpow2.f32 %v4760_v24  ;;  %v3380_v23 = vadd.f32 %v3348_v21, %v3294_v17  ;;  %v3074_v22 = vadd.f32 %v3073_v57, %v8045_v29  ;;  %v3075_v55 = vpop.f32.mrb[183].mxu0  ;;  %3648 = vrot.lane.b32.xlu1 %v8324_v40, %s5284_s9  ;;  %3774 = vrot.lane.b32.xlu0 %v8315_v46, %s5285_s12 }
 0x305   :  { %5205 = vrcp.f32 %v3504_v44  ;;  %v3298_v54 = vpop.f32.mrb[182].mxu1 }
 0x306   :  { %v5196_v15 = vpop.eup %5195  ;;  %v4761_v42 = vmul.f32 -1.442695, %v3380_v23  ;;  %v3299_v2 = vadd.f32 %v3298_v54, %v3074_v22  ;;  %v3300_v20 = vpop.f32.mrb[183].mxu1 }
 0x307   :  { %v8334_v35 = vpop.eup %5197  ;;  %v3505_v29 = vadd.f32 1.0, %v5196_v15  ;;  %v3078_v25 = vpop.f32.mrb[184].mxu0 }
 0x308   :  { %5207 = vpow2.f32 %v4761_v42  ;;  %v3381_v14 = vadd.f32 %v3349_v33, %v3299_v2  ;;  %v3079_v32 = vadd.f32 %v3078_v25, %v8051_v10  ;;  %v3080_v41 = vpop.f32.mrb[185].mxu0  ;;  %3776 = vrot.lane.b32.xlu1 %v8324_v40, %s5285_s12  ;;  %3650 = vrot.lane.b32.xlu0 %v8334_v35, %s5284_s9  ;;  %v3350_v10 = vld [vmem:[%s8682_s0 + $0xe0] sm:$0xff]  ;;  %v3352_v42 = vld [vmem:[%s8682_s0 + $0xf0] sm:$0xff] }
 0x309   :  { %5209 = vrcp.f32 %v3505_v29 }
 0x30a   :  { %v5200_v45 = vpop.eup %5199  ;;  %v4762_v6 = vmul.f32 -1.442695, %v3381_v14 }
 0x30b   :  { %v8341_v26 = vpop.eup %5201  ;;  %v3506_v38 = vadd.f32 1.0, %v5200_v45  ;;  %v3083_v50 = vpop.f32.mrb[186].mxu0 }
 0x30c   :  { %5211 = vpow2.f32 %v4762_v6  ;;  %v3084_v52 = vadd.f32 %v3083_v50, %v8057_v16  ;;  %v3303_v59 = vpop.f32.mrb[184].mxu1  ;;  %3652 = vrot.lane.b32.xlu1 %v8341_v26, %s5284_s9  ;;  %3778 = vrot.lane.b32.xlu0 %v8334_v35, %s5285_s12  ;;  %v3085_v7 = vpop.f32.mrb[187].mxu0 }
 0x30d   :  { %5213 = vrcp.f32 %v3506_v38  ;;  %v3304_v43 = vadd.f32 %v3303_v59, %v3079_v32  ;;  %v3305_v61 = vpop.f32.mrb[185].mxu1  ;;  %v3353_v38 = vld [vmem:[%s8682_s0 + $0xf8] sm:$0xff] }
 0x30e   :  { %v5204_v63 = vpop.eup %5203 }
 0x30f   :  { %v8351_v62 = vpop.eup %5205  ;;  %v3507_v56 = vadd.f32 1.0, %v5204_v63  ;;  %v3382_v16 = vadd.f32 %v3350_v10, %v3304_v43 }
 0x310   :  { %v3308_v18 = vpop.f32.mrb[186].mxu1  ;;  %3780 = vrot.lane.b32.xlu1 %v8341_v26, %s5285_s12  ;;  %3654 = vrot.lane.b32.xlu0 %v8351_v62, %s5284_s9 }
 0x311   :  { %5215 = vrcp.f32 %v3507_v56  ;;  %v4763_v36 = vmul.f32 -1.442695, %v3382_v16  ;;  %v3309_v53 = vadd.f32 %v3308_v18, %v3084_v52  ;;  %v3310_v60 = vpop.f32.mrb[187].mxu1 }
 0x312   :  { %v5208_v21 = vpop.eup %5207  ;;  %v3866_v60 = vld [vmem:[%s8683_s3] sm:$0xff] }
 0x313   :  { %v8360_v27 = vpop.eup %5209  ;;  %v3508_v24 = vadd.f32 1.0, %v5208_v21  ;;  %5217 = vpow2.f32 %v4763_v36  ;;  %v3383_v17 = vadd.f32 %v3351_v13, %v3309_v53 }
 0x314   :  { %3656 = vrot.lane.b32.xlu1 %v8360_v27, %s5284_s9  ;;  %3782 = vrot.lane.b32.xlu0 %v8351_v62, %s5285_s12  ;;  %v3313_v3 = vpop.f32.mrb[188].mxu1 }
 0x315   :  { %5219 = vrcp.f32 %v3508_v24  ;;  %v4764_v44 = vmul.f32 -1.442695, %v3383_v17  ;;  %v3088_v57 = vpop.f32.mrb[188].mxu0  ;;  %v3315_v23 = vpop.f32.mrb[189].mxu1 }
 0x316   :  { %v5212_v22 = vpop.eup %5211  ;;  %v3089_v55 = vadd.f32 %v3088_v57, %v8063_v37  ;;  %v3090_v54 = vpop.f32.mrb[189].mxu0  ;;  %v3867_v57 = vld [vmem:[%s8683_s3 + $0x8] sm:$0xff] }
 0x317   :  { %v8367_v33 = vpop.eup %5213  ;;  %v3509_v15 = vadd.f32 1.0, %v5212_v22  ;;  %5221 = vpow2.f32 %v4764_v44 }
 0x318   :  { %v3314_v2 = vadd.f32 %v3313_v3, %v3089_v55  ;;  %3784 = vrot.lane.b32.xlu1 %v8360_v27, %s5285_s12  ;;  %3658 = vrot.lane.b32.xlu0 %v8367_v33, %s5284_s9 }
 0x319   :  { %5223 = vrcp.f32 %v3509_v15  ;;  %v3093_v20 = vpop.f32.mrb[190].mxu0 }
 0x31a   :  { %v3384_v29 = vadd.f32 %v3352_v42, %v3314_v2  ;;  %v3094_v37 = vadd.f32 %v3093_v20, %v8066_v51  ;;  %v3095_v25 = vpop.f32.mrb[191].mxu0  ;;  %v3868_v2 = vld [vmem:[%s8683_s3 + $0x10] sm:$0xff] }
 0x31b   :  { %v8377_v14 = vpop.eup %5215 }
 0x31c   :  { %v4765_v32 = vmul.f32 -1.442695, %v3384_v29  ;;  %3660 = vrot.lane.b32.xlu1 %v8377_v14, %s5284_s9  ;;  %3786 = vrot.lane.b32.xlu0 %v8367_v33, %s5285_s12 }
 0x31d   :  { %v5218_v41 = vpop.eup %5217 }
 0x31e   :  { %v3510_v45 = vadd.f32 1.0, %v5218_v41  ;;  %5225 = vpow2.f32 %v4765_v32  ;;  %v3318_v6 = vpop.f32.mrb[190].mxu1 }
 0x31f   :  { %v8386_v50 = vpop.eup %5219  ;;  %v3319_v51 = vadd.f32 %v3318_v6, %v3094_v37  ;;  %v3320_v52 = vpop.f32.mrb[191].mxu1 }
 0x320   :  { %5227 = vrcp.f32 %v3510_v45  ;;  %3788 = vrot.lane.b32.xlu1 %v8377_v14, %s5285_s12  ;;  %3662 = vrot.lane.b32.xlu0 %v8386_v50, %s5284_s9  ;;  %v3870_v52 = vld [vmem:[%s8683_s3 + $0x20] sm:$0xff] }
 0x321   :  { %v5222_v59 = vpop.eup %5221  ;;  %v3385_v10 = vadd.f32 %v3353_v38, %v3319_v51 }
 0x322   :  { %v3511_v7 = vadd.f32 1.0, %v5222_v59 }
 0x323   :  { %v8392_v43 = vpop.eup %5223  ;;  %v4766_v61 = vmul.f32 -1.442695, %v3385_v10 }
 0x324   :  { %5229 = vrcp.f32 %v3511_v7  ;;  %3664 = vrot.lane.b32.xlu1 %v8392_v43, %s5284_s9  ;;  %3790 = vrot.lane.b32.xlu0 %v8386_v50, %s5285_s12 }
 0x325   :  { %5231 = vpow2.f32 %v4766_v61 }
 0x328   :  { %v5226_v63 = vpop.eup %5225  ;;  %3792 = vrot.lane.b32.xlu1 %v8392_v43, %s5285_s12 }
 0x329   :  { %v3512_v56 = vadd.f32 1.0, %v5226_v63 }
 0x32a   :  { %v8400_v16 = vpop.eup %5227  ;;  %v3611_v18 = vpop.permute.xlu0 %3610 }
 0x32b   :  { %5233 = vrcp.f32 %v3512_v56  ;;  %3666 = vrot.lane.b32.xlu0 %v8400_v16, %s5284_s9  ;;  %v3706_v13 = vadd.f32 %v8118_v5, %v3611_v18 }
 0x32e   :  { %v8405_v36 = vpop.eup %5229  ;;  %v3613_v53 = vpop.permute.xlu1 %3612 }
 0x32f   :  { %v3739_v21 = vpop.permute.xlu0 %3738  ;;  %v5232_v24 = vpop.eup %5231  ;;  %3668 = vrot.lane.b32.xlu1 %v8405_v36, %s5284_s9  ;;  %3794 = vrot.lane.b32.xlu0 %v8400_v16, %s5285_s12  ;;  %v3707_v5 = vadd.f32 %v8126_v4, %v3613_v53 }
 0x330   :  { %v3834_v17 = vadd.f32 %v3739_v21, %v3706_v13  ;;  %v3513_v3 = vadd.f32 1.0, %v5232_v24 }
 0x332   :  { %v3898_v44 = vmul.f32 %v3866_v60, %v3834_v17  ;;  %5235 = vrcp.f32 %v3513_v3  ;;  %v3741_v23 = vpop.permute.xlu1 %3740  ;;  %v3872_v60 = vld [vmem:[%s8683_s3 + $0x30] sm:$0xff] }
 0x333   :  { %v3615_v22 = vpop.permute.xlu0 %3614  ;;  %v3835_v55 = vadd.f32 %v3741_v23, %v3707_v5  ;;  %3796 = vrot.lane.b32.xlu1 %v8405_v36, %s5285_s12  ;;  %v3873_v5 = vld [vmem:[%s8683_s3 + $0x38] sm:$0xff] }
 0x334   :  { %3931 = vst.msk [vmem:[%s8684_s4] sm:$0xff] %vm3930_vm0, %v3898_v44  ;;  %v3708_v15 = vadd.f32 %v8139_v28, %v3615_v22  ;;  %v3869_v28 = vld [vmem:[%s8683_s3 + $0x18] sm:$0xff] }
 0x335   :  { %v8424_v54 = vpop.eup %5233  ;;  %v3899_v4 = vmul.f32 %v3867_v57, %v3835_v55 }
 0x336   :  { %v3617_v42 = vpop.permute.xlu1 %3616  ;;  %3670 = vrot.lane.b32.xlu0 %v8424_v54, %s5284_s9 }
 0x337   :  { %v3743_v20 = vpop.permute.xlu0 %3742  ;;  %3932 = vst.msk [vmem:[%s8684_s4 + $0x8] sm:$0xff] %vm3930_vm0, %v3899_v4  ;;  %v3709_v37 = vadd.f32 %v8152_v48, %v3617_v42 }
 0x338   :  { %v3836_v29 = vadd.f32 %v3743_v20, %v3708_v15  ;;  %v3875_v20 = vld [vmem:[%s8683_s3 + $0x48] sm:$0xff] }
 0x33a   :  { %v3900_v25 = vmul.f32 %v3868_v2, %v3836_v29  ;;  %v3745_v32 = vpop.permute.xlu1 %3744  ;;  %3798 = vrot.lane.b32.xlu0 %v8424_v54, %s5285_s12 }
 0x33b   :  { %v3619_v41 = vpop.permute.xlu0 %3618  ;;  %v3837_v45 = vadd.f32 %v3745_v32, %v3709_v37 }
 0x33c   :  { %3933 = vst.msk [vmem:[%s8684_s4 + $0x10] sm:$0xff] %vm3930_vm0, %v3900_v25  ;;  %v8446_v6 = vpop.eup %5235  ;;  %v3710_v48 = vadd.f32 %v8165_v19, %v3619_v41  ;;  %v3871_v19 = vld [vmem:[%s8683_s3 + $0x28] sm:$0xff] }
 0x33d   :  { %v3901_v38 = vmul.f32 %v3869_v28, %v3837_v45  ;;  %3672 = vrot.lane.b32.xlu1 %v8446_v6, %s5284_s9 }
 0x33e   :  { %v3621_v51 = vpop.permute.xlu1 %3620 }
 0x33f   :  { %v3747_v59 = vpop.permute.xlu0 %3746  ;;  %3934 = vst.msk [vmem:[%s8684_s4 + $0x18] sm:$0xff] %vm3930_vm0, %v3901_v38  ;;  %v3711_v7 = vadd.f32 %v8175_v30, %v3621_v51  ;;  %v3877_v51 = vld [vmem:[%s8683_s3 + $0x58] sm:$0xff] }
 0x340   :  { %v3838_v10 = vadd.f32 %v3747_v59, %v3710_v48 }
 0x341   :  { %3800 = vrot.lane.b32.xlu1 %v8446_v6, %s5285_s12 }
 0x342   :  { %v3902_v61 = vmul.f32 %v3870_v52, %v3838_v10  ;;  %v3749_v63 = vpop.permute.xlu1 %3748 }
 0x343   :  { %v3623_v56 = vpop.permute.xlu0 %3622  ;;  %v3839_v18 = vadd.f32 %v3749_v63, %v3711_v7 }
 0x344   :  { %3935 = vst.msk [vmem:[%s8684_s4 + $0x20] sm:$0xff] %vm3930_vm0, %v3902_v61  ;;  %v3712_v53 = vadd.f32 %v8188_v9, %v3623_v56 }
 0x345   :  { %v3903_v13 = vmul.f32 %v3871_v19, %v3839_v18 }
 0x346   :  { %v3625_v30 = vpop.permute.xlu1 %3624 }
 0x347   :  { %v3751_v21 = vpop.permute.xlu0 %3750  ;;  %3936 = vst.msk [vmem:[%s8684_s4 + $0x28] sm:$0xff] %vm3930_vm0, %v3903_v13  ;;  %v3713_v17 = vadd.f32 %v8201_v8, %v3625_v30  ;;  %v3874_v8 = vld [vmem:[%s8683_s3 + $0x40] sm:$0xff]  ;;  %v3879_v13 = vld [vmem:[%s8683_s3 + $0x68] sm:$0xff] }
 0x348   :  { %v3840_v24 = vadd.f32 %v3751_v21, %v3712_v53 }
 0x34a   :  { %v3904_v3 = vmul.f32 %v3872_v60, %v3840_v24  ;;  %v3753_v9 = vpop.permute.xlu1 %3752 }
 0x34b   :  { %v3627_v44 = vpop.permute.xlu0 %3626  ;;  %v3841_v57 = vadd.f32 %v3753_v9, %v3713_v17 }
 0x34c   :  { %3937 = vst.msk [vmem:[%s8684_s4 + $0x30] sm:$0xff] %vm3930_vm0, %v3904_v3  ;;  %v3714_v22 = vadd.f32 %v8214_v34, %v3627_v44  ;;  %v3881_v44 = vld [vmem:[%s8683_s3 + $0x78] sm:$0xff] }
 0x34d   :  { %v3905_v23 = vmul.f32 %v3873_v5, %v3841_v57 }
 0x34e   :  { %v3629_v55 = vpop.permute.xlu1 %3628 }
 0x34f   :  { %v3755_v4 = vpop.permute.xlu0 %3754  ;;  %3938 = vst.msk [vmem:[%s8684_s4 + $0x38] sm:$0xff] %vm3930_vm0, %v3905_v23  ;;  %v3715_v42 = vadd.f32 %v8224_v31, %v3629_v55  ;;  %v3876_v31 = vld [vmem:[%s8683_s3 + $0x50] sm:$0xff] }
 0x350   :  { %v3842_v15 = vadd.f32 %v3755_v4, %v3714_v22 }
 0x352   :  { %v3906_v2 = vmul.f32 %v3874_v8, %v3842_v15  ;;  %v3757_v34 = vpop.permute.xlu1 %3756 }
 0x353   :  { %v3631_v29 = vpop.permute.xlu0 %3630  ;;  %v3843_v37 = vadd.f32 %v3757_v34, %v3715_v42 }
 0x354   :  { %3939 = vst.msk [vmem:[%s8684_s4 + $0x40] sm:$0xff] %vm3930_vm0, %v3906_v2  ;;  %v3716_v28 = vadd.f32 %v8234_v0, %v3631_v29 }
 0x355   :  { %v3907_v25 = vmul.f32 %v3875_v20, %v3843_v37  ;;  %v3883_v20 = vld [vmem:[%s8683_s3 + $0x88] sm:$0xff] }
 0x356   :  { %v3633_v32 = vpop.permute.xlu1 %3632 }
 0x357   :  { %v3759_v41 = vpop.permute.xlu0 %3758  ;;  %3940 = vst.msk [vmem:[%s8684_s4 + $0x48] sm:$0xff] %vm3930_vm0, %v3907_v25  ;;  %v3717_v38 = vadd.f32 %v8245_v11, %v3633_v32  ;;  %v3878_v11 = vld [vmem:[%s8683_s3 + $0x60] sm:$0xff] }
 0x358   :  { %v3844_v45 = vadd.f32 %v3759_v41, %v3716_v28 }
 0x35a   :  { %v3908_v48 = vmul.f32 %v3876_v31, %v3844_v45  ;;  %v3761_v0 = vpop.permute.xlu1 %3760 }
 0x35b   :  { %v3635_v52 = vpop.permute.xlu0 %3634  ;;  %v3845_v59 = vadd.f32 %v3761_v0, %v3717_v38  ;;  %v3885_v38 = vld [vmem:[%s8683_s3 + $0x98] sm:$0xff] }
 0x35c   :  { %3941 = vst.msk [vmem:[%s8684_s4 + $0x50] sm:$0xff] %vm3930_vm0, %v3908_v48  ;;  %v3718_v7 = vadd.f32 %v8256_v39, %v3635_v52 }
 0x35d   :  { %v3909_v10 = vmul.f32 %v3877_v51, %v3845_v59 }
 0x35e   :  { %v3637_v61 = vpop.permute.xlu1 %3636 }
 0x35f   :  { %v3763_v19 = vpop.permute.xlu0 %3762  ;;  %3942 = vst.msk [vmem:[%s8684_s4 + $0x58] sm:$0xff] %vm3930_vm0, %v3909_v10  ;;  %v3719_v56 = vadd.f32 %v8267_v1, %v3637_v61  ;;  %v3880_v1 = vld [vmem:[%s8683_s3 + $0x70] sm:$0xff] }
 0x360   :  { %v3846_v63 = vadd.f32 %v3763_v19, %v3718_v7  ;;  %v3887_v19 = vld [vmem:[%s8683_s3 + $0xa8] sm:$0xff] }
 0x362   :  { %v3910_v18 = vmul.f32 %v3878_v11, %v3846_v63  ;;  %v3765_v39 = vpop.permute.xlu1 %3764 }
 0x363   :  { %v3639_v53 = vpop.permute.xlu0 %3638  ;;  %v3847_v30 = vadd.f32 %v3765_v39, %v3719_v56 }
 0x364   :  { %3943 = vst.msk [vmem:[%s8684_s4 + $0x60] sm:$0xff] %vm3930_vm0, %v3910_v18  ;;  %v3720_v21 = vadd.f32 %v8276_v47, %v3639_v53 }
 0x365   :  { %v3911_v60 = vmul.f32 %v3879_v13, %v3847_v30 }
 0x366   :  { %v3641_v24 = vpop.permute.xlu1 %3640 }
 0x367   :  { %v3767_v17 = vpop.permute.xlu0 %3766  ;;  %3944 = vst.msk [vmem:[%s8684_s4 + $0x68] sm:$0xff] %vm3930_vm0, %v3911_v60  ;;  %v3721_v5 = vadd.f32 %v8286_v12, %v3641_v24  ;;  %v3882_v12 = vld [vmem:[%s8683_s3 + $0x80] sm:$0xff]  ;;  %v3889_v24 = vld [vmem:[%s8683_s3 + $0xb8] sm:$0xff] }
 0x368   :  { %v3848_v3 = vadd.f32 %v3767_v17, %v3720_v21 }
 0x36a   :  { %v3912_v9 = vmul.f32 %v3880_v1, %v3848_v3  ;;  %v3769_v47 = vpop.permute.xlu1 %3768 }
 0x36b   :  { %v3643_v57 = vpop.permute.xlu0 %3642  ;;  %v3849_v23 = vadd.f32 %v3769_v47, %v3721_v5 }
 0x36c   :  { %3945 = vst.msk [vmem:[%s8684_s4 + $0x70] sm:$0xff] %vm3930_vm0, %v3912_v9  ;;  %v3722_v55 = vadd.f32 %v8296_v58, %v3643_v57 }
 0x36d   :  { %v3913_v22 = vmul.f32 %v3881_v44, %v3849_v23 }
 0x36e   :  { %v3645_v8 = vpop.permute.xlu1 %3644 }
 0x36f   :  { %v3771_v4 = vpop.permute.xlu0 %3770  ;;  %3946 = vst.msk [vmem:[%s8684_s4 + $0x78] sm:$0xff] %vm3930_vm0, %v3913_v22  ;;  %v3723_v42 = vadd.f32 %v8306_v49, %v3645_v8  ;;  %v3884_v49 = vld [vmem:[%s8683_s3 + $0x90] sm:$0xff]  ;;  %v3891_v22 = vld [vmem:[%s8683_s3 + $0xc8] sm:$0xff] }
 0x370   :  { %v3850_v15 = vadd.f32 %v3771_v4, %v3722_v55 }
 0x372   :  { %v3914_v2 = vmul.f32 %v3882_v12, %v3850_v15  ;;  %v3773_v58 = vpop.permute.xlu1 %3772 }
 0x373   :  { %v3647_v34 = vpop.permute.xlu0 %3646  ;;  %v3851_v29 = vadd.f32 %v3773_v58, %v3723_v42 }
 0x374   :  { %3947 = vst.msk [vmem:[%s8684_s4 + $0x80] sm:$0xff] %vm3930_vm0, %v3914_v2  ;;  %v3724_v25 = vadd.f32 %v8315_v46, %v3647_v34  ;;  %v3893_v34 = vld [vmem:[%s8683_s3 + $0xd8] sm:$0xff] }
 0x375   :  { %v3915_v37 = vmul.f32 %v3883_v20, %v3851_v29 }
 0x376   :  { %v3649_v28 = vpop.permute.xlu1 %3648 }
 0x377   :  { %v3775_v32 = vpop.permute.xlu0 %3774  ;;  %3948 = vst.msk [vmem:[%s8684_s4 + $0x88] sm:$0xff] %vm3930_vm0, %v3915_v37  ;;  %v3725_v41 = vadd.f32 %v8324_v40, %v3649_v28  ;;  %v3886_v40 = vld [vmem:[%s8683_s3 + $0xa0] sm:$0xff] }
 0x378   :  { %v3852_v31 = vadd.f32 %v3775_v32, %v3724_v25 }
 0x37a   :  { %v3916_v45 = vmul.f32 %v3884_v49, %v3852_v31  ;;  %v3777_v46 = vpop.permute.xlu1 %3776  ;;  %v3894_v49 = vld [vmem:[%s8683_s3 + $0xe0] sm:$0xff] }
 0x37b   :  { %v3651_v48 = vpop.permute.xlu0 %3650  ;;  %v3853_v51 = vadd.f32 %v3777_v46, %v3725_v41 }
 0x37c   :  { %3949 = vst.msk [vmem:[%s8684_s4 + $0x90] sm:$0xff] %vm3930_vm0, %v3916_v45  ;;  %v3726_v52 = vadd.f32 %v8334_v35, %v3651_v48 }
 0x37d   :  { %v3917_v0 = vmul.f32 %v3885_v38, %v3853_v51  ;;  %v3895_v38 = vld [vmem:[%s8683_s3 + $0xe8] sm:$0xff] }
 0x37e   :  { %v3653_v59 = vpop.permute.xlu1 %3652 }
 0x37f   :  { %v3779_v10 = vpop.permute.xlu0 %3778  ;;  %3950 = vst.msk [vmem:[%s8684_s4 + $0x98] sm:$0xff] %vm3930_vm0, %v3917_v0  ;;  %v3727_v61 = vadd.f32 %v8341_v26, %v3653_v59  ;;  %v3888_v26 = vld [vmem:[%s8683_s3 + $0xb0] sm:$0xff] }
 0x380   :  { %v3854_v7 = vadd.f32 %v3779_v10, %v3726_v52  ;;  %v3896_v0 = vld [vmem:[%s8683_s3 + $0xf0] sm:$0xff] }
 0x382   :  { %v3918_v11 = vmul.f32 %v3886_v40, %v3854_v7  ;;  %v3781_v35 = vpop.permute.xlu1 %3780 }
 0x383   :  { %v3655_v63 = vpop.permute.xlu0 %3654  ;;  %v3855_v56 = vadd.f32 %v3781_v35, %v3727_v61  ;;  %v3897_v61 = vld [vmem:[%s8683_s3 + $0xf8] sm:$0xff] }
 0x384   :  { %3951 = vst.msk [vmem:[%s8684_s4 + $0xa0] sm:$0xff] %vm3930_vm0, %v3918_v11  ;;  %v3728_v13 = vadd.f32 %v8351_v62, %v3655_v63 }
 0x385   :  { %v3919_v18 = vmul.f32 %v3887_v19, %v3855_v56 }
 0x386   :  { %v3657_v39 = vpop.permute.xlu1 %3656 }
 0x387   :  { %v3783_v53 = vpop.permute.xlu0 %3782  ;;  %3952 = vst.msk [vmem:[%s8684_s4 + $0xa8] sm:$0xff] %vm3930_vm0, %v3919_v18  ;;  %v3729_v60 = vadd.f32 %v8360_v27, %v3657_v39  ;;  %v3890_v27 = vld [vmem:[%s8683_s3 + $0xc0] sm:$0xff] }
 0x388   :  { %v3856_v30 = vadd.f32 %v3783_v53, %v3728_v13 }
 0x38a   :  { %v3920_v21 = vmul.f32 %v3888_v26, %v3856_v30  ;;  %v3785_v62 = vpop.permute.xlu1 %3784 }
 0x38b   :  { %v3659_v1 = vpop.permute.xlu0 %3658  ;;  %v3857_v17 = vadd.f32 %v3785_v62, %v3729_v60 }
 0x38c   :  { %3953 = vst.msk [vmem:[%s8684_s4 + $0xb0] sm:$0xff] %vm3930_vm0, %v3920_v21  ;;  %v3730_v5 = vadd.f32 %v8367_v33, %v3659_v1 }
 0x38d   :  { %v3921_v3 = vmul.f32 %v3889_v24, %v3857_v17 }
 0x38e   :  { %v3661_v9 = vpop.permute.xlu1 %3660 }
 0x38f   :  { %v3787_v44 = vpop.permute.xlu0 %3786  ;;  %3954 = vst.msk [vmem:[%s8684_s4 + $0xb8] sm:$0xff] %vm3930_vm0, %v3921_v3  ;;  %v3731_v57 = vadd.f32 %v8377_v14, %v3661_v9  ;;  %v3892_v14 = vld [vmem:[%s8683_s3 + $0xd0] sm:$0xff] }
 0x390   :  { %v3858_v47 = vadd.f32 %v3787_v44, %v3730_v5 }
 0x392   :  { %v3922_v23 = vmul.f32 %v3890_v27, %v3858_v47  ;;  %v3789_v33 = vpop.permute.xlu1 %3788 }
 0x393   :  { %v3663_v55 = vpop.permute.xlu0 %3662  ;;  %v3859_v8 = vadd.f32 %v3789_v33, %v3731_v57 }
 0x394   :  { %3955 = vst.msk [vmem:[%s8684_s4 + $0xc0] sm:$0xff] %vm3930_vm0, %v3922_v23  ;;  %v3732_v4 = vadd.f32 %v8386_v50, %v3663_v55 }
 0x395   :  { %v3923_v12 = vmul.f32 %v3891_v22, %v3859_v8 }
 0x396   :  { %v3665_v15 = vpop.permute.xlu1 %3664 }
 0x397   :  { %v3791_v42 = vpop.permute.xlu0 %3790  ;;  %3956 = vst.msk [vmem:[%s8684_s4 + $0xc8] sm:$0xff] %vm3930_vm0, %v3923_v12  ;;  %v3733_v20 = vadd.f32 %v8392_v43, %v3665_v15 }
 0x398   :  { %v3860_v2 = vadd.f32 %v3791_v42, %v3732_v4 }
 0x39a   :  { %v3924_v58 = vmul.f32 %v3892_v14, %v3860_v2  ;;  %v3793_v50 = vpop.permute.xlu1 %3792 }
 0x39b   :  { %v3861_v29 = vadd.f32 %v3793_v50, %v3733_v20 }
 0x39c   :  { %3957 = vst.msk [vmem:[%s8684_s4 + $0xd0] sm:$0xff] %vm3930_vm0, %v3924_v58 }
 0x39d   :  { %v3925_v37 = vmul.f32 %v3893_v34, %v3861_v29  ;;  %v3667_v25 = vpop.permute.xlu0 %3666 }
 0x39e   :  { %v3734_v43 = vadd.f32 %v8400_v16, %v3667_v25 }
 0x39f   :  { %3958 = vst.msk [vmem:[%s8684_s4 + $0xd8] sm:$0xff] %vm3930_vm0, %v3925_v37 }
 0x3a1   :  { %v3669_v28 = vpop.permute.xlu1 %3668  ;;  %v3795_v32 = vpop.permute.xlu0 %3794 }
 0x3a2   :  { %v3862_v31 = vadd.f32 %v3795_v32, %v3734_v43  ;;  %v3735_v41 = vadd.f32 %v8405_v36, %v3669_v28 }
 0x3a4   :  { %v3926_v45 = vmul.f32 %v3894_v49, %v3862_v31 }
 0x3a5   :  { %v3797_v46 = vpop.permute.xlu1 %3796 }
 0x3a6   :  { %3959 = vst.msk [vmem:[%s8684_s4 + $0xe0] sm:$0xff] %vm3930_vm0, %v3926_v45  ;;  %v3863_v16 = vadd.f32 %v3797_v46, %v3735_v41 }
 0x3a8   :  { %v3927_v48 = vmul.f32 %v3895_v38, %v3863_v16  ;;  %v3671_v51 = vpop.permute.xlu0 %3670 }
 0x3a9   :  { %v3736_v36 = vadd.f32 %v8424_v54, %v3671_v51 }
 0x3aa   :  { %3960 = vst.msk [vmem:[%s8684_s4 + $0xe8] sm:$0xff] %vm3930_vm0, %v3927_v48 }
 0x3ac   :  { %v3799_v52 = vpop.permute.xlu0 %3798 }
 0x3ad   :  { %v3864_v59 = vadd.f32 %v3799_v52, %v3736_v36 }
 0x3af   :  { %v3928_v40 = vmul.f32 %v3896_v0, %v3864_v59  ;;  %v3673_v10 = vpop.permute.xlu1 %3672 }
 0x3b0   :  { %v3737_v7 = vadd.f32 %v8446_v6, %v3673_v10 }
 0x3b1   :  { %3961 = vst.msk [vmem:[%s8684_s4 + $0xf0] sm:$0xff] %vm3930_vm0, %v3928_v40 }
 0x3b3   :  { %v3801_v54 = vpop.permute.xlu1 %3800 }
 0x3b4   :  { %v3865_v11 = vadd.f32 %v3801_v54, %v3737_v7 }
 0x3b6   :  { %v3929_v19 = vmul.f32 %v3897_v61, %v3865_v11 }
 0x3b8   :  { %3962 = vst.msk [vmem:[%s8684_s4 + $0xf8] sm:$0xff] %vm3930_vm0, %v3929_v19 }

</bundles_post_ra>
